<compile_context>
chip_gen: v6e
topology: v6e:2x2x1
jax: 0.10.0
libtpu: 0.0.40
codegen_flags: <defaults>
</compile_context>

<pallas_src>
import functools

import numpy as np
import jax
import jax.numpy as jnp
from jax import lax
from jax.experimental import pallas as pl
from jax.experimental.pallas import tpu as pltpu


LANE = 128                      # channels padded to a multiple of this
SUBLANE = 8                     # spatial W pre-pad rounded to this
VMEM_BUDGET = 40 * 1024 * 1024  # conservative: fits v7x (64 MiB physical)
VMEM_LIMIT_CAP = 60 * 1024 * 1024


def _round_up(x, m):
    return (x + m - 1) // m * m


# -----------------------------------------------------------------------------
# Pallas kernel: 3x3 conv (padding=1) + folded-BN affine + ReLU on one row tile
# -----------------------------------------------------------------------------
def _conv3x3_affine_relu_kernel(top_ref, mid_ref, bot_ref, w_ref, scale_ref,
                                shift_ref, o_ref, halo_ref, *, W, pad_out):
    # top_ref:   (1, 1,  Wp, Cp)  row above the tile (valid only if r > 0)
    # mid_ref:   (1, TH, Wp, Cp)  the row tile (columns already zero-padded)
    # bot_ref:   (1, 1,  Wp, Cp)  row below the tile (valid only if r < last)
    # w_ref:     (9*Cp, TN)       raw conv weights, (kh, kw, cin) flattened
    # scale_ref: (1, TN)          BN scale (f32, applied to the f32 accumulator)
    # shift_ref: (1, TN)          BN shift incl. conv bias (f32)
    # o_ref:     (1, TH, W, TN) or (1, TH, Wp, TN) when pad_out
    # halo_ref:  (2, Wp, Cp)      scratch for the two halo rows only
    TH = mid_ref.shape[1]
    Wp = mid_ref.shape[2]
    Cp = mid_ref.shape[3]
    TN = o_ref.shape[3]

    r = pl.program_id(2)
    n_rt = pl.num_programs(2)

    # Only the two 1-row halos are zero-filled / copied; the interior of the
    # tile is consumed straight from mid_ref (no full-scratch zero fill, no
    # masked interior store, no column handling -- input is W-prepadded).
    halo_ref[...] = jnp.zeros_like(halo_ref)

    @pl.when(r > 0)
    def _():
        halo_ref[0:1] = top_ref[0]

    @pl.when(r < n_rt - 1)
    def _():
        halo_ref[1:2] = bot_ref[0]

    x = jnp.concatenate([halo_ref[0:1], mid_ref[0], halo_ref[1:2]], axis=0)

    # Three fat matmuls (K = 3*Cp), one per kernel row.
    acc = None
    for kh in range(3):
        patch = jnp.concatenate(
            [x[kh:kh + TH, kw:kw + W, :] for kw in range(3)], axis=-1)
        patch = patch.reshape(TH * W, 3 * Cp)
        w_kh = w_ref[kh * 3 * Cp:(kh + 1) * 3 * Cp, :]
        d = jnp.dot(patch, w_kh, preferred_element_type=jnp.float32)
        acc = d if acc is None else acc + d

    y = jnp.maximum(acc * scale_ref[0] + shift_ref[0], 0.0)
    y = y.reshape(TH, W, TN).astype(o_ref.dtype)

    if pad_out:
        # Write a W-prepadded slab so the next conv can read it directly.
        Wp_out = o_ref.shape[2]
        o_ref[0, :, 0:1, :] = jnp.zeros((TH, 1, TN), o_ref.dtype)
        o_ref[0, :, 1:W + 1, :] = y
        o_ref[0, :, W + 1:Wp_out, :] = jnp.zeros((TH, Wp_out - W - 1, TN),
                                                 o_ref.dtype)
    else:
        o_ref[0] = y


# -----------------------------------------------------------------------------
# VMEM-budget-aware tile selection
# -----------------------------------------------------------------------------
def _vmem_bytes(TH, TN, W, Wp, Cp, out_w, out_itemsize):
    mid = 2 * TH * Wp * Cp * 2            # double-buffered input tile
    halo_blocks = 2 * 2 * Wp * Cp * 2     # two 1-row halo refs, double-buffered
    wgt = 2 * 9 * Cp * TN * 2             # weight block (x2 even if resident)
    aff = 2 * 2 * TN * 4                  # scale + shift blocks
    outb = 2 * TH * out_w * TN * out_itemsize
    halo_scr = 2 * Wp * Cp * 2            # halo scratch
    xcat = (TH + 2) * Wp * Cp * 2         # row-assembled tile
    oper = TH * W * 3 * Cp * 2            # one K=3*Cp im2col operand
    acc = TH * W * TN * 4                 # f32 accumulator
    yv = TH * W * TN * 2
    return (mid + halo_blocks + wgt + aff + outb + halo_scr + xcat + oper
            + acc + yv)


def _select_tiles(H, W, Wp, Cp, CoutP, out_w, out_itemsize):
    th_cands = [t for t in (64, 32, 16, 8, 4, 2, 1) if H % t == 0]
    # Prefer >= 2 row tiles so the all-parallel grid keeps both v7x TensorCores
    # busy even at B = 1, n_ct = 1.
    th_pref = ([t for t in th_cands if H // t >= 2]
               + [t for t in th_cands if H // t < 2])

    tn_pref = [CoutP]                     # full weight residency when it fits
    if CoutP % 256 == 0 and 256 < CoutP:
        tn_pref.append(256)               # 256-wide MXU on v6e / v7x
    if 128 < CoutP:
        tn_pref.append(128)

    for TN in tn_pref:
        for TH in th_pref:
            if TN != tn_pref[-1] and TH < min(8, H):
                continue                  # don't buy a wide TN with a tiny TH
            est = _vmem_bytes(TH, TN, W, Wp, Cp, out_w, out_itemsize)
            if est <= VMEM_BUDGET:
                return TH, TN, est
    TH, TN = th_cands[-1], tn_pref[-1]
    return TH, TN, _vmem_bytes(TH, TN, W, Wp, Cp, out_w, out_itemsize)


# -----------------------------------------------------------------------------
# Host wrapper for one conv+BN+ReLU stage
# -----------------------------------------------------------------------------
def conv3x3_affine_relu(x, w2d, scale, shift, *, true_w, pad_out, out_dtype):
    """x: (B, H, Wp, Cp) bf16 with zero columns 0 and true_w+1.  w2d: (9*Cp, CoutP)
    bf16 raw weights ((kh, kw, cin) flattened).  scale/shift: (1, CoutP) f32."""
    B, H, Wp, Cp = x.shape
    CoutP = w2d.shape[1]
    W = true_w
    assert Cp % LANE == 0 and CoutP % LANE == 0
    out_w = Wp if pad_out else W
    out_itemsize = np.dtype(out_dtype).itemsize

    TH, TN, est = _select_tiles(H, W, Wp, Cp, CoutP, out_w, out_itemsize)
    n_rt = H // TH
    n_ct = CoutP // TN
    grid = (B, n_ct, n_rt)   # Cout tiles outer -> weight resident across rows

    kernel = functools.partial(_conv3x3_affine_relu_kernel, W=W,
                               pad_out=pad_out)

    flops = 2 * B * H * W * 9 * Cp * CoutP
    bytes_accessed = (B * n_ct * H * Wp * Cp * 2      # activations
                      + B * n_ct * 9 * Cp * TN * 2    # weights (row-sweep resident)
                      + B * H * out_w * CoutP * out_itemsize)
    vmem_limit = int(min(VMEM_LIMIT_CAP, max(32 * 1024 * 1024, 2 * est)))

    return pl.pallas_call(
        kernel,
        out_shape=jax.ShapeDtypeStruct((B, H, out_w, CoutP), out_dtype),
        grid=grid,
        in_specs=[
            pl.BlockSpec((1, 1, Wp, Cp),
                         lambda b, n, r: (b, jnp.maximum(r * TH - 1, 0), 0, 0)),
            pl.BlockSpec((1, TH, Wp, Cp), lambda b, n, r: (b, r, 0, 0)),
            pl.BlockSpec((1, 1, Wp, Cp),
                         lambda b, n, r: (b, jnp.minimum((r + 1) * TH, H - 1), 0, 0)),
            pl.BlockSpec((9 * Cp, TN), lambda b, n, r: (0, n)),
            pl.BlockSpec((1, TN), lambda b, n, r: (0, n)),
            pl.BlockSpec((1, TN), lambda b, n, r: (0, n)),
        ],
        out_specs=pl.BlockSpec((1, TH, out_w, TN), lambda b, n, r: (b, r, 0, n)),
        scratch_shapes=[pltpu.VMEM((2, Wp, Cp), x.dtype)],
        compiler_params=pltpu.CompilerParams(
            dimension_semantics=("parallel", "parallel", "parallel"),
            vmem_limit_bytes=vmem_limit),
        cost_estimate=pl.CostEstimate(flops=flops, transcendentals=0,
                                      bytes_accessed=bytes_accessed),
    )(x, x, x, w2d, scale, shift)


# -----------------------------------------------------------------------------
# Glue: bilinear x2 upsample (align_corners=True)  (plain JAX)
# -----------------------------------------------------------------------------
def upsample_bilinear_x2_align_corners(x):
    """x: (B, H, W, C) -> (B, 2H, 2W, C), matching nn.Upsample(2, bilinear, True)."""
    B, H, W, C = x.shape
    Ho, Wo = 2 * H, 2 * W

    def coords(n_in, n_out):
        if n_in == 1:
            z = jnp.zeros((n_out,), jnp.float32)
            zi = jnp.zeros((n_out,), jnp.int32)
            return z, zi, zi
        src = jnp.arange(n_out, dtype=jnp.float32) * (n_in - 1) / (n_out - 1)
        lo = jnp.floor(src).astype(jnp.int32)
        hi = jnp.minimum(lo + 1, n_in - 1)
        return src - lo.astype(jnp.float32), lo, hi

    fh, h0, h1 = coords(H, Ho)
    fw, w0, w1 = coords(W, Wo)

    top = x[:, h0, :, :]
    bot = x[:, h1, :, :]
    xh = top * (1.0 - fh)[None, :, None, None] + bot * fh[None, :, None, None]
    left = xh[:, :, w0, :]
    right = xh[:, :, w1, :]
    return left * (1.0 - fw)[None, None, :, None] + right * fw[None, None, :, None]


# -----------------------------------------------------------------------------
# Parameters: BN folded (eval mode) into f32 scale/shift, bf16 padded weights
# -----------------------------------------------------------------------------
def fold_bn(conv_bias, gamma, beta, running_mean, running_var, eps=1e-5):
    scale = gamma / jnp.sqrt(running_var + eps)
    shift = (conv_bias - running_mean) * scale + beta
    return scale, shift


def _prep_weight(w, cin_p, cout_p):
    cin, cout = w.shape[2], w.shape[3]
    wp = jnp.zeros((3, 3, cin_p, cout_p), jnp.float32)
    wp = wp.at[:, :, :cin, :cout].set(w)
    return wp.reshape(9 * cin_p, cout_p).astype(jnp.bfloat16)


def _prep_affine(scale, shift, cout_p):
    cout = scale.shape[0]
    sp = jnp.zeros((1, cout_p), jnp.float32).at[0, :cout].set(scale)
    bp = jnp.zeros((1, cout_p), jnp.float32).at[0, :cout].set(shift)
    return sp, bp


def init_params(key, in_channels, out_channels):
    ks = jax.random.split(key, 12)
    cin_p = _round_up(in_channels, LANE)
    cmid_p = _round_up(out_channels, LANE)
    rnd = lambda k, s: 0.1 * jax.random.normal(k, s, jnp.float32)

    p = {}
    w1 = rnd(ks[0], (3, 3, in_channels, out_channels))
    b1 = rnd(ks[1], (out_channels,))
    g1 = 1.0 + rnd(ks[2], (out_channels,))
    be1 = rnd(ks[3], (out_channels,))
    m1 = rnd(ks[4], (out_channels,))
    v1 = jnp.abs(1.0 + rnd(ks[5], (out_channels,)))
    s1, sh1 = fold_bn(b1, g1, be1, m1, v1)

    w2 = rnd(ks[6], (3, 3, out_channels, out_channels))
    b2 = rnd(ks[7], (out_channels,))
    g2 = 1.0 + rnd(ks[8], (out_channels,))
    be2 = rnd(ks[9], (out_channels,))
    m2 = rnd(ks[10], (out_channels,))
    v2 = jnp.abs(1.0 + rnd(ks[11], (out_channels,)))
    s2, sh2 = fold_bn(b2, g2, be2, m2, v2)

    p["w1"], p["scale1"], p["shift1"] = w1, s1, sh1
    p["w2"], p["scale2"], p["shift2"] = w2, s2, sh2
    p["w1p"] = _prep_weight(w1, cin_p, cmid_p)
    p["scale1p"], p["shift1p"] = _prep_affine(s1, sh1, cmid_p)
    p["w2p"] = _prep_weight(w2, cmid_p, cmid_p)
    p["scale2p"], p["shift2p"] = _prep_affine(s2, sh2, cmid_p)
    return p


# -----------------------------------------------------------------------------
# Up.forward(x1, x2) with bilinear=True.  Inputs/outputs are NCHW.
# -----------------------------------------------------------------------------
@jax.jit
def up_forward(x1_nchw, x2_nchw, params):
    x1 = jnp.transpose(x1_nchw, (0, 2, 3, 1))  # -> NHWC
    x2 = jnp.transpose(x2_nchw, (0, 2, 3, 1))

    x1 = upsample_bilinear_x2_align_corners(x1)

    # NOTE: assumes diffH/diffW >= 0 (skip tensor spatially >= upsampled x1).
    diffH = x2.shape[1] - x1.shape[1]
    diffW = x2.shape[2] - x1.shape[2]
    x1 = jnp.pad(x1, ((0, 0), (diffH // 2, diffH - diffH // 2),
                      (diffW // 2, diffW - diffW // 2), (0, 0)))

    B, H, W, c2 = x2.shape
    c1 = x1.shape[-1]
    cin_p = params["w1p"].shape[0] // 9
    Wp = _round_up(W + 2, SUBLANE)

    # Channel concat (torch.cat([x2, x1], dim=1) -> NHWC last axis), channel
    # pad to 128 and spatial W pre-pad (zero columns) in one bf16 buffer so the
    # conv kernel needs no in-kernel zero fill or column handling.
    # TODO(synk): fuse this concat+pad into conv1 by splitting w1p into an
    #             x2-part and an x1-part and passing two input refs.
    xp = jnp.zeros((B, H, Wp, cin_p), jnp.bfloat16)
    xp = xp.at[:, :, 1:W + 1, :c2].set(x2.astype(jnp.bfloat16))
    xp = xp.at[:, :, 1:W + 1, c2:c2 + c1].set(x1.astype(jnp.bfloat16))

    y = conv3x3_affine_relu(xp, params["w1p"], params["scale1p"],
                            params["shift1p"], true_w=W, pad_out=True,
                            out_dtype=jnp.bfloat16)
    y = conv3x3_affine_relu(y, params["w2p"], params["scale2p"],
                            params["shift2p"], true_w=W, pad_out=False,
                            out_dtype=jnp.bfloat16)

    cout = params["w2"].shape[-1]
    y = y[..., :cout].astype(jnp.float32)
    return jnp.transpose(y, (0, 3, 1, 2))  # -> NCHW


# -----------------------------------------------------------------------------
# Reference (plain JAX with the same bf16 rounding) for sanity checking
# -----------------------------------------------------------------------------
def _q(a):
    return a.astype(jnp.bfloat16).astype(jnp.float32)


def _ref_conv3x3(x, w, scale, shift):
    y = lax.conv_general_dilated(
        _q(x), _q(w), window_strides=(1, 1), padding="SAME",
        dimension_numbers=("NHWC", "HWIO", "NHWC"),
        precision=lax.Precision.HIGHEST,
        preferred_element_type=jnp.float32)
    return jnp.maximum(y * scale + shift, 0.0)


if __name__ == "__main__":
    key = jax.random.PRNGKey(0)
    k1, k2, kp = jax.random.split(key, 3)

    B = 2
    in_channels = 8      # concatenated channels (x2 then upsampled x1)
    out_channels = 4
    # x1: low-res decoder feature, x2: skip connection at 2x resolution.
    x1 = jax.random.normal(k1, (B, in_channels // 2, 8, 8), jnp.float32)
    x2 = jax.random.normal(k2, (B, in_channels // 2, 16, 16), jnp.float32)

    params = init_params(kp, in_channels, out_channels)

    out = jax.block_until_ready(up_forward(x1, x2, params))
    assert out.shape == (B, out_channels, 16, 16), out.shape

    # Sanity check against lax.conv with matching bf16 rounding of activations
    # and weights (f32 accumulation in both; conv2 output is bf16 in the kernel).
    x1h = upsample_bilinear_x2_align_corners(jnp.transpose(x1, (0, 2, 3, 1)))
    xcat = jnp.concatenate([jnp.transpose(x2, (0, 2, 3, 1)), x1h], axis=-1)
    r1 = _ref_conv3x3(xcat, params["w1"], params["scale1"], params["shift1"])
    r2 = _ref_conv3x3(r1, params["w2"], params["scale2"], params["shift2"])
    ref = jnp.transpose(_q(r2), (0, 3, 1, 2))
    rel = float(jnp.max(jnp.abs(out - ref) / (jnp.abs(ref) + 1e-2)))
    assert rel < 2e-2, rel

    print("KERNEL_OK")
</pallas_src>

<mosaic_0001>
module attributes {stable_mosaic.version = 11 : i64} {
  func.func @_conv3x3_affine_relu_kernel(%arg0: i32, %arg1: i32, %arg2: i32, %arg3: memref<1x1x24x128xbf16, #tpu.memory_space<vmem>>, %arg4: memref<1x8x24x128xbf16, #tpu.memory_space<vmem>>, %arg5: memref<1x1x24x128xbf16, #tpu.memory_space<vmem>>, %arg6: memref<1152x128xbf16, #tpu.memory_space<vmem>>, %arg7: memref<1x128xf32, #tpu.memory_space<vmem>>, %arg8: memref<1x128xf32, #tpu.memory_space<vmem>>, %arg9: memref<1x8x24x128xbf16, #tpu.memory_space<vmem>>, %arg10: memref<2x24x128xbf16, #tpu.memory_space<vmem>>) attributes {dimension_semantics = [#tpu.dimension_semantics<parallel>, #tpu.dimension_semantics<parallel>, #tpu.dimension_semantics<parallel>], iteration_bounds = array<i64: 2, 1, 2>, scalar_prefetch = 0 : i64, scratch_operands = 1 : i64, tpu.core_type = #tpu.core_type<tc>, window_params = [{transform_indices = @transform_0, window_bounds = array<i64: 1, 1, 24, 128>}, {transform_indices = @transform_1, window_bounds = array<i64: 1, 8, 24, 128>}, {transform_indices = @transform_2, window_bounds = array<i64: 1, 1, 24, 128>}, {transform_indices = @transform_3, window_bounds = array<i64: 1152, 128>}, {transform_indices = @transform_4, window_bounds = array<i64: 1, 128>}, {transform_indices = @transform_5, window_bounds = array<i64: 1, 128>}, {transform_indices = @transform_6, window_bounds = array<i64: 1, 8, 24, 128>}]} {
    %cst = arith.constant 0.000000e+00 : bf16
    %0 = vector.broadcast %cst : bf16 to vector<2x24x128xbf16>
    %c0 = arith.constant 0 : index
    %c0_0 = arith.constant 0 : index
    %c0_1 = arith.constant 0 : index
    %1 = vector.load %arg10[%c0, %c0_0, %c0_1] : memref<2x24x128xbf16, #tpu.memory_space<vmem>>, vector<2x24x128xbf16>
    tpu.vector_store %arg10[%c0, %c0_0, %c0_1], %0 {strides = array<i32>} : memref<2x24x128xbf16, #tpu.memory_space<vmem>>, vector<2x24x128xbf16>,
    %c0_i32 = arith.constant 0 : i32
    %2 = arith.cmpi sgt, %arg2, %c0_i32 : i32
    %3 = arith.extui %2 : i1 to i32
    %c0_i32_2 = arith.constant 0 : i32
    %4 = arith.cmpi ne, %3, %c0_i32_2 : i32
    scf.if %4 {
      %c0_38 = arith.constant 0 : index
      %c0_39 = arith.constant 0 : index
      %c0_40 = arith.constant 0 : index
      %c0_41 = arith.constant 0 : index
      %61 = vector.load %arg3[%c0_38, %c0_39, %c0_40, %c0_41] : memref<1x1x24x128xbf16, #tpu.memory_space<vmem>>, vector<1x1x24x128xbf16>
      %62 = vector.shape_cast %61 : vector<1x1x24x128xbf16> to vector<1x24x128xbf16>
      %c0_42 = arith.constant 0 : index
      %c0_43 = arith.constant 0 : index
      %c0_44 = arith.constant 0 : index
      %63 = vector.load %arg10[%c0_42, %c0_43, %c0_44] : memref<2x24x128xbf16, #tpu.memory_space<vmem>>, vector<1x24x128xbf16>
      tpu.vector_store %arg10[%c0_42, %c0_43, %c0_44], %62 {strides = array<i32>} : memref<2x24x128xbf16, #tpu.memory_space<vmem>>, vector<1x24x128xbf16>,
    } else {
    }
    %c1_i32 = arith.constant 1 : i32
    %5 = arith.cmpi slt, %arg2, %c1_i32 : i32
    %6 = arith.extui %5 : i1 to i32
    %c0_i32_3 = arith.constant 0 : i32
    %7 = arith.cmpi ne, %6, %c0_i32_3 : i32
    scf.if %7 {
      %c0_38 = arith.constant 0 : index
      %c0_39 = arith.constant 0 : index
      %c0_40 = arith.constant 0 : index
      %c0_41 = arith.constant 0 : index
      %61 = vector.load %arg5[%c0_38, %c0_39, %c0_40, %c0_41] : memref<1x1x24x128xbf16, #tpu.memory_space<vmem>>, vector<1x1x24x128xbf16>
      %62 = vector.shape_cast %61 : vector<1x1x24x128xbf16> to vector<1x24x128xbf16>
      %c1_42 = arith.constant 1 : index
      %c0_43 = arith.constant 0 : index
      %c0_44 = arith.constant 0 : index
      %63 = vector.load %arg10[%c1_42, %c0_43, %c0_44] : memref<2x24x128xbf16, #tpu.memory_space<vmem>>, vector<1x24x128xbf16>
      tpu.vector_store %arg10[%c1_42, %c0_43, %c0_44], %62 {strides = array<i32>} : memref<2x24x128xbf16, #tpu.memory_space<vmem>>, vector<1x24x128xbf16>,
    } else {
    }
    %c0_4 = arith.constant 0 : index
    %c0_5 = arith.constant 0 : index
    %c0_6 = arith.constant 0 : index
    %8 = vector.load %arg10[%c0_4, %c0_5, %c0_6] : memref<2x24x128xbf16, #tpu.memory_space<vmem>>, vector<1x24x128xbf16>
    %c0_7 = arith.constant 0 : index
    %c0_8 = arith.constant 0 : index
    %c0_9 = arith.constant 0 : index
    %c0_10 = arith.constant 0 : index
    %9 = vector.load %arg4[%c0_7, %c0_8, %c0_9, %c0_10] : memref<1x8x24x128xbf16, #tpu.memory_space<vmem>>, vector<1x8x24x128xbf16>
    %10 = vector.shape_cast %9 : vector<1x8x24x128xbf16> to vector<8x24x128xbf16>
    %c1 = arith.constant 1 : index
    %c0_11 = arith.constant 0 : index
    %c0_12 = arith.constant 0 : index
    %11 = vector.load %arg10[%c1, %c0_11, %c0_12] : memref<2x24x128xbf16, #tpu.memory_space<vmem>>, vector<1x24x128xbf16>
    %12 = tpu.concatenate %8, %10, %11 in 0 : vector<1x24x128xbf16>, vector<8x24x128xbf16>, vector<1x24x128xbf16> -> vector<10x24x128xbf16>
    %13 = vector.extract_strided_slice %12 {offsets = [0, 0, 0], sizes = [8, 16, 128], strides = [1, 1, 1]} : vector<10x24x128xbf16> to vector<8x16x128xbf16>
    %14 = vector.extract_strided_slice %12 {offsets = [0, 1, 0], sizes = [8, 16, 128], strides = [1, 1, 1]} : vector<10x24x128xbf16> to vector<8x16x128xbf16>
    %15 = vector.extract_strided_slice %12 {offsets = [0, 2, 0], sizes = [8, 16, 128], strides = [1, 1, 1]} : vector<10x24x128xbf16> to vector<8x16x128xbf16>
    %16 = tpu.concatenate %13, %14, %15 in 2 : vector<8x16x128xbf16>, vector<8x16x128xbf16>, vector<8x16x128xbf16> -> vector<8x16x384xbf16>
    %17 = vector.shape_cast %16 : vector<8x16x384xbf16> to vector<128x384xbf16>
    %c0_13 = arith.constant 0 : index
    %c0_14 = arith.constant 0 : index
    %18 = vector.load %arg6[%c0_13, %c0_14] : memref<1152x128xbf16, #tpu.memory_space<vmem>>, vector<384x128xbf16>
    %cst_15 = arith.constant dense<0.000000e+00> : vector<128x128xf32>
    %19 = tpu.matmul %17, %18, %cst_15 {dimension_numbers = #tpu.dot_dimension_numbers<[1], [0], [0], [1], [0, 0, 1, 1], [], []>} : vector<128x384xbf16>, vector<384x128xbf16>, vector<128x128xf32> -> vector<128x128xf32>
    %20 = vector.extract_strided_slice %12 {offsets = [1, 0, 0], sizes = [8, 16, 128], strides = [1, 1, 1]} : vector<10x24x128xbf16> to vector<8x16x128xbf16>
    %21 = vector.extract_strided_slice %12 {offsets = [1, 1, 0], sizes = [8, 16, 128], strides = [1, 1, 1]} : vector<10x24x128xbf16> to vector<8x16x128xbf16>
    %22 = vector.extract_strided_slice %12 {offsets = [1, 2, 0], sizes = [8, 16, 128], strides = [1, 1, 1]} : vector<10x24x128xbf16> to vector<8x16x128xbf16>
    %23 = tpu.concatenate %20, %21, %22 in 2 : vector<8x16x128xbf16>, vector<8x16x128xbf16>, vector<8x16x128xbf16> -> vector<8x16x384xbf16>
    %24 = vector.shape_cast %23 : vector<8x16x384xbf16> to vector<128x384xbf16>
    %c384 = arith.constant 384 : index
    %c0_16 = arith.constant 0 : index
    %25 = vector.load %arg6[%c384, %c0_16] : memref<1152x128xbf16, #tpu.memory_space<vmem>>, vector<384x128xbf16>
    %cst_17 = arith.constant dense<0.000000e+00> : vector<128x128xf32>
    %26 = tpu.matmul %24, %25, %cst_17 {dimension_numbers = #tpu.dot_dimension_numbers<[1], [0], [0], [1], [0, 0, 1, 1], [], []>} : vector<128x384xbf16>, vector<384x128xbf16>, vector<128x128xf32> -> vector<128x128xf32>
    %27 = arith.addf %19, %26 : vector<128x128xf32>
    %28 = vector.extract_strided_slice %12 {offsets = [2, 0, 0], sizes = [8, 16, 128], strides = [1, 1, 1]} : vector<10x24x128xbf16> to vector<8x16x128xbf16>
    %29 = vector.extract_strided_slice %12 {offsets = [2, 1, 0], sizes = [8, 16, 128], strides = [1, 1, 1]} : vector<10x24x128xbf16> to vector<8x16x128xbf16>
    %30 = vector.extract_strided_slice %12 {offsets = [2, 2, 0], sizes = [8, 16, 128], strides = [1, 1, 1]} : vector<10x24x128xbf16> to vector<8x16x128xbf16>
    %31 = tpu.concatenate %28, %29, %30 in 2 : vector<8x16x128xbf16>, vector<8x16x128xbf16>, vector<8x16x128xbf16> -> vector<8x16x384xbf16>
    %32 = vector.shape_cast %31 : vector<8x16x384xbf16> to vector<128x384xbf16>
    %c768 = arith.constant 768 : index
    %c0_18 = arith.constant 0 : index
    %33 = vector.load %arg6[%c768, %c0_18] : memref<1152x128xbf16, #tpu.memory_space<vmem>>, vector<384x128xbf16>
    %cst_19 = arith.constant dense<0.000000e+00> : vector<128x128xf32>
    %34 = tpu.matmul %32, %33, %cst_19 {dimension_numbers = #tpu.dot_dimension_numbers<[1], [0], [0], [1], [0, 0, 1, 1], [], []>} : vector<128x384xbf16>, vector<384x128xbf16>, vector<128x128xf32> -> vector<128x128xf32>
    %35 = arith.addf %27, %34 : vector<128x128xf32>
    %c0_20 = arith.constant 0 : index
    %c0_21 = arith.constant 0 : index
    %36 = vector.load %arg7[%c0_20, %c0_21] : memref<1x128xf32, #tpu.memory_space<vmem>>, vector<1x128xf32>
    %37 = vector.shape_cast %36 : vector<1x128xf32> to vector<128xf32>
    %38 = vector.shape_cast %37 : vector<128xf32> to vector<1x128xf32>
    %39 = vector.broadcast %38 : vector<1x128xf32> to vector<128x128xf32>
    %40 = arith.mulf %35, %39 : vector<128x128xf32>
    %c0_22 = arith.constant 0 : index
    %c0_23 = arith.constant 0 : index
    %41 = vector.load %arg8[%c0_22, %c0_23] : memref<1x128xf32, #tpu.memory_space<vmem>>, vector<1x128xf32>
    %42 = vector.shape_cast %41 : vector<1x128xf32> to vector<128xf32>
    %43 = vector.shape_cast %42 : vector<128xf32> to vector<1x128xf32>
    %44 = vector.broadcast %43 : vector<1x128xf32> to vector<128x128xf32>
    %45 = arith.addf %40, %44 : vector<128x128xf32>
    %cst_24 = arith.constant 0.000000e+00 : f32
    %46 = vector.broadcast %cst_24 : f32 to vector<128x128xf32>
    %47 = arith.maximumf %45, %46 : vector<128x128xf32>
    %48 = vector.shape_cast %47 : vector<128x128xf32> to vector<8x16x128xf32>
    %49 = arith.truncf %48 : vector<8x16x128xf32> to vector<8x16x128xbf16>
    %cst_25 = arith.constant 0.000000e+00 : bf16
    %50 = vector.broadcast %cst_25 : bf16 to vector<8x1x128xbf16>
    %c0_26 = arith.constant 0 : index
    %c0_27 = arith.constant 0 : index
    %c0_28 = arith.constant 0 : index
    %c0_29 = arith.constant 0 : index
    %51 = vector.load %arg9[%c0_26, %c0_27, %c0_28, %c0_29] : memref<1x8x24x128xbf16, #tpu.memory_space<vmem>>, vector<1x8x1x128xbf16>
    %52 = vector.shape_cast %51 : vector<1x8x1x128xbf16> to vector<8x1x128xbf16>
    %53 = vector.shape_cast %50 : vector<8x1x128xbf16> to vector<1x8x1x128xbf16>
    tpu.vector_store %arg9[%c0_26, %c0_27, %c0_28, %c0_29], %53 {strides = array<i32>} : memref<1x8x24x128xbf16, #tpu.memory_space<vmem>>, vector<1x8x1x128xbf16>,
    %c0_30 = arith.constant 0 : index
    %c0_31 = arith.constant 0 : index
    %c1_32 = arith.constant 1 : index
    %c0_33 = arith.constant 0 : index
    %54 = vector.load %arg9[%c0_30, %c0_31, %c1_32, %c0_33] : memref<1x8x24x128xbf16, #tpu.memory_space<vmem>>, vector<1x8x16x128xbf16>
    %55 = vector.shape_cast %54 : vector<1x8x16x128xbf16> to vector<8x16x128xbf16>
    %56 = vector.shape_cast %49 : vector<8x16x128xbf16> to vector<1x8x16x128xbf16>
    tpu.vector_store %arg9[%c0_30, %c0_31, %c1_32, %c0_33], %56 {strides = array<i32>} : memref<1x8x24x128xbf16, #tpu.memory_space<vmem>>, vector<1x8x16x128xbf16>,
    %cst_34 = arith.constant 0.000000e+00 : bf16
    %57 = vector.broadcast %cst_34 : bf16 to vector<8x7x128xbf16>
    %c0_35 = arith.constant 0 : index
    %c0_36 = arith.constant 0 : index
    %c17 = arith.constant 17 : index
    %c0_37 = arith.constant 0 : index
    %58 = vector.load %arg9[%c0_35, %c0_36, %c17, %c0_37] : memref<1x8x24x128xbf16, #tpu.memory_space<vmem>>, vector<1x8x7x128xbf16>
    %59 = vector.shape_cast %58 : vector<1x8x7x128xbf16> to vector<8x7x128xbf16>
    %60 = vector.shape_cast %57 : vector<8x7x128xbf16> to vector<1x8x7x128xbf16>
    tpu.vector_store %arg9[%c0_35, %c0_36, %c17, %c0_37], %60 {strides = array<i32>} : memref<1x8x24x128xbf16, #tpu.memory_space<vmem>>, vector<1x8x7x128xbf16>,
    return
  }
  func.func @transform_0(%arg0: i32, %arg1: i32, %arg2: i32) -> (i32, i32, i32, i32) {
    %c8_i32 = arith.constant 8 : i32
    %0 = arith.muli %arg2, %c8_i32 : i32
    %c1_i32 = arith.constant 1 : i32
    %1 = arith.subi %0, %c1_i32 : i32
    %c0_i32 = arith.constant 0 : i32
    %2 = arith.maxsi %1, %c0_i32 : i32
    %c0_i32_0 = arith.constant 0 : i32
    %c0_i32_1 = arith.constant 0 : i32
    %c0_i32_2 = arith.constant 0 : i32
    return %arg0, %2, %c0_i32_0, %c0_i32_1 : i32, i32, i32, i32
  }
  func.func @transform_1(%arg0: i32, %arg1: i32, %arg2: i32) -> (i32, i32, i32, i32) {
    %c0_i32 = arith.constant 0 : i32
    %c0_i32_0 = arith.constant 0 : i32
    %c0_i32_1 = arith.constant 0 : i32
    return %arg0, %arg2, %c0_i32, %c0_i32_0 : i32, i32, i32, i32
  }
  func.func @transform_2(%arg0: i32, %arg1: i32, %arg2: i32) -> (i32, i32, i32, i32) {
    %c1_i32 = arith.constant 1 : i32
    %0 = arith.addi %arg2, %c1_i32 : i32
    %c8_i32 = arith.constant 8 : i32
    %1 = arith.muli %0, %c8_i32 : i32
    %c15_i32 = arith.constant 15 : i32
    %2 = arith.minsi %1, %c15_i32 : i32
    %c0_i32 = arith.constant 0 : i32
    %c0_i32_0 = arith.constant 0 : i32
    %c0_i32_1 = arith.constant 0 : i32
    return %arg0, %2, %c0_i32, %c0_i32_0 : i32, i32, i32, i32
  }
  func.func @transform_3(%arg0: i32, %arg1: i32, %arg2: i32) -> (i32, i32) {
    %c0_i32 = arith.constant 0 : i32
    %c0_i32_0 = arith.constant 0 : i32
    return %c0_i32, %arg1 : i32, i32
  }
  func.func @transform_4(%arg0: i32, %arg1: i32, %arg2: i32) -> (i32, i32) {
    %c0_i32 = arith.constant 0 : i32
    %c0_i32_0 = arith.constant 0 : i32
    return %c0_i32, %arg1 : i32, i32
  }
  func.func @transform_5(%arg0: i32, %arg1: i32, %arg2: i32) -> (i32, i32) {
    %c0_i32 = arith.constant 0 : i32
    %c0_i32_0 = arith.constant 0 : i32
    return %c0_i32, %arg1 : i32, i32
  }
  func.func @transform_6(%arg0: i32, %arg1: i32, %arg2: i32) -> (i32, i32, i32, i32) {
    %c0_i32 = arith.constant 0 : i32
    %c0_i32_0 = arith.constant 0 : i32
    return %arg0, %arg2, %c0_i32, %arg1 : i32, i32, i32, i32
  }
}

module attributes {stable_mosaic.version = 11 : i64} {
  func.func @_conv3x3_affine_relu_kernel(%arg0: i32, %arg1: i32, %arg2: i32, %arg3: memref<1x1x24x128xbf16, #tpu.memory_space<vmem>>, %arg4: memref<1x8x24x128xbf16, #tpu.memory_space<vmem>>, %arg5: memref<1x1x24x128xbf16, #tpu.memory_space<vmem>>, %arg6: memref<1152x128xbf16, #tpu.memory_space<vmem>>, %arg7: memref<1x128xf32, #tpu.memory_space<vmem>>, %arg8: memref<1x128xf32, #tpu.memory_space<vmem>>, %arg9: memref<1x8x16x128xbf16, #tpu.memory_space<vmem>>, %arg10: memref<2x24x128xbf16, #tpu.memory_space<vmem>>) attributes {dimension_semantics = [#tpu.dimension_semantics<parallel>, #tpu.dimension_semantics<parallel>, #tpu.dimension_semantics<parallel>], iteration_bounds = array<i64: 2, 1, 2>, scalar_prefetch = 0 : i64, scratch_operands = 1 : i64, tpu.core_type = #tpu.core_type<tc>, window_params = [{transform_indices = @transform_0, window_bounds = array<i64: 1, 1, 24, 128>}, {transform_indices = @transform_1, window_bounds = array<i64: 1, 8, 24, 128>}, {transform_indices = @transform_2, window_bounds = array<i64: 1, 1, 24, 128>}, {transform_indices = @transform_3, window_bounds = array<i64: 1152, 128>}, {transform_indices = @transform_4, window_bounds = array<i64: 1, 128>}, {transform_indices = @transform_5, window_bounds = array<i64: 1, 128>}, {transform_indices = @transform_6, window_bounds = array<i64: 1, 8, 16, 128>}]} {
    %cst = arith.constant 0.000000e+00 : bf16
    %0 = vector.broadcast %cst : bf16 to vector<2x24x128xbf16>
    %c0 = arith.constant 0 : index
    %c0_0 = arith.constant 0 : index
    %c0_1 = arith.constant 0 : index
    %1 = vector.load %arg10[%c0, %c0_0, %c0_1] : memref<2x24x128xbf16, #tpu.memory_space<vmem>>, vector<2x24x128xbf16>
    tpu.vector_store %arg10[%c0, %c0_0, %c0_1], %0 {strides = array<i32>} : memref<2x24x128xbf16, #tpu.memory_space<vmem>>, vector<2x24x128xbf16>,
    %c0_i32 = arith.constant 0 : i32
    %2 = arith.cmpi sgt, %arg2, %c0_i32 : i32
    %3 = arith.extui %2 : i1 to i32
    %c0_i32_2 = arith.constant 0 : i32
    %4 = arith.cmpi ne, %3, %c0_i32_2 : i32
    scf.if %4 {
      %c0_29 = arith.constant 0 : index
      %c0_30 = arith.constant 0 : index
      %c0_31 = arith.constant 0 : index
      %c0_32 = arith.constant 0 : index
      %53 = vector.load %arg3[%c0_29, %c0_30, %c0_31, %c0_32] : memref<1x1x24x128xbf16, #tpu.memory_space<vmem>>, vector<1x1x24x128xbf16>
      %54 = vector.shape_cast %53 : vector<1x1x24x128xbf16> to vector<1x24x128xbf16>
      %c0_33 = arith.constant 0 : index
      %c0_34 = arith.constant 0 : index
      %c0_35 = arith.constant 0 : index
      %55 = vector.load %arg10[%c0_33, %c0_34, %c0_35] : memref<2x24x128xbf16, #tpu.memory_space<vmem>>, vector<1x24x128xbf16>
      tpu.vector_store %arg10[%c0_33, %c0_34, %c0_35], %54 {strides = array<i32>} : memref<2x24x128xbf16, #tpu.memory_space<vmem>>, vector<1x24x128xbf16>,
    } else {
    }
    %c1_i32 = arith.constant 1 : i32
    %5 = arith.cmpi slt, %arg2, %c1_i32 : i32
    %6 = arith.extui %5 : i1 to i32
    %c0_i32_3 = arith.constant 0 : i32
    %7 = arith.cmpi ne, %6, %c0_i32_3 : i32
    scf.if %7 {
      %c0_29 = arith.constant 0 : index
      %c0_30 = arith.constant 0 : index
      %c0_31 = arith.constant 0 : index
      %c0_32 = arith.constant 0 : index
      %53 = vector.load %arg5[%c0_29, %c0_30, %c0_31, %c0_32] : memref<1x1x24x128xbf16, #tpu.memory_space<vmem>>, vector<1x1x24x128xbf16>
      %54 = vector.shape_cast %53 : vector<1x1x24x128xbf16> to vector<1x24x128xbf16>
      %c1_33 = arith.constant 1 : index
      %c0_34 = arith.constant 0 : index
      %c0_35 = arith.constant 0 : index
      %55 = vector.load %arg10[%c1_33, %c0_34, %c0_35] : memref<2x24x128xbf16, #tpu.memory_space<vmem>>, vector<1x24x128xbf16>
      tpu.vector_store %arg10[%c1_33, %c0_34, %c0_35], %54 {strides = array<i32>} : memref<2x24x128xbf16, #tpu.memory_space<vmem>>, vector<1x24x128xbf16>,
    } else {
    }
    %c0_4 = arith.constant 0 : index
    %c0_5 = arith.constant 0 : index
    %c0_6 = arith.constant 0 : index
    %8 = vector.load %arg10[%c0_4, %c0_5, %c0_6] : memref<2x24x128xbf16, #tpu.memory_space<vmem>>, vector<1x24x128xbf16>
    %c0_7 = arith.constant 0 : index
    %c0_8 = arith.constant 0 : index
    %c0_9 = arith.constant 0 : index
    %c0_10 = arith.constant 0 : index
    %9 = vector.load %arg4[%c0_7, %c0_8, %c0_9, %c0_10] : memref<1x8x24x128xbf16, #tpu.memory_space<vmem>>, vector<1x8x24x128xbf16>
    %10 = vector.shape_cast %9 : vector<1x8x24x128xbf16> to vector<8x24x128xbf16>
    %c1 = arith.constant 1 : index
    %c0_11 = arith.constant 0 : index
    %c0_12 = arith.constant 0 : index
    %11 = vector.load %arg10[%c1, %c0_11, %c0_12] : memref<2x24x128xbf16, #tpu.memory_space<vmem>>, vector<1x24x128xbf16>
    %12 = tpu.concatenate %8, %10, %11 in 0 : vector<1x24x128xbf16>, vector<8x24x128xbf16>, vector<1x24x128xbf16> -> vector<10x24x128xbf16>
    %13 = vector.extract_strided_slice %12 {offsets = [0, 0, 0], sizes = [8, 16, 128], strides = [1, 1, 1]} : vector<10x24x128xbf16> to vector<8x16x128xbf16>
    %14 = vector.extract_strided_slice %12 {offsets = [0, 1, 0], sizes = [8, 16, 128], strides = [1, 1, 1]} : vector<10x24x128xbf16> to vector<8x16x128xbf16>
    %15 = vector.extract_strided_slice %12 {offsets = [0, 2, 0], sizes = [8, 16, 128], strides = [1, 1, 1]} : vector<10x24x128xbf16> to vector<8x16x128xbf16>
    %16 = tpu.concatenate %13, %14, %15 in 2 : vector<8x16x128xbf16>, vector<8x16x128xbf16>, vector<8x16x128xbf16> -> vector<8x16x384xbf16>
    %17 = vector.shape_cast %16 : vector<8x16x384xbf16> to vector<128x384xbf16>
    %c0_13 = arith.constant 0 : index
    %c0_14 = arith.constant 0 : index
    %18 = vector.load %arg6[%c0_13, %c0_14] : memref<1152x128xbf16, #tpu.memory_space<vmem>>, vector<384x128xbf16>
    %cst_15 = arith.constant dense<0.000000e+00> : vector<128x128xf32>
    %19 = tpu.matmul %17, %18, %cst_15 {dimension_numbers = #tpu.dot_dimension_numbers<[1], [0], [0], [1], [0, 0, 1, 1], [], []>} : vector<128x384xbf16>, vector<384x128xbf16>, vector<128x128xf32> -> vector<128x128xf32>
    %20 = vector.extract_strided_slice %12 {offsets = [1, 0, 0], sizes = [8, 16, 128], strides = [1, 1, 1]} : vector<10x24x128xbf16> to vector<8x16x128xbf16>
    %21 = vector.extract_strided_slice %12 {offsets = [1, 1, 0], sizes = [8, 16, 128], strides = [1, 1, 1]} : vector<10x24x128xbf16> to vector<8x16x128xbf16>
    %22 = vector.extract_strided_slice %12 {offsets = [1, 2, 0], sizes = [8, 16, 128], strides = [1, 1, 1]} : vector<10x24x128xbf16> to vector<8x16x128xbf16>
    %23 = tpu.concatenate %20, %21, %22 in 2 : vector<8x16x128xbf16>, vector<8x16x128xbf16>, vector<8x16x128xbf16> -> vector<8x16x384xbf16>
    %24 = vector.shape_cast %23 : vector<8x16x384xbf16> to vector<128x384xbf16>
    %c384 = arith.constant 384 : index
    %c0_16 = arith.constant 0 : index
    %25 = vector.load %arg6[%c384, %c0_16] : memref<1152x128xbf16, #tpu.memory_space<vmem>>, vector<384x128xbf16>
    %cst_17 = arith.constant dense<0.000000e+00> : vector<128x128xf32>
    %26 = tpu.matmul %24, %25, %cst_17 {dimension_numbers = #tpu.dot_dimension_numbers<[1], [0], [0], [1], [0, 0, 1, 1], [], []>} : vector<128x384xbf16>, vector<384x128xbf16>, vector<128x128xf32> -> vector<128x128xf32>
    %27 = arith.addf %19, %26 : vector<128x128xf32>
    %28 = vector.extract_strided_slice %12 {offsets = [2, 0, 0], sizes = [8, 16, 128], strides = [1, 1, 1]} : vector<10x24x128xbf16> to vector<8x16x128xbf16>
    %29 = vector.extract_strided_slice %12 {offsets = [2, 1, 0], sizes = [8, 16, 128], strides = [1, 1, 1]} : vector<10x24x128xbf16> to vector<8x16x128xbf16>
    %30 = vector.extract_strided_slice %12 {offsets = [2, 2, 0], sizes = [8, 16, 128], strides = [1, 1, 1]} : vector<10x24x128xbf16> to vector<8x16x128xbf16>
    %31 = tpu.concatenate %28, %29, %30 in 2 : vector<8x16x128xbf16>, vector<8x16x128xbf16>, vector<8x16x128xbf16> -> vector<8x16x384xbf16>
    %32 = vector.shape_cast %31 : vector<8x16x384xbf16> to vector<128x384xbf16>
    %c768 = arith.constant 768 : index
    %c0_18 = arith.constant 0 : index
    %33 = vector.load %arg6[%c768, %c0_18] : memref<1152x128xbf16, #tpu.memory_space<vmem>>, vector<384x128xbf16>
    %cst_19 = arith.constant dense<0.000000e+00> : vector<128x128xf32>
    %34 = tpu.matmul %32, %33, %cst_19 {dimension_numbers = #tpu.dot_dimension_numbers<[1], [0], [0], [1], [0, 0, 1, 1], [], []>} : vector<128x384xbf16>, vector<384x128xbf16>, vector<128x128xf32> -> vector<128x128xf32>
    %35 = arith.addf %27, %34 : vector<128x128xf32>
    %c0_20 = arith.constant 0 : index
    %c0_21 = arith.constant 0 : index
    %36 = vector.load %arg7[%c0_20, %c0_21] : memref<1x128xf32, #tpu.memory_space<vmem>>, vector<1x128xf32>
    %37 = vector.shape_cast %36 : vector<1x128xf32> to vector<128xf32>
    %38 = vector.shape_cast %37 : vector<128xf32> to vector<1x128xf32>
    %39 = vector.broadcast %38 : vector<1x128xf32> to vector<128x128xf32>
    %40 = arith.mulf %35, %39 : vector<128x128xf32>
    %c0_22 = arith.constant 0 : index
    %c0_23 = arith.constant 0 : index
    %41 = vector.load %arg8[%c0_22, %c0_23] : memref<1x128xf32, #tpu.memory_space<vmem>>, vector<1x128xf32>
    %42 = vector.shape_cast %41 : vector<1x128xf32> to vector<128xf32>
    %43 = vector.shape_cast %42 : vector<128xf32> to vector<1x128xf32>
    %44 = vector.broadcast %43 : vector<1x128xf32> to vector<128x128xf32>
    %45 = arith.addf %40, %44 : vector<128x128xf32>
    %cst_24 = arith.constant 0.000000e+00 : f32
    %46 = vector.broadcast %cst_24 : f32 to vector<128x128xf32>
    %47 = arith.maximumf %45, %46 : vector<128x128xf32>
    %48 = vector.shape_cast %47 : vector<128x128xf32> to vector<8x16x128xf32>
    %49 = arith.truncf %48 : vector<8x16x128xf32> to vector<8x16x128xbf16>
    %c0_25 = arith.constant 0 : index
    %c0_26 = arith.constant 0 : index
    %c0_27 = arith.constant 0 : index
    %c0_28 = arith.constant 0 : index
    %50 = vector.load %arg9[%c0_25, %c0_26, %c0_27, %c0_28] : memref<1x8x16x128xbf16, #tpu.memory_space<vmem>>, vector<1x8x16x128xbf16>
    %51 = vector.shape_cast %50 : vector<1x8x16x128xbf16> to vector<8x16x128xbf16>
    %52 = vector.shape_cast %49 : vector<8x16x128xbf16> to vector<1x8x16x128xbf16>
    tpu.vector_store %arg9[%c0_25, %c0_26, %c0_27, %c0_28], %52 {strides = array<i32>} : memref<1x8x16x128xbf16, #tpu.memory_space<vmem>>, vector<1x8x16x128xbf16>,
    return
  }
  func.func @transform_0(%arg0: i32, %arg1: i32, %arg2: i32) -> (i32, i32, i32, i32) {
    %c8_i32 = arith.constant 8 : i32
    %0 = arith.muli %arg2, %c8_i32 : i32
    %c1_i32 = arith.constant 1 : i32
    %1 = arith.subi %0, %c1_i32 : i32
    %c0_i32 = arith.constant 0 : i32
    %2 = arith.maxsi %1, %c0_i32 : i32
    %c0_i32_0 = arith.constant 0 : i32
    %c0_i32_1 = arith.constant 0 : i32
    %c0_i32_2 = arith.constant 0 : i32
    return %arg0, %2, %c0_i32_0, %c0_i32_1 : i32, i32, i32, i32
  }
  func.func @transform_1(%arg0: i32, %arg1: i32, %arg2: i32) -> (i32, i32, i32, i32) {
    %c0_i32 = arith.constant 0 : i32
    %c0_i32_0 = arith.constant 0 : i32
    %c0_i32_1 = arith.constant 0 : i32
    return %arg0, %arg2, %c0_i32, %c0_i32_0 : i32, i32, i32, i32
  }
  func.func @transform_2(%arg0: i32, %arg1: i32, %arg2: i32) -> (i32, i32, i32, i32) {
    %c1_i32 = arith.constant 1 : i32
    %0 = arith.addi %arg2, %c1_i32 : i32
    %c8_i32 = arith.constant 8 : i32
    %1 = arith.muli %0, %c8_i32 : i32
    %c15_i32 = arith.constant 15 : i32
    %2 = arith.minsi %1, %c15_i32 : i32
    %c0_i32 = arith.constant 0 : i32
    %c0_i32_0 = arith.constant 0 : i32
    %c0_i32_1 = arith.constant 0 : i32
    return %arg0, %2, %c0_i32, %c0_i32_0 : i32, i32, i32, i32
  }
  func.func @transform_3(%arg0: i32, %arg1: i32, %arg2: i32) -> (i32, i32) {
    %c0_i32 = arith.constant 0 : i32
    %c0_i32_0 = arith.constant 0 : i32
    return %c0_i32, %arg1 : i32, i32
  }
  func.func @transform_4(%arg0: i32, %arg1: i32, %arg2: i32) -> (i32, i32) {
    %c0_i32 = arith.constant 0 : i32
    %c0_i32_0 = arith.constant 0 : i32
    return %c0_i32, %arg1 : i32, i32
  }
  func.func @transform_5(%arg0: i32, %arg1: i32, %arg2: i32) -> (i32, i32) {
    %c0_i32 = arith.constant 0 : i32
    %c0_i32_0 = arith.constant 0 : i32
    return %c0_i32, %arg1 : i32, i32
  }
  func.func @transform_6(%arg0: i32, %arg1: i32, %arg2: i32) -> (i32, i32, i32, i32) {
    %c0_i32 = arith.constant 0 : i32
    %c0_i32_0 = arith.constant 0 : i32
    return %arg0, %arg2, %c0_i32, %arg1 : i32, i32, i32, i32
  }
}

</mosaic_0001>

<bundles_post_ra>
// kernel: up_forward.2
= control target key start
LH: loop header
LB: loop body
LE: loop exit
PB: predicated region body
PF: predicated region fallthrough
CT: control target
= control target key end

     0   :  { %s3268_s21 = smov 0   ;;  %s3270_s22 = smov 0   ;;  %s4155_s0 = inlined_call_operand.vmem [shape: bf16[2,16,24,128], index: 0, kind: input, shape index: {}, may-alias: {0,1,2}]   ;;  %s4156_s1 = inlined_call_operand.vmem [shape: bf16[2,16,24,128], index: 1, kind: input, shape index: {}, may-alias: {0,1,2}]   ;;  %s4157_s2 = inlined_call_operand.vmem [shape: bf16[2,16,24,128], index: 2, kind: input, shape index: {}, may-alias: {0,1,2}]   ;;  %s4158_s3 = inlined_call_operand.vmem [shape: bf16[1152,128], index: 3, kind: input, shape index: {}]   ;;  %s4159_s4 = inlined_call_operand.vmem [shape: f32[1,128], index: 4, kind: input, shape index: {}]   ;;  %s4160_s5 = inlined_call_operand.vmem [shape: f32[1,128], index: 5, kind: input, shape index: {}]   ;;  %s4161_s6 = inlined_call_operand.vmem [shape: bf16[2,16,24,128], index: 6, kind: output, shape index: {}]  }
   0x1   :  { %s3272_s23 = smov 0   ;;  %s3274_s24 = smov 0  }
   0x2   :  { %s3276_s25 = smov 0  }
   0x3 LB: > { %s28_s26 = sadd.s32 1, %s3222_s23  ;;  %s35_s27 = sadd.s32 1, %s3226_s24  ;;  %s3230_s25 = sphi %s3276_s25, %s16_s25   ;;  %s3226_s24 = sphi %s3274_s24, %s4199_s24   ;;  %s3222_s23 = sphi %s3272_s23, %s4198_s23   ;;  %s3218_s22 = sphi %s3270_s22, %s4197_s22   ;;  %s3214_s21 = sphi %s3268_s21, %s4196_s21  }
   0x4   : > { %p29_p0 = scmp.ge.s32.totalorder %s28_s26, 2  ;;  %p2563_p1 = scmp.ge.s32.totalorder %s3230_s25, 1 }
   0x5   : > { %p332_p2 = scmp.lt.s32.totalorder %s3230_s25, 5 }
   0x6   : > { %s4201_s26 = smov (%p29_p0, %s28_s26), 0  ;;  %s4203_s27 = smov (!%p29_p0, %s35_s27), %s3226_s24 }
   0x7   : > { %p333_p3 = pnand %p2563_p1, %p332_p2  ;;  %p37_p4 = scmp.ge.s32.totalorder %s4203_s27, 2 }
   0x9   : > { %s4205_s27 = smov (%p37_p4, %s4203_s27), 0  ;;  %336 = sbr.rel (%p333_p3) target bundleno = 462 (0x1ce), region = 44 }
   0xa   : > { %4162 = sst [smem:[#allocation3_spill]] %s4205_s27 }
   0xe   : > { %s3301_s28 = sshll.u32 %s3214_s21, 3  ;;  %p415_p5 = scmp.lt.s32.totalorder %s3218_s22, 1  ;;  %v3232_v0 = vmov 0  }
   0xf   : > { %s2565_s29 = sadd.s32 4294967295, %s3301_s28  ;;  %p431_p6 = scmp.lt.s32.totalorder %s3301_s28, 15  ;;  %481 = vst [vmem:[#allocation2] sm:$0xf] %v3232_v0  ;;  %482 = vst [vmem:[#allocation2 + $0x4] sm:$0xf] %v3232_v0 }
  0x10   : > { %483 = vst [vmem:[#allocation2 + $0x8] sm:$0xf] %v3232_v0  ;;  %484 = vst [vmem:[#allocation2 + $0xc] sm:$0xf] %v3232_v0  ;;  %p413_p7 = scmp.gt.s32.totalorder %s2565_s29, 0  ;;  %p2566_p8 = scmp.lt.s32.totalorder %s2565_s29, 15 }
  0x11   : > { %485 = vst [vmem:[#allocation2 + $0x10] sm:$0xf] %v3232_v0  ;;  %486 = vst [vmem:[#allocation2 + $0x14] sm:$0xf] %v3232_v0  ;;  %s4207_s22 = smov (!%p415_p5, %s3218_s22), 1  ;;  %s2702_s7 = sadd.s32 8, %s3301_s28 }
  0x12   : > { %s4209_s29 = smov (!%p413_p7, %s2565_s29), 0  ;;  %s3056_s30 = smul.u32 48, %s4207_s22 }
  0x13   : > { %s4211_s29 = smov (!%p2566_p8, %s4209_s29), 15  ;;  %s4213_s28 = smov (!%p431_p6, %s3301_s28), 15 }
  0x14   : > { %s3055_s8 = smul.u32 3, %s4211_s29  ;;  %p441_p9 = scmp.lt.s32.totalorder %s2702_s7, 15 }
  0x15   : > { %s3057_s9 = smul.u32 3, %s4213_s28  ;;  %p2581_p10 = scmp.le.s32.totalorder %s3214_s21, 0 }
  0x16   : > { %s421_s10 = sadd.s32 %s3056_s30, %s3055_s8  ;;  %s4215_s7 = smov (!%p441_p9, %s2702_s7), 15 }
  0x17   : > { %s2571_s11 = sshll.u32 %s421_s10, 2  ;;  %s435_s12 = sadd.s32 %s3057_s9, %s3056_s30 }
  0x18   : > { %s423_s15 = scalar_lea.vmem %s4155_s0, %s2571_s11  ;;  %s2573_s16 = sshll.u32 %s435_s12, 2 }
  0x19   : > { %s3315_s19 = scalar_lea.vmem %s4156_s1, %s2573_s16  ;;  %s3320_s27 = scalar_lea.vmem %s4161_s6, %s2573_s16 }
  0x1a   : > { %s4217_s7 = smov (!%p441_p9, %s4215_s7), 15 }
  0x1b   : > { %s3058_s28 = smul.u32 3, %s4217_s7 }
  0x1c   : > { %490 = sbr.rel (%p2581_p10) target bundleno = 35 (0x23), region = 48 }
  0x1d   : > { %s449_s29 = sadd.s32 %s3058_s28, %s3056_s30 }
  0x1e   : > { %s2578_s8 = sshll.u32 %s449_s29, 2 }
  0x1f   : > { %s451_s11 = scalar_lea.vmem %s4157_s2, %s2578_s8 }
  0x21   : > { %v491_v1 = vld [vmem:[%s423_s15] sm:$0xff]   ;;  %v493_v2 = vld [vmem:[%s423_s15 + $0x8] sm:$0xf] }
  0x22   : > { %494 = vst [vmem:[#allocation2] sm:$0xff] %v491_v1   ;;  %496 = vst [vmem:[#allocation2 + $0x8] sm:$0xf] %v493_v2 }
  0x23 PF: > { %p2582_p11 = scmp.ge.s32.totalorder %s3214_s21, 1 }
  0x25   : > { %500 = sbr.rel (%p2582_p11) target bundleno = 44 (0x2c), region = 52 }
  0x2a   : > { %v501_v3 = vld [vmem:[%s451_s11] sm:$0xff]   ;;  %v503_v4 = vld [vmem:[%s451_s11 + $0x8] sm:$0xf] }
  0x2b   : > { %505 = vst [vmem:[#allocation2 + $0xc] sm:$0xff] %v501_v3   ;;  %507 = vst [vmem:[#allocation2 + $0x14] sm:$0xf] %v503_v4 }
  0x2c PF: > { %v3100_v5 = vld [vmem:[%s4158_s3 + $0x138] sm:$0xff]   ;;  %v3103_v8 = vld [vmem:[%s4158_s3 + $0x130] sm:$0xff]   ;;  %v3106_v11 = vld [vmem:[%s4158_s3 + $0x128] sm:$0xff]   ;;  %vm716_vm0 = vcmask 1046528   ;;  %vm611_vm1 = vsmask.f32 7424 }
  0x2d   : > { %v3101_v6 = vld [vmem:[%s4158_s3 + $0x178] sm:$0xff]   ;;  %2719 = vmatprep.subr.bf16.mxu0 %v3100_v5  ;;  %v3104_v9 = vld [vmem:[%s4158_s3 + $0x170] sm:$0xff]   ;;  %v3107_v12 = vld [vmem:[%s4158_s3 + $0x168] sm:$0xff]   ;;  %vm2045_vm2 = vcmask 1040384   ;;  %vm2046_vm3 = vsmask.f32 256 }
  0x2e   : > { %v3102_v7 = vld [vmem:[%s4158_s3 + $0xf8] sm:$0xff]   ;;  %2959 = vmatprep.subr.bf16.mxu1 %v3101_v6  ;;  %v3105_v10 = vld [vmem:[%s4158_s3 + $0xf0] sm:$0xff]   ;;  %v3108_v13 = vld [vmem:[%s4158_s3 + $0xe8] sm:$0xff]   ;;  %vm2274_vm5 = vcmask 1043456   ;;  %vm2275_vm6 = vsmask.f32 7938 }
  0x2f   : > { %2720 = vmatpush3.bf16.msra.mxu0 %v3102_v7  ;;  %2960 = vmatpush3.bf16.msra.mxu1 %v3101_v6  ;;  %v3109_v14 = vld [vmem:[%s4158_s3 + $0x120] sm:$0xff]   ;;  %v3112_v17 = vld [vmem:[%s4158_s3 + $0x118] sm:$0xff]   ;;  %v3115_v20 = vld [vmem:[%s4158_s3 + $0x110] sm:$0xff]   ;;  %vm2112_vm7 = vsmask.f32 4368 }
  0x30   : > { %2721 = vmatprep.subr.bf16.mxu0 %v3103_v8  ;;  %2961 = vmatprep.subr.bf16.mxu1 %v3104_v9  ;;  %v3110_v15 = vld [vmem:[%s4158_s3 + $0x160] sm:$0xff]   ;;  %v3113_v18 = vld [vmem:[%s4158_s3 + $0x158] sm:$0xff]   ;;  %v3116_v21 = vld [vmem:[%s4158_s3 + $0x150] sm:$0xff]  }
  0x31   : > { %v3111_v16 = vld [vmem:[%s4158_s3 + $0xe0] sm:$0xff]   ;;  %v3114_v19 = vld [vmem:[%s4158_s3 + $0xd8] sm:$0xff]   ;;  %v3117_v22 = vld [vmem:[%s4158_s3 + $0xd0] sm:$0xff]  }
  0x32   : > { %v3118_v23 = vld [vmem:[%s4158_s3 + $0x108] sm:$0xff]   ;;  %v3121_v26 = vld [vmem:[%s4158_s3 + $0x100] sm:$0xff]   ;;  %v3127_v36 = vld [vmem:[%s3315_s19 + $0x14] ss:$0 sps:$4 sm:$0xff]  }
  0x33   : > { %2722 = vmatpush3.bf16.msra.mxu0 %v3105_v10  ;;  %2962 = vmatpush3.bf16.msra.mxu1 %v3104_v9  ;;  %v3119_v24 = vld [vmem:[%s4158_s3 + $0x148] sm:$0xff]   ;;  %v3122_v27 = vld [vmem:[%s4158_s3 + $0x140] sm:$0xff]   ;;  %v724_v41 = vrot.slane %v3127_v36, 1  ;;  %v3128_v42 = vld [vmem:[%s4158_s3 + $0x78] sm:$0xff]   ;;  %v644_v50 = vshll.u32 %v3127_v36, 16 }
  0x34   : > { %2723 = vmatprep.subr.bf16.mxu0 %v3106_v11  ;;  %2963 = vmatprep.subr.bf16.mxu1 %v3107_v12  ;;  %v3120_v25 = vld [vmem:[%s4158_s3 + $0xc8] sm:$0xff]   ;;  %v3397_v28 = vld [vmem:[%s3315_s19] sm:$0xff]   ;;  %v3129_v44 = vld [vmem:[%s4158_s3 + $0xb8] sm:$0xff]  }
  0x35   : > { %v3125_v29 = vld [vmem:[%s3315_s19 + $0x8] ss:$0 sps:$4 sm:$0xff]   ;;  %v3401_v30 = vld [vmem:[%s3315_s19 + $0xc] sm:$0xff]   ;;  %v3123_v31 = vld [vmem:[%s4158_s3 + $0xc0] sm:$0xff]   ;;  %v625_v32 = vshrl.u32 %v3397_v28, 16  ;;  %v627_v33 = vshll.u32 %v3397_v28, 16 }
  0x36   : > { %v632_v34 = vshll.u32 %v3125_v29, 16  ;;  %v720_v35 = vrot.slane %v3397_v28, 1  ;;  %v721_v37 = vrot.slane %v3125_v29, 1  ;;  %v723_v38 = vrot.slane %v3401_v30, 1  ;;  %v3130_v49 = vld [vmem:[%s4158_s3 + $0x38] sm:$0xff]   ;;  %v3131_v52 = vld [vmem:[%s4158_s3 + $0x70] sm:$0xff]   ;;  %vm3745_vm4 = vmand %vm2045_vm2, %vm2046_vm3 }
  0x37   : > { %2724 = vmatpush3.bf16.msra.mxu0 %v3108_v13  ;;  %2964 = vmatpush3.bf16.msra.mxu1 %v3107_v12  ;;  %v629_v39 = vrot.slane %v627_v33, 1  ;;  %v637_v46 = vshrl.u32 %v3401_v30, 16  ;;  %v639_v47 = vshll.u32 %v3401_v30, 16  ;;  %v3132_v54 = vld [vmem:[%s4158_s3 + $0x30] sm:$0xff]   ;;  %v646_v55 = vrot.slane %v644_v50, 1  ;;  %v3440_v56 = vld [vmem:[%s3315_s19 + $0x18] sm:$0xff]   ;;  %vm3936_vm8 = vmand %vm2274_vm5, %vm2275_vm6 }
  0x38   : > { %2725 = vmatprep.subr.bf16.mxu0 %v3109_v14  ;;  %2965 = vmatprep.subr.bf16.mxu1 %v3110_v15  ;;  %v634_v40 = vrot.slane %v632_v34, 1  ;;  %v3415_v43 = vsel %vm716_vm0, %v720_v35, %v721_v37  ;;  %v3424_v48 = vsel %vm716_vm0, %v723_v38, %v724_v41  ;;  %v3134_v58 = vld [vmem:[%s3315_s19 + $0x20] ss:$0 sps:$4 sm:$0xff]   ;;  %v726_v59 = vrot.slane %v3440_v56, 1  ;;  %v3447_v60 = vld [vmem:[%s3315_s19 + $0x24] sm:$0xff]   ;;  %v3138_v4 = vld [vmem:[%s4158_s3 + $0xb0] sm:$0xff]  }
  0x39   : > { %v630_v45 = vor.u32 %v629_v39, %v625_v32  ;;  %2975 = vmatprep.mubr.bf16.mxu1 %v3415_v43  ;;  %v641_v53 = vrot.slane %v639_v47, 1  ;;  %v3136_v61 = vld [vmem:[%s3315_s19 + $0x2c] ss:$0 sps:$4 sm:$0xff]   ;;  %v727_v63 = vrot.slane %v3134_v58, 1  ;;  %v729_v1 = vrot.slane %v3447_v60, 1  ;;  %v3140_v9 = vld [vmem:[%s4158_s3 + $0x60] sm:$0xff]   ;;  %vm3953_vm9 = vmor %vm2046_vm3, %vm2112_vm7 }
  0x3a   : > { %v3137_v0 = vld [vmem:[%s4158_s3 + $0x68] sm:$0xff]   ;;  %v730_v2 = vrot.slane %v3136_v61, 1  ;;  %v649_v5 = vshrl.u32 %v3440_v56, 16  ;;  %v651_v8 = vshll.u32 %v3440_v56, 16  ;;  %v656_v10 = vshll.u32 %v3134_v58, 16  ;;  %v3141_v11 = vld [vmem:[%s4158_s3 + $0x20] sm:$0xff]  }
  0x3b   : > { %2726 = vmatpush3.bf16.msra.mxu0 %v3111_v16  ;;  %2966 = vmatpush3.bf16.msra.mxu1 %v3110_v15  ;;  %v3430_v51 = vsel %vm611_vm1, %v630_v45, %v634_v40  ;;  %v642_v57 = vor.u32 %v641_v53, %v637_v46  ;;  %v3459_v3 = vsel %vm716_vm0, %v726_v59, %v727_v63  ;;  %v3139_v7 = vld [vmem:[%s4158_s3 + $0x28] sm:$0xff]   ;;  %v3482_v14 = vld [vmem:[%s3315_s19 + $0x30] sm:$0xff]   ;;  %v3485_v15 = vld [vmem:[%s3315_s19 + $0x38] ss:$0 sps:$4 sm:$0xff]   ;;  %v661_v32 = vshrl.u32 %v3447_v60, 16 }
  0x3c   : > { %2727 = vmatprep.subr.bf16.mxu0 %v3112_v17  ;;  %2967 = vmatprep.subr.bf16.mxu1 %v3113_v18  ;;  %v3467_v6 = vsel %vm716_vm0, %v729_v1, %v730_v2  ;;  %v653_v12 = vrot.slane %v651_v8, 1  ;;  %v658_v13 = vrot.slane %v656_v10, 1  ;;  %v732_v17 = vrot.slane %v3482_v14, 1  ;;  %v3150_v33 = vld [vmem:[%s4158_s3 + $0x10] sm:$0xff]   ;;  %v3526_v36 = vld [vmem:[%s3315_s19 + $0x48] sm:$0xff]   ;;  %v3158_v59 = vld [vmem:[%s4158_s3 + $0x40] sm:$0xff]  }
  0x3d   : > { %1047 = vmatprep.mubr.bf16.mxu0 %v3430_v51  ;;  %v3451_v62 = vsel %vm611_vm1, %v642_v57, %v646_v55  ;;  %v663_v34 = vshll.u32 %v3447_v60, 16  ;;  %v668_v35 = vshll.u32 %v3136_v61, 16  ;;  %v3531_v39 = vld [vmem:[%s3315_s19 + $0x50] ss:$0 sps:$4 sm:$0xff]   ;;  %v738_v40 = vrot.slane %v3526_v36, 1  ;;  %v3535_v41 = vld [vmem:[%s3315_s19 + $0x54] sm:$0xff]  }
  0x3e   : > { %v654_v16 = vor.u32 %v653_v12, %v649_v5  ;;  %v3539_v45 = vld [vmem:[%s3315_s19 + $0x5c] ss:$0 sps:$4 sm:$0xff]   ;;  %v819_v46 = vrot.slane %v3535_v41, 1  ;;  %v3155_v47 = vld [vmem:[%s4158_s3 + $0x48] sm:$0xff]   ;;  %v675_v57 = vshll.u32 %v3482_v14, 16  ;;  %v680_v61 = vshll.u32 %v3485_v15, 16 }
  0x3f   : > { %2728 = vmatpush3.bf16.msra.mxu0 %v3114_v19  ;;  %2968 = vmatpush3.bf16.msra.mxu1 %v3113_v18  ;;  %v733_v18 = vrot.slane %v3485_v15, 1  ;;  %v3490_v19 = vld [vmem:[%s3315_s19 + $0x3c] sm:$0xff]   ;;  %v665_v37 = vrot.slane %v663_v34, 1  ;;  %v670_v38 = vrot.slane %v668_v35, 1  ;;  %v820_v53 = vrot.slane %v3539_v45, 1  ;;  %v3157_v55 = vld [vmem:[%s4158_s3 + $0x8] sm:$0xff]  }
  0x40   : > { %2729 = vmatprep.subr.bf16.mxu0 %v3115_v20  ;;  %2969 = vmatprep.subr.bf16.mxu1 %v3116_v21  ;;  %v3493_v20 = vld [vmem:[%s3315_s19 + $0x44] ss:$0 sps:$4 sm:$0xff]   ;;  %v682_v1 = vrot.slane %v680_v61, 1  ;;  %v3576_v5 = vld [vmem:[#allocation2 + $0x8] ss:$0 sps:$4 sm:$0xff]   ;;  %v685_v10 = vshrl.u32 %v3490_v19, 16 }
  0x41   : > { %v3563_v58 = vsel %vm716_vm0, %v819_v46, %v820_v53  ;;  %v3159_v63 = vld [vmem:[%s4158_s3] sm:$0xff]   ;;  %v3163_v12 = vld [vmem:[%s4158_s3 + $0x90] sm:$0xff]   ;;  %v620_v15 = vshll.u32 %v3576_v5, 16  ;;  %v814_v46 = vshll.u32 %v3539_v45, 16  ;;  %v3174_v45 = vld [vmem:[%s4158_s3 + $0x228] sm:$0xff]  }
  0x42   : > { %v3574_v2 = vld [vmem:[#allocation2] sm:$0xff]   ;;  %v3171_v53 = vld [vmem:[%s4158_s3 + $0x230] sm:$0xff]   ;;  %v3180_v61 = vld [vmem:[%s4158_s3 + $0x218] sm:$0xff]  }
  0x43   : > { %2730 = vmatpush3.bf16.msra.mxu0 %v3117_v22  ;;  %2970 = vmatpush3.bf16.msra.mxu1 %v3116_v21  ;;  %v3146_v21 = vld [vmem:[%s4158_s3 + $0x58] sm:$0xff]   ;;  %v3499_v22 = vsel %vm611_vm1, %v654_v16, %v658_v13  ;;  %v615_v8 = vshll.u32 %v3574_v2, 16  ;;  %v692_v16 = vshll.u32 %v3493_v20, 16 }
  0x44   : > { %2731 = vmatprep.subr.bf16.mxu0 %v3118_v23  ;;  %2971 = vmatprep.subr.bf16.mxu1 %v3119_v24  ;;  %v3503_v23 = vsel %vm716_vm0, %v732_v17, %v733_v18 }
  0x45   : > { %v617_v17 = vrot.slane %v615_v8, 1  ;;  %v3170_v8 = vld [vmem:[%s4158_s3 + $0x1b0] sm:$0xff]  }
  0x47   : > { %2732 = vmatpush3.bf16.msra.mxu0 %v3120_v25  ;;  %2972 = vmatpush3.bf16.msra.mxu1 %v3119_v24  ;;  %v735_v24 = vrot.slane %v3490_v19, 1  ;;  %v736_v25 = vrot.slane %v3493_v20, 1  ;;  %v3164_v20 = vld [vmem:[%s4158_s3 + $0x88] sm:$0xff]  }
  0x48   : > { %2733 = vmatprep.subr.bf16.mxu0 %v3121_v26  ;;  %2973 = vmatprep.subr.bf16.mxu1 %v3122_v27  ;;  %v3147_v26 = vld [vmem:[%s4158_s3 + $0xa8] sm:$0xff]  }
  0x49   : > { %v3515_v29 = vsel %vm716_vm0, %v735_v24, %v736_v25  ;;  %v622_v24 = vrot.slane %v620_v15, 1  ;;  %v694_v25 = vrot.slane %v692_v16, 1  ;;  %v3179_v15 = vld [vmem:[%s4158_s3 + $0x198] sm:$0xff]   ;;  %v3181_v16 = vld [vmem:[%s4158_s3 + $0x1d0] sm:$0xff]  }
  0x4b   : > { %2734 = vmatpush3.bf16.msra.mxu0 %v3123_v31  ;;  %2974 = vmatpush3.bf16.msra.mxu1 %v3122_v27  ;;  %v3148_v27 = vld [vmem:[%s4158_s3 + $0x18] sm:$0xff]   ;;  %v3149_v31 = vld [vmem:[%s4158_s3 + $0x50] sm:$0xff]  }
  0x4c   : > { %2799 = vmatprep.subr.bf16.mxu1 %v3128_v42  ;;  %2991 = vmatprep.subr.bf16.mxu0 %v3129_v44  ;;  %v666_v42 = vor.u32 %v665_v37, %v661_v32 }
  0x4e   : > { %1048 = vmatmul.mubr.bf16.vlgmr.msra.gmra.mxu0 %v3397_v28  ;;  %2976 = vmatmul.mubr.bf16.vlgmr.msra.gmra.mxu1 %v3424_v48  ;;  %v3547_v50 = vsel %vm611_vm1, %v666_v42, %v670_v38  ;;  %v3165_v42 = vld [vmem:[%s4158_s3 + $0x80] sm:$0xff]  }
  0x4f   : > { %2800 = vmatpush3.bf16.msra.mxu1 %v3130_v49  ;;  %2992 = vmatpush3.bf16.msra.mxu0 %v3129_v44  ;;  %v739_v44 = vrot.slane %v3531_v39, 1  ;;  %v673_v49 = vshrl.u32 %v3482_v14, 16 }
  0x50   : > { %2801 = vmatprep.subr.bf16.mxu1 %v3131_v52  ;;  %1055 = vmatprep.mubr.bf16.mxu0 %v3451_v62 }
  0x51   : > { %2979 = vmatprep.mubr.bf16.mxu1 %v3459_v3  ;;  %2993 = vmatprep.subr.bf16.mxu0 %v3138_v4  ;;  %v3550_v52 = vsel %vm716_vm0, %v738_v40, %v739_v44  ;;  %v3168_v40 = vld [vmem:[%s4158_s3 + $0x238] sm:$0xff]   ;;  %v807_v44 = vshrl.u32 %v3535_v41, 16 }
  0x53   : > { %2802 = vmatpush3.bf16.msra.mxu1 %v3132_v54  ;;  %2994 = vmatpush3.bf16.msra.mxu0 %v3138_v4  ;;  %v3156_v54 = vld [vmem:[%s4158_s3 + $0xa0] sm:$0xff]  }
  0x54   : > { %2803 = vmatprep.subr.bf16.mxu1 %v3137_v0  ;;  %2995 = vmatprep.subr.bf16.mxu0 %v3147_v26  ;;  %v677_v0 = vrot.slane %v675_v57, 1  ;;  %v3177_v57 = vld [vmem:[%s4158_s3 + $0x220] sm:$0xff]  }
  0x56   : > { %1056 = vmatmul.mubr.bf16.gmra.mxu0 %v3401_v30  ;;  %2980 = vmatmul.mubr.bf16.gmra.mxu1 %v3467_v6  ;;  %v678_v4 = vor.u32 %v677_v0, %v673_v49  ;;  %v3183_v0 = vld [vmem:[%s4158_s3 + $0x210] sm:$0xff]  }
  0x57   : > { %2804 = vmatpush3.bf16.msra.mxu1 %v3139_v7  ;;  %1063 = vmatprep.mubr.bf16.mxu0 %v3499_v22  ;;  %v613_v7 = vshrl.u32 %v3574_v2, 16 }
  0x58   : > { %2805 = vmatprep.subr.bf16.mxu1 %v3140_v9  ;;  %2983 = vmatprep.mubr.bf16.mxu1 %v3503_v23  ;;  %v3162_v9 = vld [vmem:[%s4158_s3 + $0x98] sm:$0xff]   ;;  %v3589_v13 = vsel %vm611_vm1, %v678_v4, %v682_v1  ;;  %v3189_v4 = vld [vmem:[%s4158_s3 + $0x200] sm:$0xff]  }
  0x59   : > { %2996 = vmatpush3.bf16.msra.mxu0 %v3147_v26  ;;  %v697_v26 = vshrl.u32 %v3526_v36, 16 }
  0x5a   : > { %2997 = vmatprep.subr.bf16.mxu0 %v3156_v54 }
  0x5b   : > { %2806 = vmatpush3.bf16.msra.mxu1 %v3141_v11  ;;  %v687_v11 = vshll.u32 %v3490_v19, 16 }
  0x5c   : > { %2807 = vmatprep.subr.bf16.mxu1 %v3146_v21  ;;  %v699_v21 = vshll.u32 %v3526_v36, 16 }
  0x5d   : > { %2998 = vmatpush3.bf16.msra.mxu0 %v3156_v54  ;;  %v689_v18 = vrot.slane %v687_v11, 1  ;;  %v3176_v11 = vld [vmem:[%s4158_s3 + $0x1a0] sm:$0xff]  }
  0x5e   : > { %1064 = vmatmul.mubr.bf16.gmra.mxu0 %v3440_v56  ;;  %2984 = vmatmul.mubr.bf16.gmra.mxu1 %v3515_v29 }
  0x5f   : > { %2808 = vmatpush3.bf16.msra.mxu1 %v3148_v27  ;;  %1071 = vmatprep.mubr.bf16.mxu0 %v3547_v50  ;;  %v704_v27 = vshll.u32 %v3531_v39, 16  ;;  %v690_v32 = vor.u32 %v689_v18, %v685_v10  ;;  %v809_v39 = vshll.u32 %v3535_v41, 16  ;;  %v3175_v10 = vld [vmem:[%s4158_s3 + $0x1e0] sm:$0xff]   ;;  %v3184_v18 = vld [vmem:[%s4158_s3 + $0x1c8] sm:$0xff]  }
  0x60   : > { %2809 = vmatprep.subr.bf16.mxu1 %v3149_v31  ;;  %2987 = vmatprep.mubr.bf16.mxu1 %v3550_v52  ;;  %v618_v31 = vor.u32 %v617_v17, %v613_v7  ;;  %v3169_v7 = vld [vmem:[%s4158_s3 + $0x1f0] sm:$0xff]  }
  0x61   : > { %2999 = vmatprep.subr.bf16.mxu0 %v3162_v9  ;;  %v3603_v35 = vsel %vm611_vm1, %v690_v32, %v694_v25  ;;  %v706_v38 = vrot.slane %v704_v27, 1  ;;  %v811_v49 = vrot.slane %v809_v39, 1  ;;  %v3182_v17 = vld [vmem:[%s4158_s3 + $0x190] sm:$0xff]   ;;  %v3188_v25 = vld [vmem:[%s4158_s3 + $0x180] sm:$0xff]   ;;  %v2054_v27 = vld [vmem:[%s3320_s27 + $0x18] sm:$0x1] }
  0x62   : > { %3000 = vmatpush3.bf16.msra.mxu0 %v3162_v9  ;;  %v623_v34 = vsel %vm611_vm1, %v618_v31, %v622_v24  ;;  %v3172_v9 = vld [vmem:[%s4158_s3 + $0x1e8] sm:$0xff]   ;;  %v3187_v24 = vld [vmem:[%s4158_s3 + $0x1c0] sm:$0xff]   ;;  %v2055_v31 = vsel %vm3745_vm4, 0, %v2054_v27 }
  0x63   : > { %2810 = vmatpush3.bf16.msra.mxu1 %v3150_v33  ;;  %v701_v33 = vrot.slane %v699_v21, 1  ;;  %3001 = vmatprep.subr.bf16.mxu0 %v3163_v12  ;;  %v812_v54 = vor.u32 %v811_v49, %v807_v44  ;;  %v3185_v21 = vld [vmem:[%s4158_s3 + $0x188] sm:$0xff]   ;;  %2056 = vst [vmem:[%s3320_s27 + $0x18] sm:$0x1] %v2055_v31 }
  0x64   : > { %2811 = vmatprep.subr.bf16.mxu1 %v3155_v47 }
  0x65   : > { %v702_v37 = vor.u32 %v701_v33, %v697_v26 }
  0x66   : > { %1072 = vmatmul.mubr.bf16.gmra.mxu0 %v3447_v60  ;;  %2988 = vmatmul.mubr.bf16.gmra.mxu1 %v3563_v58 }
  0x67   : > { %2812 = vmatpush3.bf16.msra.mxu1 %v3157_v55  ;;  %1079 = vmatprep.mubr.bf16.mxu0 %v3589_v13  ;;  %v3618_v47 = vsel %vm611_vm1, %v702_v37, %v706_v38  ;;  %v816_v55 = vrot.slane %v814_v46, 1  ;;  %v2057_v46 = vld [vmem:[%s3320_s27 + $0x24] sm:$0x1] }
  0x68   : > { %2813 = vmatprep.subr.bf16.mxu1 %v3158_v59  ;;  %1385 = vmatprep.mubr.bf16.mxu1 %v623_v34  ;;  %v2058_v49 = vsel %vm3745_vm4, 0, %v2057_v46 }
  0x69   : > { %3002 = vmatpush3.bf16.msra.mxu0 %v3163_v12  ;;  %v3637_v59 = vsel %vm611_vm1, %v812_v54, %v816_v55  ;;  %v3178_v12 = vld [vmem:[%s4158_s3 + $0x1d8] sm:$0xff]   ;;  %2059 = vst [vmem:[%s3320_s27 + $0x24] sm:$0x1] %v2058_v49 }
  0x6a   : > { %3003 = vmatprep.subr.bf16.mxu0 %v3164_v20 }
  0x6b   : > { %2814 = vmatpush3.bf16.msra.mxu1 %v3159_v63  ;;  %v718_v63 = vrot.slane %v3576_v5, 1  ;;  %v3167_v5 = vld [vmem:[%s4158_s3 + $0x1b8] sm:$0xff]  }
  0x6c   : > { %3023 = vmatprep.subr.bf16.mxu1 %v3168_v40 }
  0x6d   : > { %3004 = vmatpush3.bf16.msra.mxu0 %v3164_v20 }
  0x6e   : > { %1080 = vmatmul.mubr.bf16.gmra.mxu0 %v3482_v14  ;;  %1386 = vmatmul.mubr.bf16.vlgmr.msra.gmra.mxu1 %v3574_v2 }
  0x6f   : > { %1087 = vmatprep.mubr.bf16.mxu0 %v3603_v35  ;;  %1393 = vmatprep.mubr.bf16.mxu1 %v3430_v51  ;;  %v3166_v51 = vld [vmem:[%s4158_s3 + $0x1f8] sm:$0xff]  }
  0x70   : > { %3024 = vmatpush3.bf16.msra.mxu1 %v3168_v40  ;;  %3005 = vmatprep.subr.bf16.mxu0 %v3165_v42 }
  0x71   : > { %3025 = vmatprep.subr.bf16.mxu1 %v3171_v53  ;;  %3006 = vmatpush3.bf16.msra.mxu0 %v3165_v42 }
  0x72   : > { %2879 = vmatprep.subr.bf16.mxu0 %v3166_v51 }
  0x74   : > { %3026 = vmatpush3.bf16.msra.mxu1 %v3171_v53 }
  0x75   : > { %3027 = vmatprep.subr.bf16.mxu1 %v3174_v45 }
  0x76   : > { %1088 = vmatmul.mubr.bf16.gmra.mxu0 %v3490_v19  ;;  %1394 = vmatmul.mubr.bf16.gmra.mxu1 %v3397_v28  ;;  %v717_v28 = vrot.slane %v3574_v2, 1  ;;  %v3186_v2 = vld [vmem:[%s4158_s3 + $0x208] sm:$0xff]  }
  0x77   : > { %1095 = vmatprep.mubr.bf16.mxu0 %v3618_v47  ;;  %1401 = vmatprep.mubr.bf16.mxu1 %v3451_v62 }
  0x78   : > { %3028 = vmatpush3.bf16.msra.mxu1 %v3174_v45  ;;  %v719_v1 = vsel %vm716_vm0, %v717_v28, %v718_v63 }
  0x79   : > { %3029 = vmatprep.subr.bf16.mxu1 %v3177_v57 }
  0x7c   : > { %3030 = vmatpush3.bf16.msra.mxu1 %v3177_v57 }
  0x7d   : > { %3031 = vmatprep.subr.bf16.mxu1 %v3180_v61 }
  0x7e   : > { %1096 = vmatmul.mubr.bf16.gmra.mxu0 %v3526_v36  ;;  %1402 = vmatmul.mubr.bf16.gmra.mxu1 %v3401_v30 }
  0x7f   : > { %1103 = vmatprep.mubr.bf16.mxu0 %v3637_v59  ;;  %1409 = vmatprep.mubr.bf16.mxu1 %v3499_v22 }
  0x80   : > { %3032 = vmatpush3.bf16.msra.mxu1 %v3180_v61 }
  0x81   : > { %3033 = vmatprep.subr.bf16.mxu1 %v3183_v0 }
  0x84   : > { %3034 = vmatpush3.bf16.msra.mxu1 %v3183_v0 }
  0x85   : > { %3035 = vmatprep.subr.bf16.mxu1 %v3186_v2 }
  0x86   : > { %1104 = vmatmul.mubr.bf16.gmra.mxu0 %v3535_v41  ;;  %1410 = vmatmul.mubr.bf16.gmra.mxu1 %v3440_v56 }
  0x87   : > { %3007 = vmatprep.mubr.bf16.mxu0 %v719_v1  ;;  %1417 = vmatprep.mubr.bf16.mxu1 %v3547_v50  ;;  %v2060_v1 = vld [vmem:[%s3320_s27 + $0x30] sm:$0x1] }
  0x88   : > { %3036 = vmatpush3.bf16.msra.mxu1 %v3186_v2 }
  0x89   : > { %3037 = vmatprep.subr.bf16.mxu1 %v3189_v4 }
  0x8c   : > { %3038 = vmatpush3.bf16.msra.mxu1 %v3189_v4  ;;  %v2061_v4 = vsel %vm3745_vm4, 0, %v2060_v1 }
  0x8d   : > { %2062 = vst [vmem:[%s3320_s27 + $0x30] sm:$0x1] %v2061_v4 }
  0x8e   : > { %3008 = vmatmul.mubr.bf16.vlgmr.msra.gmra.mxu0 %v3415_v43  ;;  %1418 = vmatmul.mubr.bf16.gmra.mxu1 %v3447_v60  ;;  %v3173_v43 = vld [vmem:[%s4158_s3 + $0x1a8] sm:$0xff]  }
  0x8f   : > { %2880 = vmatpush3.bf16.msra.mxu0 %v3167_v5  ;;  %3011 = vmatprep.mubr.bf16.mxu0 %v3424_v48 }
  0x90   : > { %2881 = vmatprep.subr.bf16.mxu0 %v3169_v7  ;;  %1425 = vmatprep.mubr.bf16.mxu1 %v3589_v13 }
  0x93   : > { %2882 = vmatpush3.bf16.msra.mxu0 %v3170_v8 }
  0x94   : > { %2883 = vmatprep.subr.bf16.mxu0 %v3172_v9 }
  0x96   : > { %3012 = vmatmul.mubr.bf16.gmra.mxu0 %v3459_v3  ;;  %1426 = vmatmul.mubr.bf16.gmra.mxu1 %v3482_v14 }
  0x97   : > { %2884 = vmatpush3.bf16.msra.mxu0 %v3173_v43  ;;  %3015 = vmatprep.mubr.bf16.mxu0 %v3467_v6 }
  0x98   : > { %2885 = vmatprep.subr.bf16.mxu0 %v3175_v10  ;;  %1433 = vmatprep.mubr.bf16.mxu1 %v3603_v35 }
  0x9b   : > { %2886 = vmatpush3.bf16.msra.mxu0 %v3176_v11 }
  0x9c   : > { %2887 = vmatprep.subr.bf16.mxu0 %v3178_v12 }
  0x9e   : > { %3016 = vmatmul.mubr.bf16.gmra.mxu0 %v3503_v23  ;;  %1434 = vmatmul.mubr.bf16.gmra.mxu1 %v3490_v19 }
  0x9f   : > { %2888 = vmatpush3.bf16.msra.mxu0 %v3179_v15  ;;  %3019 = vmatprep.mubr.bf16.mxu0 %v3515_v29 }
  0xa0   : > { %2889 = vmatprep.subr.bf16.mxu0 %v3181_v16  ;;  %1441 = vmatprep.mubr.bf16.mxu1 %v3618_v47 }
  0xa3   : > { %2890 = vmatpush3.bf16.msra.mxu0 %v3182_v17 }
  0xa4   : > { %2891 = vmatprep.subr.bf16.mxu0 %v3184_v18  ;;  %v2063_v18 = vld [vmem:[%s3320_s27 + $0x3c] sm:$0x1] }
  0xa6   : > { %3020 = vmatmul.mubr.bf16.gmra.mxu0 %v3550_v52  ;;  %1442 = vmatmul.mubr.bf16.gmra.mxu1 %v3526_v36 }
  0xa7   : > { %2892 = vmatpush3.bf16.msra.mxu0 %v3185_v21  ;;  %1797 = vmatprep.mubr.bf16.mxu0 %v3451_v62  ;;  %v3191_v62 = vld [vmem:[#allocation2 + $0x14] ss:$0 sps:$4 sm:$0xff]  }
  0xa8   : > { %2893 = vmatprep.subr.bf16.mxu0 %v3187_v24  ;;  %3039 = vmatprep.mubr.bf16.mxu1 %v3424_v48  ;;  %v3190_v48 = vld [vmem:[#allocation2 + $0xc] sm:$0xff]   ;;  %v2064_v24 = vsel %vm3745_vm4, 0, %v2063_v18 }
  0xa9   : > { %2065 = vst [vmem:[%s3320_s27 + $0x3c] sm:$0x1] %v2064_v24 }
  0xab   : > { %2894 = vmatpush3.bf16.msra.mxu0 %v3188_v25 }
  0xae   : > { %1798 = vmatmul.mubr.bf16.vlgmr.msra.gmra.mxu0 %v3401_v30  ;;  %3040 = vmatmul.mubr.bf16.vlgmr.msra.gmra.mxu1 %v3459_v3  ;;  %v1569_v30 = vrot.slane %v3190_v48, 1  ;;  %v1570_v3 = vrot.slane %v3191_v62, 1 }
  0xaf   : > { %1805 = vmatprep.mubr.bf16.mxu0 %v3499_v22  ;;  %3043 = vmatprep.mubr.bf16.mxu1 %v3467_v6  ;;  %v1557_v6 = vshrl.u32 %v3190_v48, 16 }
  0xb6   : > { %1806 = vmatmul.mubr.bf16.gmra.mxu0 %v3440_v56  ;;  %3044 = vmatmul.mubr.bf16.gmra.mxu1 %v3503_v23  ;;  %v1571_v56 = vsel %vm716_vm0, %v1569_v30, %v1570_v3  ;;  %v1564_v23 = vshll.u32 %v3191_v62, 16 }
  0xb7   : > { %1813 = vmatprep.mubr.bf16.mxu0 %v3547_v50  ;;  %3047 = vmatprep.mubr.bf16.mxu1 %v3515_v29 }
  0xb8   : > { %v1566_v29 = vrot.slane %v1564_v23, 1 }
  0xbe   : > { %1814 = vmatmul.mubr.bf16.gmra.mxu0 %v3447_v60  ;;  %3048 = vmatmul.mubr.bf16.gmra.mxu1 %v3550_v52  ;;  %v1559_v60 = vshll.u32 %v3190_v48, 16 }
  0xbf   : > { %1821 = vmatprep.mubr.bf16.mxu0 %v3589_v13  ;;  %3051 = vmatprep.mubr.bf16.mxu1 %v3563_v58  ;;  %v2051_v58 = vld [vmem:[%s3320_s27 + $0xc] sm:$0x1] }
  0xc0   : > { %v1561_v22 = vrot.slane %v1559_v60, 1  ;;  %v2052_v13 = vsel %vm3745_vm4, 0, %v2051_v58 }
  0xc1   : > { %2053 = vst [vmem:[%s3320_s27 + $0xc] sm:$0x1] %v2052_v13 }
  0xc6   : > { %1822 = vmatmul.mubr.bf16.gmra.mxu0 %v3482_v14  ;;  %3052 = vmatmul.mubr.bf16.gmra.mxu1 %v1571_v56  ;;  %v1562_v14 = vor.u32 %v1561_v22, %v1557_v6 }
  0xc7   : > { %1829 = vmatprep.mubr.bf16.mxu0 %v3603_v35 }
  0xc8   : > { %v1567_v50 = vsel %vm611_vm1, %v1562_v14, %v1566_v29  ;;  %v2066_v29 = vld [vmem:[%s3320_s27 + $0x48] sm:$0x1] }
  0xce   : > { %1830 = vmatmul.mubr.bf16.gmra.mxu0 %v3490_v19  ;;  %v2048_v19 = vld [vmem:[%s3320_s27] sm:$0x1] }
  0xcf   : > { %1837 = vmatprep.mubr.bf16.mxu0 %v3618_v47 }
  0xd6   : > { %1838 = vmatmul.mubr.bf16.gmra.mxu0 %v3526_v36  ;;  %v2049_v36 = vsel %vm3745_vm4, 0, %v2048_v19  ;;  %v2067_v19 = vsel %vm3745_vm4, 0, %v2066_v29 }
  0xd7   : > { %1845 = vmatprep.mubr.bf16.mxu0 %v3637_v59  ;;  %2050 = vst [vmem:[%s3320_s27] sm:$0x1] %v2049_v36  ;;  %2068 = vst [vmem:[%s3320_s27 + $0x48] sm:$0x1] %v2067_v19 }
  0xde   : > { %1846 = vmatmul.mubr.bf16.gmra.mxu0 %v3535_v41 }
  0xdf   : > { %1853 = vmatprep.mubr.bf16.mxu0 %v1567_v50 }
  0xe6   : > { %1854 = vmatmul.mubr.bf16.gmra.mxu0 %v3190_v48 }
 0x10e   : > { %v2735_v41 = vpop.f32.mrf.mxu0  ;;  %v2977_v26 = vpop.f32.mrf.mxu1 }
 0x110   : > { %v2736_v32 = vpop.f32.mrf.mxu0  ;;  %v1146_v33 = vpop.f32.mrf.mxu1 }
 0x111   : > { %v2737_v20 = vadd.f32 %v2736_v32, %v2735_v41 }
 0x112   : > { %v2738_v34 = vpop.f32.mrf.mxu0  ;;  %v2978_v35 = vpop.f32.mrf.mxu1 }
 0x113   : > { %v3760_v37 = vadd.f32 %v2737_v20, %v1146_v33 }
 0x114   : > { %v2739_v38 = vpop.f32.mrf.mxu0  ;;  %v1149_v39 = vpop.f32.mrf.mxu1 }
 0x115   : > { %v2740_v40 = vadd.f32 %v2739_v38, %v2738_v34 }
 0x116   : > { %v2741_v42 = vpop.f32.mrf.mxu0  ;;  %v2981_v44 = vpop.f32.mrf.mxu1 }
 0x117   : > { %v3763_v47 = vadd.f32 %v2740_v40, %v1149_v39 }
 0x118   : > { %v2742_v53 = vpop.f32.mrf.mxu0  ;;  %v1162_v51 = vpop.f32.mrf.mxu1 }
 0x119   : > { %v2743_v45 = vadd.f32 %v2742_v53, %v2741_v42 }
 0x11a   : > { %v2744_v54 = vpop.f32.mrf.mxu0  ;;  %v2982_v55 = vpop.f32.mrf.mxu1 }
 0x11b   : > { %v3768_v57 = vadd.f32 %v2977_v26, %v2743_v45 }
 0x11c   : > { %v2745_v59 = vpop.f32.mrf.mxu0  ;;  %v1165_v61 = vpop.f32.mrf.mxu1 }
 0x11d   : > { %v2746_v28 = vadd.f32 %v2745_v59, %v2744_v54 }
 0x11e   : > { %v2747_v63 = vpop.f32.mrf.mxu0  ;;  %v2985_v0 = vpop.f32.mrf.mxu1 }
 0x11f   : > { %v3771_v2 = vadd.f32 %v2978_v35, %v2746_v28  ;;  %v2069_v35 = vld [vmem:[%s3320_s27 + $0x54] sm:$0x1] }
 0x120   : > { %v2748_v5 = vpop.f32.mrf.mxu0  ;;  %v1178_v7 = vpop.f32.mrf.mxu1  ;;  %v2070_v39 = vsel %vm3745_vm4, 0, %v2069_v35 }
 0x121   : > { %v2749_v8 = vadd.f32 %v2748_v5, %v2747_v63  ;;  %2071 = vst [vmem:[%s3320_s27 + $0x54] sm:$0x1] %v2070_v39 }
 0x122   : > { %v2750_v9 = vpop.f32.mrf.mxu0  ;;  %v2986_v43 = vpop.f32.mrf.mxu1 }
 0x123   : > { %v3776_v10 = vadd.f32 %v2749_v8, %v1162_v51 }
 0x124   : > { %v2751_v11 = vpop.f32.mrf.mxu0  ;;  %v1181_v12 = vpop.f32.mrf.mxu1 }
 0x125   : > { %v2752_v15 = vadd.f32 %v2751_v11, %v2750_v9 }
 0x126   : > { %v2753_v16 = vpop.f32.mrf.mxu0  ;;  %v2989_v17 = vpop.f32.mrf.mxu1 }
 0x127   : > { %v3779_v21 = vadd.f32 %v2752_v15, %v1165_v61 }
 0x128   : > { %v2754_v25 = vpop.f32.mrf.mxu0  ;;  %v1194_v48 = vpop.f32.mrf.mxu1 }
 0x129   : > { %v2755_v62 = vadd.f32 %v2754_v25, %v2753_v16 }
 0x12a   : > { %v2756_v30 = vpop.f32.mrf.mxu0  ;;  %v2990_v3 = vpop.f32.mrf.mxu1 }
 0x12b   : > { %v3784_v56 = vadd.f32 %v2981_v44, %v2755_v62 }
 0x12c   : > { %v2757_v60 = vpop.f32.mrf.mxu0  ;;  %v1197_v22 = vpop.f32.mrf.mxu1 }
 0x12d   : > { %v2758_v6 = vadd.f32 %v2757_v60, %v2756_v30 }
 0x12e   : > { %v2759_v23 = vpop.f32.mrf.mxu0  ;;  %v3791_v36 = vpop.f32.mrf.mxu1 }
 0x12f   : > { %v3786_v14 = vadd.f32 %v2982_v55, %v2758_v6 }
 0x130   : > { %v2760_v50 = vpop.f32.mrf.mxu0  ;;  %v3796_v26 = vpop.f32.mrf.mxu1 }
 0x131   : > { %v2761_v58 = vadd.f32 %v2760_v50, %v2759_v23 }
 0x132   : > { %v2762_v13 = vpop.f32.mrf.mxu0  ;;  %v3798_v31 = vpop.f32.mrf.mxu1 }
 0x133   : > { %v3794_v41 = vadd.f32 %v2761_v58, %v1178_v7 }
 0x134   : > { %v2763_v27 = vpop.f32.mrf.mxu0  ;;  %v3802_v34 = vpop.f32.mrf.mxu1 }
 0x135   : > { %v2764_v32 = vadd.f32 %v2763_v27, %v2762_v13 }
 0x136   : > { %v2765_v33 = vpop.f32.mrf.mxu0  ;;  %v3807_v40 = vpop.f32.mrf.mxu1 }
 0x137   : > { %v3800_v20 = vadd.f32 %v2764_v32, %v1181_v12 }
 0x138   : > { %v2766_v38 = vpop.f32.mrf.mxu0  ;;  %v3810_v49 = vpop.f32.mrf.mxu1 }
 0x139   : > { %v2767_v42 = vadd.f32 %v2766_v38, %v2765_v33 }
 0x13a   : > { %v2768_v44 = vpop.f32.mrf.mxu0  ;;  %v3812_v51 = vpop.f32.mrf.mxu1 }
 0x13b   : > { %v1187_v46 = vadd.f32 %v2985_v0, %v2767_v42 }
 0x13c   : > { %v2769_v53 = vpop.f32.mrf.mxu0  ;;  %v3816_v59 = vpop.f32.mrf.mxu1 }
 0x13d   : > { %v2770_v45 = vadd.f32 %v2769_v53, %v2768_v44 }
 0x13e   : > { %v2771_v54 = vpop.f32.mrf.mxu0  ;;  %v3818_v28 = vpop.f32.mrf.mxu1 }
 0x13f   : > { %v3814_v55 = vadd.f32 %v2986_v43, %v2770_v45 }
 0x140   : > { %v2772_v61 = vpop.f32.mrf.mxu0  ;;  %v3822_v5 = vpop.f32.mrf.mxu1 }
 0x141   : > { %4165 = vst [vmem:[#allocation4_spill] sm:$0xff] %v3814_v55  ;;  %v2773_v63 = vadd.f32 %v2772_v61, %v2771_v54 }
 0x142   : > { %v2774_v1 = vpop.f32.mrf.mxu0  ;;  %v3824_v7 = vpop.f32.mrf.mxu1 }
 0x143   : > { %v3820_v4 = vadd.f32 %v2773_v63, %v1194_v48 }
 0x144   : > { %v2775_v0 = vpop.f32.mrf.mxu0  ;;  %v3828_v43 = vpop.f32.mrf.mxu1 }
 0x145   : > { %4166 = vst [vmem:[#allocation5_spill] sm:$0xff] %v3820_v4  ;;  %v2776_v8 = vadd.f32 %v2775_v0, %v2774_v1 }
 0x146   : > { %v2777_v9 = vpop.f32.mrf.mxu0  ;;  %v3830_v15 = vpop.f32.mrf.mxu1 }
 0x147   : > { %v3826_v11 = vadd.f32 %v2776_v8, %v1197_v22 }
 0x148   : > { %v2778_v12 = vpop.f32.mrf.mxu0  ;;  %v3832_v25 = vpop.f32.mrf.mxu1 }
 0x149   : > { %4167 = vst [vmem:[#allocation6_spill] sm:$0xff] %v3826_v11  ;;  %v2779_v16 = vadd.f32 %v2778_v12, %v2777_v9 }
 0x14a   : > { %v2780_v18 = vpop.f32.mrf.mxu0  ;;  %v3834_v62 = vpop.f32.mrf.mxu1 }
 0x14b   : > { %v1203_v24 = vadd.f32 %v2989_v17, %v2779_v16 }
 0x14c   : > { %v2781_v48 = vpop.f32.mrf.mxu0  ;;  %v3838_v23 = vpop.f32.mrf.mxu1 }
 0x14d   : > { %v2782_v30 = vadd.f32 %v2781_v48, %v2780_v18 }
 0x14e   : > { %v3836_v60 = vpop.f32.mrf.mxu0  ;;  %v3840_v29 = vpop.f32.mrf.mxu1 }
 0x14f   : > { %v1206_v6 = vadd.f32 %v2990_v3, %v2782_v30 }
 0x150   : > { %v1484_v22 = vpop.f32.mrf.mxu0  ;;  %v3844_v19 = vpop.f32.mrf.mxu1 }
 0x152   : > { %v3842_v50 = vpop.f32.mrf.mxu0  ;;  %v3846_v17 = vpop.f32.mrf.mxu1 }
 0x154   : > { %v1487_v58 = vpop.f32.mrf.mxu0  ;;  %v3850_v27 = vpop.f32.mrf.mxu1 }
 0x156   : > { %v3848_v13 = vpop.f32.mrf.mxu0  ;;  %v2845_v33 = vpop.f32.mrf.mxu1 }
 0x158   : > { %v3852_v32 = vpop.f32.mrf.mxu0  ;;  %v2846_v35 = vpop.f32.mrf.mxu1 }
 0x159   : > { %v2847_v38 = vadd.f32 %v2846_v35, %v2845_v33 }
 0x15a   : > { %v3854_v3 = vpop.f32.mrf.mxu0  ;;  %v3858_v42 = vpop.f32.mrf.mxu1 }
 0x15b   : > { %v3860_v44 = vadd.f32 %v2847_v38, %v1187_v46  ;;  %v2817_v38 = vadd.f32 %v3796_v26, %v3791_v36 }
 0x15c   : > { %v3856_v39 = vpop.f32.mrf.mxu0  ;;  %v3864_v45 = vpop.f32.mrf.mxu1 }
 0x15d   : > { %4168 = vst [vmem:[#allocation7_spill] sm:$0xff] %v3860_v44 }
 0x15e   : > { %v3862_v53 = vpop.f32.mrf.mxu0  ;;  %v3868_v61 = vpop.f32.mrf.mxu1 }
 0x15f   : > { %4169 = vst [vmem:[#allocation8_spill] sm:$0xff] %v3862_v53  ;;  %4170 = vst [vmem:[#allocation9_spill] sm:$0xff] %v3868_v61 }
 0x160   : > { %v3866_v54 = vpop.f32.mrf.mxu0  ;;  %v3872_v1 = vpop.f32.mrf.mxu1 }
 0x161   : > { %4172 = vst [vmem:[#allocation11_spill] sm:$0xff] %v3872_v1 }
 0x162   : > { %v3870_v63 = vpop.f32.mrf.mxu0  ;;  %v3876_v8 = vpop.f32.mrf.mxu1 }
 0x163   : > { %4171 = vst [vmem:[#allocation10_spill] sm:$0xff] %v3870_v63  ;;  %4174 = vst [vmem:[#allocation13_spill] sm:$0xff] %v3876_v8 }
 0x164   : > { %v3874_v0 = vpop.f32.mrf.mxu0  ;;  %v3878_v12 = vpop.f32.mrf.mxu1 }
 0x165   : > { %4173 = vst [vmem:[#allocation12_spill] sm:$0xff] %v3874_v0  ;;  %4175 = vst [vmem:[#allocation14_spill] sm:$0xff] %v3878_v12 }
 0x166   : > { %v3021_v9 = vpop.f32.mrf.mxu0  ;;  %v2857_v16 = vpop.f32.mrf.mxu1 }
 0x168   : > { %v3880_v46 = vpop.f32.mrf.mxu0  ;;  %v2858_v48 = vpop.f32.mrf.mxu1 }
 0x169   : > { %4176 = vst [vmem:[#allocation15_spill] sm:$0xff] %v3880_v46  ;;  %v2859_v30 = vadd.f32 %v2858_v48, %v2857_v16  ;;  %v2820_v46 = vadd.f32 %v3802_v34, %v3798_v31  ;;  %v1388_v16 = vadd.f32 %v2817_v38, %v3760_v37 }
 0x16a   : > { %v3022_v18 = vpop.f32.mrf.mxu0  ;;  %v2860_v35 = vpop.f32.mrf.mxu1 }
 0x16b   : > { %v1444_v11 = vadd.f32 %v2859_v30, %v1203_v24  ;;  %v1485_v53 = vadd.f32 %v1484_v22, %v1388_v16  ;;  %v1391_v37 = vadd.f32 %v2820_v46, %v3763_v47  ;;  %v3904_v22 = vld [vmem:[%s4160_s5] ss:$0 sm:$0xff] }
 0x16c   : > { %v3882_v33 = vpop.f32.mrf.mxu0  ;;  %v2861_v63 = vpop.f32.mrf.mxu1 }
 0x16d   : > { %4177 = vst [vmem:[#allocation16_spill] sm:$0xff] %v3882_v33  ;;  %v3886_v0 = vadd.f32 %v3021_v9, %v1444_v11  ;;  %v2862_v8 = vadd.f32 %v2861_v63, %v2860_v35  ;;  %v2823_v11 = vadd.f32 %v3810_v49, %v3807_v40  ;;  %v1488_v63 = vadd.f32 %v1487_v58, %v1391_v37 }
 0x16e   : > { %v2895_v4 = vpop.f32.mrf.mxu0  ;;  %v3041_v61 = vpop.f32.mrf.mxu1  ;;  %v2829_v58 = vadd.f32 %v3822_v5, %v3818_v28  ;;  %v2832_v35 = vadd.f32 %v3828_v43, %v3824_v7 }
 0x16f   : > { %v1447_v48 = vadd.f32 %v2862_v8, %v1206_v6  ;;  %v2826_v8 = vadd.f32 %v3816_v59, %v3812_v51  ;;  %v1396_v9 = vadd.f32 %v2823_v11, %v3768_v57  ;;  %v2835_v59 = vadd.f32 %v3832_v25, %v3830_v15 }
 0x170   : > { %v2896_v1 = vpop.f32.mrf.mxu0  ;;  %v1896_v55 = vpop.f32.mrf.mxu1  ;;  %v1404_v11 = vadd.f32 %v2829_v58, %v3776_v10  ;;  %v1407_v15 = vadd.f32 %v2832_v35, %v3779_v21 }
 0x171   : > { %v2897_v12 = vadd.f32 %v2896_v1, %v2895_v4  ;;  %v3891_v44 = vadd.f32 %v3022_v18, %v1447_v48  ;;  %v3898_v4 = vld [vmem:[%s4159_s4] ss:$0 sm:$0xff]  ;;  %v1493_v30 = vadd.f32 %v3836_v60, %v1396_v9  ;;  %v1399_v16 = vadd.f32 %v2826_v8, %v3771_v2 }
 0x172   : > { %v2898_v33 = vpop.f32.mrf.mxu0  ;;  %v3042_v31 = vpop.f32.mrf.mxu1  ;;  %v1412_v37 = vadd.f32 %v2835_v59, %v3784_v56  ;;  %v1501_v21 = vadd.f32 %v3852_v32, %v1404_v11  ;;  %v2277_v56 = vld [vmem:[%s3320_s27] sm:$0xf] }
 0x173   : > { %v1897_v36 = vadd.f32 %v2897_v12, %v1896_v55  ;;  %v1496_v7 = vadd.f32 %v3842_v50, %v1399_v16  ;;  %v2838_v50 = vadd.f32 %v3838_v23, %v3834_v62  ;;  %v2841_v62 = vadd.f32 %v3844_v19, %v3840_v29 }
 0x174   : > { %v2899_v26 = vpop.f32.mrf.mxu0  ;;  %v1899_v55 = vpop.f32.mrf.mxu1  ;;  %v2844_v23 = vadd.f32 %v3850_v27, %v3846_v17  ;;  %v2281_v27 = vld [vmem:[%s3320_s27 + $0x8] sm:$0x1] }
 0x175   : > { %v2900_v24 = vadd.f32 %v2899_v26, %v2898_v33  ;;  %v1959_v34 = vadd.f32 %v1897_v36, %v1485_v53 }
 0x176   : > { %v2901_v6 = vpop.f32.mrf.mxu0  ;;  %v3910_v47 = vpop.f32.mrf.mxu1 }
 0x177   : > { %v1982_v40 = vmul.f32 %v3898_v4, %v1959_v34  ;;  %v1900_v49 = vadd.f32 %v2900_v24, %v1899_v55 }
 0x178   : > { %v2902_v1 = vpop.f32.mrf.mxu0  ;;  %v1912_v26 = vpop.f32.mrf.mxu1 }
 0x179   : > { %v2903_v12 = vadd.f32 %v2902_v1, %v2901_v6  ;;  %v2005_v53 = vadd.f32 %v3904_v22, %v1982_v40  ;;  %v1960_v46 = vadd.f32 %v1900_v49, %v1488_v63 }
 0x17a   : > { %v2904_v18 = vpop.f32.mrf.mxu0  ;;  %v3929_v63 = vpop.f32.mrf.mxu1 }
 0x17b   : > { %v1905_v33 = vadd.f32 %v3041_v61, %v2903_v12  ;;  %v2021_v38 = vmax.f32 %v2005_v53, 0.0  ;;  %v1983_v51 = vmul.f32 %v3898_v4, %v1960_v46 }
 0x17c   : > { %v2905_v57 = vpop.f32.mrf.mxu0  ;;  %v1915_v35 = vpop.f32.mrf.mxu1 }
 0x17d   : > { %v1961_v48 = vadd.f32 %v1905_v33, %v1493_v30  ;;  %v2906_v36 = vadd.f32 %v2905_v57, %v2904_v18  ;;  %v2703_v60 = vpack.c.bf16 %v2021_v38, %v2021_v38  ;;  %v2006_v28 = vadd.f32 %v3904_v22, %v1983_v51 }
 0x17e   : > { %v2907_v5 = vpop.f32.mrf.mxu0  ;;  %v1504_v38 = vadd.f32 %v3856_v39, %v1407_v15 }
 0x17f   : > { %v1984_v43 = vmul.f32 %v3898_v4, %v1961_v48  ;;  %v1908_v61 = vadd.f32 %v3042_v31, %v2906_v36  ;;  %v2115_v2 = vshrl.u32 %v2703_v60, 16  ;;  %v2022_v25 = vmax.f32 %v2006_v28, 0.0 }
 0x180   : > { %v2908_v24 = vpop.f32.mrf.mxu0  ;;  %v2118_v40 = vshll.u32 %v2703_v60, 16 }
 0x181   : > { %v2007_v34 = vadd.f32 %v3904_v22, %v1984_v43  ;;  %v1962_v6 = vadd.f32 %v1908_v61, %v1496_v7  ;;  %v2909_v55 = vadd.f32 %v2908_v24, %v2907_v5  ;;  %v2117_v31 = vrot.slane %v2115_v2, 7  ;;  %v3959_v7 = vpop.f32.mrf.mxu1 }
 0x182   : > { %v2704_v10 = vpack.c.bf16 %v2022_v25, %v2022_v25  ;;  %v2910_v49 = vpop.f32.mrf.mxu0  ;;  %v1415_v2 = vadd.f32 %v2838_v50, %v3786_v14  ;;  %v3973_v14 = vadd.f32 %v2844_v23, %v3800_v20 }
 0x183   : > { %v2023_v8 = vmax.f32 %v2007_v34, 0.0  ;;  %v1985_v9 = vmul.f32 %v3898_v4, %v1962_v6  ;;  %v1913_v12 = vadd.f32 %v2909_v55, %v1912_v26  ;;  %v2120_v53 = vor.u32 %v2118_v40, %v2117_v31  ;;  %v2284_v34 = vld [vmem:[%s3320_s27 + $0xc] sm:$0xf] }
 0x184   : > { %v2123_v32 = vshrl.u32 %v2704_v10, 16  ;;  %v2911_v46 = vpop.f32.mrf.mxu0  ;;  %v2126_v19 = vshll.u32 %v2704_v10, 16  ;;  %v2121_v59 = vrot.slane %v2117_v31, 4  ;;  %v1509_v31 = vadd.f32 %v3848_v13, %v1412_v37 }
 0x185   : > { %v2705_v18 = vpack.c.bf16 %v2023_v8, %v2023_v8  ;;  %v2008_v30 = vadd.f32 %v3904_v22, %v1985_v9  ;;  %v1963_v33 = vadd.f32 %v1913_v12, %v1501_v21  ;;  %v2912_v58 = vadd.f32 %v2911_v46, %v2910_v49  ;;  %v1928_v9 = vpop.f32.mrf.mxu1 }
 0x186   : > { %v2278_v51 = vsel %vm3936_vm8, %v2120_v53, %v2277_v56  ;;  %v2125_v29 = vrot.slane %v2123_v32, 7  ;;  %v2913_v57 = vpop.f32.mrf.mxu0  ;;  %v1420_v40 = vadd.f32 %v2841_v62, %v3794_v41  ;;  %v1512_v62 = vadd.f32 %v3854_v3, %v1415_v2  ;;  %v2288_v53 = vld [vmem:[%s3320_s27 + $0x14] sm:$0x1] }
 0x187   : > { %2279 = vst [vmem:[%s3320_s27] sm:$0xf] %v2278_v51  ;;  %v2132_v16 = vshrl.u32 %v2705_v18, 16  ;;  %v2024_v48 = vmax.f32 %v2008_v30, 0.0  ;;  %v1986_v39 = vmul.f32 %v3898_v4, %v1963_v33  ;;  %v2135_v60 = vshll.u32 %v2705_v18, 16 }
 0x188   : > { %v2128_v36 = vor.u32 %v2126_v19, %v2125_v29  ;;  %v2130_v26 = vrot.slane %v2125_v29, 4  ;;  %v1916_v28 = vadd.f32 %v2912_v58, %v1915_v35  ;;  %v2914_v5 = vpop.f32.mrf.mxu0  ;;  %v2850_v58 = vadd.f32 %v3864_v45, %v3858_v42  ;;  %v3987_v29 = vpop.f32.mrf.mxu1 }
 0x189   : > { %v2134_v43 = vrot.slane %v2132_v16, 7  ;;  %v2706_v61 = vpack.c.bf16 %v2024_v48, %v2024_v48  ;;  %v2009_v11 = vadd.f32 %v3904_v22, %v1986_v39  ;;  %v2915_v15 = vadd.f32 %v2914_v5, %v2913_v57 }
 0x18a   : > { %v2129_v25 = vsel %vm3953_vm9, %v2121_v59, %v2128_v36  ;;  %v2282_v24 = vsel %vm3745_vm4, %v2130_v26, %v2281_v27  ;;  %v1964_v6 = vadd.f32 %v1916_v28, %v1504_v38  ;;  %v2916_v55 = vpop.f32.mrf.mxu0  ;;  %v1517_v36 = vadd.f32 %v3866_v54, %v1420_v40  ;;  %v1931_v54 = vpop.f32.mrf.mxu1 }
 0x18b   : > { %2280 = vst [vmem:[%s3320_s27 + $0x4] sm:$0xf] %v2129_v25  ;;  %2283 = vst [vmem:[%s3320_s27 + $0x8] sm:$0x1] %v2282_v24  ;;  %v2137_v10 = vor.u32 %v2135_v60, %v2134_v43  ;;  %v2140_v49 = vshrl.u32 %v2706_v61, 16  ;;  %v2025_v50 = vmax.f32 %v2009_v11, 0.0  ;;  %v1921_v56 = vadd.f32 %v3910_v47, %v2915_v15 }
 0x18c   : > { %v1987_v21 = vmul.f32 %v3898_v4, %v1964_v6  ;;  %v2917_v8 = vpop.f32.mrf.mxu0  ;;  %v2143_v37 = vshll.u32 %v2706_v61, 16  ;;  %v2138_v47 = vrot.slane %v2134_v43, 4  ;;  %v2291_v60 = vld [vmem:[%s3320_s27 + $0x18] sm:$0xf]  ;;  %v4182_v43 = vld [vmem:[#allocation7_spill] sm:$0xff] }
 0x18d   : > { %v2285_v13 = vsel %vm3936_vm8, %v2137_v10, %v2284_v34  ;;  %v2142_v41 = vrot.slane %v2140_v49, 7  ;;  %v2918_v12 = vadd.f32 %v2917_v8, %v2916_v55  ;;  %v2707_v32 = vpack.c.bf16 %v2025_v50, %v2025_v50  ;;  %v4183_v61 = vld [vmem:[#allocation8_spill] sm:$0xff]  ;;  %v4185_v10 = vld [vmem:[#allocation9_spill] sm:$0xff]  ;;  %v4186_v49 = vld [vmem:[#allocation11_spill] sm:$0xff] }
 0x18e   : > { %2286 = vst [vmem:[%s3320_s27 + $0xc] sm:$0xf] %v2285_v13  ;;  %v2010_v20 = vadd.f32 %v3904_v22, %v1987_v21  ;;  %v1965_v23 = vadd.f32 %v1921_v56, %v1509_v31  ;;  %v2919_v46 = vpop.f32.mrf.mxu0  ;;  %v4004_v11 = vadd.f32 %v4183_v61, %v4182_v43  ;;  %v4184_v15 = vld [vmem:[#allocation4_spill] sm:$0xff]  ;;  %v2853_v50 = vadd.f32 %v4186_v49, %v4185_v10  ;;  %v2295_v13 = vld [vmem:[%s3320_s27 + $0x20] sm:$0x1] }
 0x18f   : > { %v2145_v18 = vor.u32 %v2143_v37, %v2142_v41  ;;  %v2147_v30 = vrot.slane %v2142_v41, 4  ;;  %v1924_v33 = vadd.f32 %v3929_v63, %v2918_v12  ;;  %v2149_v35 = vshrl.u32 %v2707_v32, 16 }
 0x190   : > { %v2026_v3 = vmax.f32 %v2010_v20, 0.0  ;;  %v1988_v38 = vmul.f32 %v3898_v4, %v1965_v23  ;;  %v2920_v51 = vpop.f32.mrf.mxu0  ;;  %v2152_v45 = vshll.u32 %v2707_v32, 16  ;;  %v1431_v2 = vadd.f32 %v2850_v58, %v4184_v15 }
 0x191   : > { %v2146_v19 = vsel %vm3953_vm9, %v2138_v47, %v2145_v18  ;;  %v2289_v57 = vsel %vm3745_vm4, %v2147_v30, %v2288_v53  ;;  %v1966_v59 = vadd.f32 %v1924_v33, %v1512_v62  ;;  %v2921_v27 = vadd.f32 %v2920_v51, %v2919_v46  ;;  %v4187_v53 = vld [vmem:[#allocation12_spill] sm:$0xff]  ;;  %v4018_v18 = vpop.f32.mrf.mxu1  ;;  %v4188_v30 = vld [vmem:[#allocation10_spill] sm:$0xff] }
 0x192   : > { %v2333_v63 = vld [vmem:[%s3320_s27 + $0x8] sm:$0xf]  ;;  %2287 = vst [vmem:[%s3320_s27 + $0x10] sm:$0xf] %v2146_v19  ;;  %2290 = vst [vmem:[%s3320_s27 + $0x14] sm:$0x1] %v2289_v57  ;;  %v2708_v16 = vpack.c.bf16 %v2026_v3, %v2026_v3  ;;  %v2011_v48 = vadd.f32 %v3904_v22, %v1988_v38  ;;  %v2922_v39 = vpop.f32.mrf.mxu0  ;;  %v1520_v32 = vadd.f32 %v4187_v53, %v3973_v14 }
 0x193   : > { %v2151_v42 = vrot.slane %v2149_v35, 7  ;;  %v2334_v26 = vsel %vm3936_vm8, 0, %v2333_v63  ;;  %v1989_v28 = vmul.f32 %v3898_v4, %v1966_v59  ;;  %v1929_v5 = vadd.f32 %v2921_v27, %v1928_v9  ;;  %v1944_v61 = vpop.f32.mrf.mxu1 }
 0x194   : > { %2335 = vst [vmem:[%s3320_s27 + $0x8] sm:$0xf] %v2334_v26  ;;  %v2157_v24 = vshrl.u32 %v2708_v16, 16  ;;  %v2923_v34 = vpop.f32.mrf.mxu0  ;;  %v2027_v6 = vmax.f32 %v2011_v48, 0.0  ;;  %v2160_v8 = vshll.u32 %v2708_v16, 16  ;;  %v1528_v33 = vadd.f32 %v4188_v30, %v1431_v2  ;;  %v4189_v16 = vld [vmem:[#allocation13_spill] sm:$0xff] }
 0x195   : > { %v2154_v25 = vor.u32 %v2152_v45, %v2151_v42  ;;  %v2012_v55 = vadd.f32 %v3904_v22, %v1989_v28  ;;  %v1967_v31 = vadd.f32 %v1929_v5, %v1517_v36  ;;  %v2924_v40 = vadd.f32 %v2923_v34, %v2922_v39  ;;  %v4190_v48 = vld [vmem:[#allocation14_spill] sm:$0xff]  ;;  %v4191_v36 = vld [vmem:[#allocation5_spill] sm:$0xff] }
 0x196   : > { %v2159_v56 = vrot.slane %v2157_v24, 7  ;;  %v2925_v9 = vpop.f32.mrf.mxu0  ;;  %v2709_v41 = vpack.c.bf16 %v2027_v6, %v2027_v6  ;;  %v2155_v20 = vrot.slane %v2151_v42, 4  ;;  %v2856_v39 = vadd.f32 %v4190_v48, %v4189_v16 }
 0x197   : > { %v2292_v21 = vsel %vm3936_vm8, %v2154_v25, %v2291_v60  ;;  %v2028_v37 = vmax.f32 %v2012_v55, 0.0  ;;  %v1990_v12 = vmul.f32 %v3898_v4, %v1967_v31  ;;  %v1932_v62 = vadd.f32 %v2924_v40, %v1931_v54  ;;  %v2298_v60 = vld [vmem:[%s3320_s27 + $0x24] sm:$0xf]  ;;  %v2302_v54 = vld [vmem:[%s3320_s27 + $0x2c] sm:$0x1] }
 0x198   : > { %2293 = vst [vmem:[%s3320_s27 + $0x18] sm:$0xf] %v2292_v21  ;;  %v2162_v23 = vor.u32 %v2160_v8, %v2159_v56  ;;  %v2164_v46 = vrot.slane %v2159_v56, 4  ;;  %v2926_v47 = vpop.f32.mrf.mxu0  ;;  %v2166_v35 = vshrl.u32 %v2709_v41, 16  ;;  %v2169_v63 = vshll.u32 %v2709_v41, 16  ;;  %v4045_v41 = vpop.f32.mrf.mxu1 }
 0x199   : > { %v2336_v58 = vld [vmem:[%s3320_s27 + $0x14] sm:$0xf]  ;;  %v2710_v3 = vpack.c.bf16 %v2028_v37, %v2028_v37  ;;  %v2013_v38 = vadd.f32 %v3904_v22, %v1990_v12  ;;  %v1968_v57 = vadd.f32 %v1932_v62, %v1520_v32  ;;  %v1436_v26 = vadd.f32 %v2853_v50, %v4191_v36 }
 0x19a   : > { %v2337_v14 = vsel %vm3936_vm8, 0, %v2336_v58  ;;  %v2163_v51 = vsel %vm3953_vm9, %v2155_v20, %v2162_v23  ;;  %v2296_v19 = vsel %vm3745_vm4, %v2164_v46, %v2295_v13  ;;  %v2928_v59 = vpop.f32.mrf.mxu0  ;;  %v2168_v27 = vrot.slane %v2166_v35, 7  ;;  %v2305_v20 = vld [vmem:[%s3320_s27 + $0x30] sm:$0xf] }
 0x19b   : > { %2338 = vst [vmem:[%s3320_s27 + $0x14] sm:$0xf] %v2337_v14  ;;  %2294 = vst [vmem:[%s3320_s27 + $0x1c] sm:$0xf] %v2163_v51  ;;  %v2174_v42 = vshrl.u32 %v2710_v3, 16  ;;  %v2029_v45 = vmax.f32 %v2013_v38, 0.0  ;;  %v1991_v28 = vmul.f32 %v3898_v4, %v1968_v57  ;;  %v2927_v5 = vadd.f32 %v2926_v47, %v2925_v9  ;;  %v1947_v57 = vpop.f32.mrf.mxu1 }
 0x19c   : > { %2297 = vst [vmem:[%s3320_s27 + $0x20] sm:$0x1] %v2296_v19  ;;  %v2929_v43 = vpop.f32.mrf.mxu0  ;;  %v2171_v15 = vor.u32 %v2169_v63, %v2168_v27  ;;  %v2177_v25 = vshll.u32 %v2710_v3, 16  ;;  %v2172_v34 = vrot.slane %v2168_v27, 4  ;;  %v4192_v47 = vld [vmem:[#allocation15_spill] sm:$0xff] }
 0x19d   : > { %v2176_v2 = vrot.slane %v2174_v42, 7  ;;  %v2711_v24 = vpack.c.bf16 %v2029_v45, %v2029_v45  ;;  %v2014_v6 = vadd.f32 %v3904_v22, %v1991_v28  ;;  %v1937_v55 = vadd.f32 %v3959_v7, %v2927_v5 }
 0x19e   : > { %v2930_v31 = vadd.f32 %v2929_v43, %v2928_v59  ;;  %v2931_v40 = vpop.f32.mrf.mxu0  ;;  %v2299_v10 = vsel %vm3936_vm8, %v2171_v15, %v2298_v60  ;;  %v1533_v30 = vadd.f32 %v4192_v47, %v1436_v26  ;;  %v4193_v59 = vld [vmem:[#allocation6_spill] sm:$0xff]  ;;  %v4194_v60 = vld [vmem:[#allocation16_spill] sm:$0xff] }
 0x19f   : > { %v2179_v49 = vor.u32 %v2177_v25, %v2176_v2  ;;  %v2181_v50 = vrot.slane %v2176_v2, 4  ;;  %v2183_v21 = vshrl.u32 %v2711_v24, 16  ;;  %2300 = vst [vmem:[%s3320_s27 + $0x24] sm:$0xf] %v2299_v10  ;;  %v2186_v56 = vshll.u32 %v2711_v24, 16 }
 0x1a0   : > { %v2030_v8 = vmax.f32 %v2014_v6, 0.0  ;;  %v1969_v9 = vadd.f32 %v1937_v55, %v4004_v11  ;;  %v1940_v13 = vadd.f32 %v3987_v29, %v2930_v31  ;;  %v2932_v7 = vpop.f32.mrf.mxu0  ;;  %v2309_v43 = vld [vmem:[%s3320_s27 + $0x38] sm:$0x1] }
 0x1a1   : > { %v2180_v37 = vsel %vm3953_vm9, %v2172_v34, %v2179_v49  ;;  %v2303_v12 = vsel %vm3745_vm4, %v2181_v50, %v2302_v54  ;;  %v2185_v62 = vrot.slane %v2183_v21, 7  ;;  %v2933_v53 = vadd.f32 %v2932_v7, %v2931_v40 }
 0x1a2   : > { %2301 = vst [vmem:[%s3320_s27 + $0x28] sm:$0xf] %v2180_v37  ;;  %2304 = vst [vmem:[%s3320_s27 + $0x2c] sm:$0x1] %v2303_v12  ;;  %v2712_v23 = vpack.c.bf16 %v2030_v8, %v2030_v8  ;;  %v1992_v11 = vmul.f32 %v3898_v4, %v1969_v9  ;;  %v1970_v29 = vadd.f32 %v1940_v13, %v1528_v33  ;;  %v2934_v46 = vpop.f32.mrf.mxu0 }
 0x1a3   : > { %v2339_v32 = vld [vmem:[%s3320_s27 + $0x20] sm:$0xf]  ;;  %v2188_v35 = vor.u32 %v2186_v56, %v2185_v62  ;;  %v1945_v3 = vadd.f32 %v2933_v53, %v1944_v61  ;;  %v1439_v33 = vadd.f32 %v2856_v39, %v4193_v59  ;;  %v2189_v5 = vrot.slane %v2185_v62, 4  ;;  %v2312_v62 = vld [vmem:[%s3320_s27 + $0x3c] sm:$0xf] }
 0x1a4   : > { %v2340_v58 = vsel %vm3936_vm8, 0, %v2339_v32  ;;  %v2191_v38 = vshrl.u32 %v2712_v23, 16  ;;  %v2015_v14 = vadd.f32 %v3904_v22, %v1992_v11  ;;  %v1993_v51 = vmul.f32 %v3898_v4, %v1970_v29  ;;  %v2935_v19 = vpop.f32.mrf.mxu0 }
 0x1a5   : > { %2341 = vst [vmem:[%s3320_s27 + $0x20] sm:$0xf] %v2340_v58  ;;  %v2306_v27 = vsel %vm3936_vm8, %v2188_v35, %v2305_v20  ;;  %v1971_v63 = vadd.f32 %v1945_v3, %v1533_v30  ;;  %v2936_v42 = vadd.f32 %v2935_v19, %v2934_v46  ;;  %v2194_v16 = vshll.u32 %v2712_v23, 16  ;;  %v2316_v3 = vld [vmem:[%s3320_s27 + $0x44] sm:$0x1] }
 0x1a6   : > { %2307 = vst [vmem:[%s3320_s27 + $0x30] sm:$0xf] %v2306_v27  ;;  %v2193_v45 = vrot.slane %v2191_v38, 7  ;;  %v2031_v48 = vmax.f32 %v2015_v14, 0.0  ;;  %v2016_v36 = vadd.f32 %v3904_v22, %v1993_v51  ;;  %v2937_v26 = vpop.f32.mrf.mxu0  ;;  %v1536_v28 = vadd.f32 %v4194_v60, %v1439_v33  ;;  %v2319_v27 = vld [vmem:[%s3320_s27 + $0x48] sm:$0xf] }
 0x1a7   : > { %v1994_v61 = vmul.f32 %v3898_v4, %v1971_v63  ;;  %v1948_v39 = vadd.f32 %v2936_v42, %v1947_v57 }
 0x1a8   : > { %v2196_v15 = vor.u32 %v2194_v16, %v2193_v45  ;;  %v2198_v2 = vrot.slane %v2193_v45, 4  ;;  %v2713_v25 = vpack.c.bf16 %v2031_v48, %v2031_v48  ;;  %v2032_v24 = vmax.f32 %v2016_v36, 0.0  ;;  %v2938_v34 = vpop.f32.mrf.mxu0 }
 0x1a9   : > { %v2342_v54 = vld [vmem:[%s3320_s27 + $0x2c] sm:$0xf]  ;;  %v2017_v6 = vadd.f32 %v3904_v22, %v1994_v61  ;;  %v1972_v55 = vadd.f32 %v1948_v39, %v1536_v28  ;;  %v2939_v31 = vadd.f32 %v2938_v34, %v2937_v26  ;;  %v2323_v61 = vld [vmem:[%s3320_s27 + $0x50] sm:$0x1] }
 0x1aa   : > { %v2343_v40 = vsel %vm3936_vm8, 0, %v2342_v54  ;;  %v2197_v10 = vsel %vm3953_vm9, %v2189_v5, %v2196_v15  ;;  %v2310_v49 = vsel %vm3745_vm4, %v2198_v2, %v2309_v43  ;;  %v2200_v50 = vshrl.u32 %v2713_v25, 16  ;;  %v2940_v21 = vpop.f32.mrf.mxu0 }
 0x1ab   : > { %2344 = vst [vmem:[%s3320_s27 + $0x2c] sm:$0xf] %v2343_v40  ;;  %2308 = vst [vmem:[%s3320_s27 + $0x34] sm:$0xf] %v2197_v10  ;;  %v2714_v56 = vpack.c.bf16 %v2032_v24, %v2032_v24  ;;  %v2033_v8 = vmax.f32 %v2017_v6, 0.0  ;;  %v1995_v9 = vmul.f32 %v3898_v4, %v1972_v55  ;;  %v2203_v7 = vshll.u32 %v2713_v25, 16 }
 0x1ac   : > { %2311 = vst [vmem:[%s3320_s27 + $0x38] sm:$0x1] %v2310_v49  ;;  %v2202_v13 = vrot.slane %v2200_v50, 7  ;;  %v1953_v37 = vadd.f32 %v4018_v18, %v2939_v31  ;;  %v2941_v12 = vpop.f32.mrf.mxu0 }
 0x1ad   : > { %v2208_v53 = vshrl.u32 %v2714_v56, 16  ;;  %v2715_v32 = vpack.c.bf16 %v2033_v8, %v2033_v8  ;;  %v2018_v20 = vadd.f32 %v3904_v22, %v1995_v9  ;;  %v2211_v11 = vshll.u32 %v2714_v56, 16  ;;  %v2330_v9 = vld [vmem:[%s3320_s27 + $0x5c] sm:$0x1] }
 0x1ae   : > { %v2205_v23 = vor.u32 %v2203_v7, %v2202_v13  ;;  %v1973_v29 = vadd.f32 %v1953_v37, %v3886_v0  ;;  %v2942_v46 = vadd.f32 %v2941_v12, %v2940_v21  ;;  %v2206_v47 = vrot.slane %v2202_v13, 4 }
 0x1af   : > { %v2210_v30 = vrot.slane %v2208_v53, 7  ;;  %v2217_v58 = vshrl.u32 %v2715_v32, 16  ;;  %v2034_v35 = vmax.f32 %v2018_v20, 0.0  ;;  %v2220_v38 = vshll.u32 %v2715_v32, 16 }
 0x1b0   : > { %v2313_v18 = vsel %vm3936_vm8, %v2205_v23, %v2312_v62  ;;  %v1996_v14 = vmul.f32 %v3898_v4, %v1973_v29  ;;  %v1956_v51 = vadd.f32 %v4045_v41, %v2942_v46 }
 0x1b1   : > { %2314 = vst [vmem:[%s3320_s27 + $0x3c] sm:$0xf] %v2313_v18  ;;  %v2213_v0 = vor.u32 %v2211_v11, %v2210_v30  ;;  %v2215_v19 = vrot.slane %v2210_v30, 4  ;;  %v2219_v57 = vrot.slane %v2217_v58, 7  ;;  %v2716_v59 = vpack.c.bf16 %v2034_v35, %v2034_v35 }
 0x1b2   : > { %v2019_v63 = vadd.f32 %v3904_v22, %v1996_v14  ;;  %v1974_v42 = vadd.f32 %v1956_v51, %v3891_v44 }
 0x1b3   : > { %v2345_v33 = vld [vmem:[%s3320_s27 + $0x38] sm:$0xf]  ;;  %v2214_v41 = vsel %vm3953_vm9, %v2206_v47, %v2213_v0  ;;  %v2317_v16 = vsel %vm3745_vm4, %v2215_v19, %v2316_v3  ;;  %v2222_v48 = vor.u32 %v2220_v38, %v2219_v57  ;;  %v2225_v36 = vshrl.u32 %v2716_v59, 16 }
 0x1b4   : > { %v2346_v45 = vsel %vm3936_vm8, 0, %v2345_v33  ;;  %2315 = vst [vmem:[%s3320_s27 + $0x40] sm:$0xf] %v2214_v41  ;;  %2318 = vst [vmem:[%s3320_s27 + $0x44] sm:$0x1] %v2317_v16  ;;  %v2035_v26 = vmax.f32 %v2019_v63, 0.0  ;;  %v1997_v44 = vmul.f32 %v3898_v4, %v1974_v42 }
 0x1b5   : > { %2347 = vst [vmem:[%s3320_s27 + $0x38] sm:$0xf] %v2346_v45  ;;  %v2320_v60 = vsel %vm3936_vm8, %v2222_v48, %v2319_v27  ;;  %v2227_v28 = vrot.slane %v2225_v36, 7  ;;  %v2228_v5 = vshll.u32 %v2716_v59, 16  ;;  %v2223_v15 = vrot.slane %v2219_v57, 4 }
 0x1b6   : > { %2321 = vst [vmem:[%s3320_s27 + $0x48] sm:$0xf] %v2320_v60  ;;  %v2717_v43 = vpack.c.bf16 %v2035_v26, %v2035_v26  ;;  %v2020_v39 = vadd.f32 %v3904_v22, %v1997_v44  ;;  %v2326_v22 = vld [vmem:[%s3320_s27 + $0x54] sm:$0xf] }
 0x1b7   : > { %v2230_v2 = vor.u32 %v2228_v5, %v2227_v28  ;;  %v2232_v25 = vrot.slane %v2227_v28, 4 }
 0x1b8   : > { %v2234_v24 = vshrl.u32 %v2717_v43, 16  ;;  %v2036_v34 = vmax.f32 %v2020_v39, 0.0  ;;  %v2237_v55 = vshll.u32 %v2717_v43, 16 }
 0x1b9   : > { %v2231_v4 = vsel %vm3953_vm9, %v2223_v15, %v2230_v2  ;;  %v2324_v54 = vsel %vm3745_vm4, %v2232_v25, %v2323_v61 }
 0x1ba   : > { %v2236_v6 = vrot.slane %v2234_v24, 7  ;;  %2322 = vst [vmem:[%s3320_s27 + $0x4c] sm:$0xf] %v2231_v4  ;;  %2325 = vst [vmem:[%s3320_s27 + $0x50] sm:$0x1] %v2324_v54  ;;  %v2718_v40 = vpack.c.bf16 %v2036_v34, %v2036_v34 }
 0x1bb   : > { %v2348_v31 = vld [vmem:[%s3320_s27 + $0x44] sm:$0xf] }
 0x1bc   : > { %v2349_v10 = vsel %vm3936_vm8, 0, %v2348_v31  ;;  %v2239_v49 = vor.u32 %v2237_v55, %v2236_v6  ;;  %v2242_v50 = vshrl.u32 %v2718_v40, 16  ;;  %v2245_v8 = vshll.u32 %v2718_v40, 16 }
 0x1bd   : > { %2350 = vst [vmem:[%s3320_s27 + $0x44] sm:$0xf] %v2349_v10  ;;  %v2240_v13 = vrot.slane %v2236_v6, 4 }
 0x1be   : > { %v2327_v21 = vsel %vm3936_vm8, %v2239_v49, %v2326_v22  ;;  %v2244_v56 = vrot.slane %v2242_v50, 7 }
 0x1bf   : > { %2328 = vst [vmem:[%s3320_s27 + $0x54] sm:$0xf] %v2327_v21 }
 0x1c0   : > { %v2247_v7 = vor.u32 %v2245_v8, %v2244_v56  ;;  %v2249_v37 = vrot.slane %v2244_v56, 4 }
 0x1c1   : > { %v2351_v12 = vld [vmem:[%s3320_s27 + $0x50] sm:$0xf] }
 0x1c2   : > { %v2352_v62 = vsel %vm3936_vm8, 0, %v2351_v12  ;;  %v2248_v53 = vsel %vm3953_vm9, %v2240_v13, %v2247_v7  ;;  %v2331_v32 = vsel %vm3745_vm4, %v2249_v37, %v2330_v9 }
 0x1c3   : > { %2353 = vst [vmem:[%s3320_s27 + $0x50] sm:$0xf] %v2352_v62  ;;  %2329 = vst [vmem:[%s3320_s27 + $0x58] sm:$0xf] %v2248_v53 }
 0x1c4   : > { %2332 = vst [vmem:[%s3320_s27 + $0x5c] sm:$0x1] %v2331_v32 }
 0x1cb   : > { %v2354_v20 = vld [vmem:[%s3320_s27 + $0x5c] sm:$0xf] }
 0x1cc   : > { %v2355_v23 = vsel %vm3936_vm8, 0, %v2354_v20 }
 0x1cd   : > { %2356 = vst [vmem:[%s3320_s27 + $0x5c] sm:$0xf] %v2355_v23 }
 0x1ce PF: > { %s16_s25 = sadd.s32 1, %s3230_s25   ;;  %s4195_s30 = sld [smem:[#allocation3_spill]] }
 0x1cf   : > { %p13_p12 = scmp.ge.s32.totalorder %s16_s25, 6   ;;  %s4196_s21 = smov %s3222_s23 }
 0x1d0   : > { %s4197_s22 = smov %s3226_s24  ;;  %s4198_s23 = smov %s4201_s26 }
 0x1d1   :  { %15 = sbr.rel (!%p13_p12) target bundleno = 3 (0x3), region = 99 }
 0x1d4   : > { %s4199_s24 = smov %s4195_s30 }

// kernel: up_forward.3
= control target key start
LH: loop header
LB: loop body
LE: loop exit
PB: predicated region body
PF: predicated region fallthrough
CT: control target
= control target key end

     0   :  { %s3077_s21 = smov 0   ;;  %s3079_s22 = smov 0   ;;  %s3748_s0 = inlined_call_operand.vmem [shape: bf16[2,16,24,128], index: 0, kind: input, shape index: {}, may-alias: {0,1,2}]   ;;  %s3749_s1 = inlined_call_operand.vmem [shape: bf16[2,16,24,128], index: 1, kind: input, shape index: {}, may-alias: {0,1,2}]   ;;  %s3750_s2 = inlined_call_operand.vmem [shape: bf16[2,16,24,128], index: 2, kind: input, shape index: {}, may-alias: {0,1,2}]   ;;  %s3751_s3 = inlined_call_operand.vmem [shape: bf16[1152,128], index: 3, kind: input, shape index: {}]   ;;  %s3752_s4 = inlined_call_operand.vmem [shape: f32[1,128], index: 4, kind: input, shape index: {}]   ;;  %s3753_s5 = inlined_call_operand.vmem [shape: f32[1,128], index: 5, kind: input, shape index: {}]   ;;  %s3754_s6 = inlined_call_operand.vmem [shape: bf16[2,16,16,128], index: 6, kind: output, shape index: {}]  }
   0x1   :  { %s3081_s23 = smov 0   ;;  %s3083_s24 = smov 0  }
   0x2   :  { %s3085_s25 = smov 0  }
   0x3 LB: > { %3756 = sst [smem:[#allocation3_spill]] %s3035_s24  ;;  %s28_s26 = sadd.s32 1, %s3031_s23  ;;  %s3039_s25 = sphi %s3085_s25, %s16_s25   ;;  %s3035_s24 = sphi %s3083_s24, %s3762_s24   ;;  %s3031_s23 = sphi %s3081_s23, %s3764_s23   ;;  %s3027_s22 = sphi %s3079_s22, %s3760_s22   ;;  %s3023_s21 = sphi %s3077_s21, %s3763_s21  }
   0x4   : > { %s35_s27 = sadd.s32 1, %s3035_s24  ;;  %p29_p0 = scmp.ge.s32.totalorder %s28_s26, 2 }
   0x5   : > { %p2323_p1 = scmp.ge.s32.totalorder %s3039_s25, 1  ;;  %p332_p2 = scmp.lt.s32.totalorder %s3039_s25, 5 }
   0x6   : > { %s3766_s26 = smov (%p29_p0, %s28_s26), 0  ;;  %s3768_s27 = smov (!%p29_p0, %s35_s27), %s3035_s24 }
   0x7   : > { %3757 = sst [smem:[#allocation4_spill]] %s3766_s26  ;;  %p333_p3 = pnand %p2323_p1, %p332_p2 }
   0x8   : > { %p37_p4 = scmp.ge.s32.totalorder %s3768_s27, 2  ;;  %s3110_s28 = sshll.u32 (!%p333_p3), %s3023_s21, 3 }
   0x9   : > { %336 = sbr.rel (%p333_p3) target bundleno = 441 (0x1b9), region = 44  ;;  %p415_p5 = scmp.lt.s32.totalorder (!%p333_p3), %s3027_s22, 1 }
   0xa   : > { %s3770_s27 = smov (%p37_p4, %s3768_s27), 0  ;;  %s2325_s29 = sadd.s32 (!%p333_p3), 4294967295, %s3110_s28 }
   0xb   : > { %3758 = sst [smem:[#allocation5_spill]] %s3770_s27  ;;  %p431_p6 = scmp.lt.s32.totalorder (!%p333_p3), %s3110_s28, 15 }
   0xc   : > { %p413_p7 = scmp.gt.s32.totalorder (!%p333_p3), %s2325_s29, 0  ;;  %p2326_p8 = scmp.lt.s32.totalorder (!%p333_p3), %s2325_s29, 15 }
   0xd   : > { %s2464_s7 = sadd.s32 (!%p333_p3), 8, %s3110_s28  ;;  %p2343_p10 = scmp.le.s32.totalorder (!%p333_p3), %s3023_s21, 0 }
   0xe   : > { %v3041_v0 = vmov 0   ;;  %s3772_s22 = smov (!%p415_p5, %s3027_s22), 1  ;;  %s3774_s29 = smov (!%p413_p7, %s2325_s29), 0 }
   0xf   : > { %481 = vst [vmem:[#allocation2] sm:$0xf] %v3041_v0  ;;  %482 = vst [vmem:[#allocation2 + $0x4] sm:$0xf] %v3041_v0  ;;  %s2865_s30 = smul.u32 48, %s3772_s22  ;;  %s3776_s29 = smov (!%p2326_p8, %s3774_s29), 15 }
  0x10   : > { %483 = vst [vmem:[#allocation2 + $0x8] sm:$0xf] %v3041_v0  ;;  %484 = vst [vmem:[#allocation2 + $0xc] sm:$0xf] %v3041_v0  ;;  %s3778_s28 = smov (!%p431_p6, %s3110_s28), 15  ;;  %s2864_s8 = smul.u32 3, %s3776_s29 }
  0x11   : > { %485 = vst [vmem:[#allocation2 + $0x10] sm:$0xf] %v3041_v0  ;;  %486 = vst [vmem:[#allocation2 + $0x14] sm:$0xf] %v3041_v0  ;;  %p3118_p9 = scmp.lt.s32.totalorder %s2464_s7, 15  ;;  %s2866_s10 = smul.u32 3, %s3778_s28 }
  0x12   : > { %s2340_s11 = sshll.u32 %s3778_s28, 1  ;;  %s421_s12 = sadd.s32 %s2865_s30, %s2864_s8 }
  0x13   : > { %s2341_s13 = sshll.u32 %s3772_s22, 5  ;;  %s2331_s14 = sshll.u32 %s421_s12, 2 }
  0x14   : > { %s435_s15 = sadd.s32 %s2866_s10, %s2865_s30  ;;  %s423_s18 = scalar_lea.vmem %s3748_s0, %s2331_s14 }
  0x15   : > { %s2333_s19 = sshll.u32 %s435_s15, 2  ;;  %s476_s26 = sadd.s32 %s2341_s13, %s2340_s11 }
  0x16   : > { %s3128_s29 = scalar_lea.vmem %s3749_s1, %s2333_s19  ;;  %s3780_s7 = smov (!%p3118_p9, %s2464_s7), 15 }
  0x17   : > { %s2342_s24 = sshll.u32 %s476_s26, 2  ;;  %s3782_s7 = smov (!%p3118_p9, %s3780_s7), 15 }
  0x18   : > { %s3137_s8 = scalar_lea.vmem %s3754_s6, %s2342_s24  ;;  %s2867_s10 = smul.u32 3, %s3782_s7 }
  0x19   : > { %490 = sbr.rel (%p2343_p10) target bundleno = 32 (0x20), region = 48 }
  0x1a   : > { %s449_s12 = sadd.s32 %s2867_s10, %s2865_s30 }
  0x1b   : > { %s2338_s14 = sshll.u32 %s449_s12, 2 }
  0x1c   : > { %s451_s27 = scalar_lea.vmem %s3750_s2, %s2338_s14 }
  0x1e   : > { %v491_v1 = vld [vmem:[%s423_s18] sm:$0xff]   ;;  %v493_v2 = vld [vmem:[%s423_s18 + $0x8] sm:$0xf] }
  0x1f   : > { %494 = vst [vmem:[#allocation2] sm:$0xff] %v491_v1   ;;  %496 = vst [vmem:[#allocation2 + $0x8] sm:$0xf] %v493_v2 }
  0x20 PF: > { %p2344_p11 = scmp.ge.s32.totalorder %s3023_s21, 1 }
  0x22   : > { %500 = sbr.rel (%p2344_p11) target bundleno = 41 (0x29), region = 52 }
  0x27   : > { %v501_v3 = vld [vmem:[%s451_s27] sm:$0xff]   ;;  %v503_v4 = vld [vmem:[%s451_s27 + $0x8] sm:$0xf] }
  0x28   : > { %505 = vst [vmem:[#allocation2 + $0xc] sm:$0xff] %v501_v3   ;;  %507 = vst [vmem:[#allocation2 + $0x14] sm:$0xf] %v503_v4 }
  0x29 PF: > { %v2909_v5 = vld [vmem:[%s3751_s3 + $0x138] sm:$0xff]   ;;  %v2912_v8 = vld [vmem:[%s3751_s3 + $0x130] sm:$0xff]   ;;  %v2915_v11 = vld [vmem:[%s3751_s3 + $0x128] sm:$0xff]   ;;  %vm716_vm0 = vcmask 1046528   ;;  %vm611_vm1 = vsmask.f32 7424 }
  0x2a   : > { %v2910_v6 = vld [vmem:[%s3751_s3 + $0x178] sm:$0xff]   ;;  %2528 = vmatprep.subr.bf16.mxu0 %v2909_v5  ;;  %v2913_v9 = vld [vmem:[%s3751_s3 + $0x170] sm:$0xff]   ;;  %v2916_v12 = vld [vmem:[%s3751_s3 + $0x168] sm:$0xff]  }
  0x2b   : > { %v2911_v7 = vld [vmem:[%s3751_s3 + $0xf8] sm:$0xff]   ;;  %2768 = vmatprep.subr.bf16.mxu1 %v2910_v6  ;;  %v2914_v10 = vld [vmem:[%s3751_s3 + $0xf0] sm:$0xff]   ;;  %v2917_v13 = vld [vmem:[%s3751_s3 + $0xe8] sm:$0xff]  }
  0x2c   : > { %2529 = vmatpush3.bf16.msra.mxu0 %v2911_v7  ;;  %2769 = vmatpush3.bf16.msra.mxu1 %v2910_v6  ;;  %v2918_v14 = vld [vmem:[%s3751_s3 + $0x120] sm:$0xff]   ;;  %v2921_v17 = vld [vmem:[%s3751_s3 + $0x118] sm:$0xff]   ;;  %v2924_v20 = vld [vmem:[%s3751_s3 + $0x110] sm:$0xff]  }
  0x2d   : > { %2530 = vmatprep.subr.bf16.mxu0 %v2912_v8  ;;  %2770 = vmatprep.subr.bf16.mxu1 %v2913_v9  ;;  %v2919_v15 = vld [vmem:[%s3751_s3 + $0x160] sm:$0xff]   ;;  %v2922_v18 = vld [vmem:[%s3751_s3 + $0x158] sm:$0xff]   ;;  %v2925_v21 = vld [vmem:[%s3751_s3 + $0x150] sm:$0xff]  }
  0x2e   : > { %v2920_v16 = vld [vmem:[%s3751_s3 + $0xe0] sm:$0xff]   ;;  %v2923_v19 = vld [vmem:[%s3751_s3 + $0xd8] sm:$0xff]   ;;  %v2926_v22 = vld [vmem:[%s3751_s3 + $0xd0] sm:$0xff]  }
  0x2f   : > { %v2927_v23 = vld [vmem:[%s3751_s3 + $0x108] sm:$0xff]   ;;  %v2930_v26 = vld [vmem:[%s3751_s3 + $0x100] sm:$0xff]   ;;  %v2936_v36 = vld [vmem:[%s3128_s29 + $0x14] ss:$0 sps:$4 sm:$0xff]  }
  0x30   : > { %2531 = vmatpush3.bf16.msra.mxu0 %v2914_v10  ;;  %2771 = vmatpush3.bf16.msra.mxu1 %v2913_v9  ;;  %v2928_v24 = vld [vmem:[%s3751_s3 + $0x148] sm:$0xff]   ;;  %v2931_v27 = vld [vmem:[%s3751_s3 + $0x140] sm:$0xff]   ;;  %v724_v41 = vrot.slane %v2936_v36, 1  ;;  %v2937_v42 = vld [vmem:[%s3751_s3 + $0x78] sm:$0xff]   ;;  %v644_v50 = vshll.u32 %v2936_v36, 16 }
  0x31   : > { %2532 = vmatprep.subr.bf16.mxu0 %v2915_v11  ;;  %2772 = vmatprep.subr.bf16.mxu1 %v2916_v12  ;;  %v2929_v25 = vld [vmem:[%s3751_s3 + $0xc8] sm:$0xff]   ;;  %v3214_v28 = vld [vmem:[%s3128_s29] sm:$0xff]   ;;  %v2938_v44 = vld [vmem:[%s3751_s3 + $0xb8] sm:$0xff]  }
  0x32   : > { %v2934_v29 = vld [vmem:[%s3128_s29 + $0x8] ss:$0 sps:$4 sm:$0xff]   ;;  %v3218_v30 = vld [vmem:[%s3128_s29 + $0xc] sm:$0xff]   ;;  %v2932_v31 = vld [vmem:[%s3751_s3 + $0xc0] sm:$0xff]   ;;  %v625_v32 = vshrl.u32 %v3214_v28, 16  ;;  %v627_v33 = vshll.u32 %v3214_v28, 16 }
  0x33   : > { %v632_v34 = vshll.u32 %v2934_v29, 16  ;;  %v720_v35 = vrot.slane %v3214_v28, 1  ;;  %v721_v37 = vrot.slane %v2934_v29, 1  ;;  %v723_v38 = vrot.slane %v3218_v30, 1  ;;  %v2939_v49 = vld [vmem:[%s3751_s3 + $0x38] sm:$0xff]   ;;  %v2940_v52 = vld [vmem:[%s3751_s3 + $0x70] sm:$0xff]  }
  0x34   : > { %2533 = vmatpush3.bf16.msra.mxu0 %v2917_v13  ;;  %2773 = vmatpush3.bf16.msra.mxu1 %v2916_v12  ;;  %v629_v39 = vrot.slane %v627_v33, 1  ;;  %v637_v46 = vshrl.u32 %v3218_v30, 16  ;;  %v639_v47 = vshll.u32 %v3218_v30, 16  ;;  %v2941_v54 = vld [vmem:[%s3751_s3 + $0x30] sm:$0xff]   ;;  %v646_v55 = vrot.slane %v644_v50, 1  ;;  %v3257_v56 = vld [vmem:[%s3128_s29 + $0x18] sm:$0xff]  }
  0x35   : > { %2534 = vmatprep.subr.bf16.mxu0 %v2918_v14  ;;  %2774 = vmatprep.subr.bf16.mxu1 %v2919_v15  ;;  %v634_v40 = vrot.slane %v632_v34, 1  ;;  %v3232_v43 = vsel %vm716_vm0, %v720_v35, %v721_v37  ;;  %v3241_v48 = vsel %vm716_vm0, %v723_v38, %v724_v41  ;;  %v2943_v58 = vld [vmem:[%s3128_s29 + $0x20] ss:$0 sps:$4 sm:$0xff]   ;;  %v726_v59 = vrot.slane %v3257_v56, 1  ;;  %v3264_v60 = vld [vmem:[%s3128_s29 + $0x24] sm:$0xff]   ;;  %v2947_v4 = vld [vmem:[%s3751_s3 + $0xb0] sm:$0xff]  }
  0x36   : > { %v630_v45 = vor.u32 %v629_v39, %v625_v32  ;;  %2784 = vmatprep.mubr.bf16.mxu1 %v3232_v43  ;;  %v641_v53 = vrot.slane %v639_v47, 1  ;;  %v2945_v61 = vld [vmem:[%s3128_s29 + $0x2c] ss:$0 sps:$4 sm:$0xff]   ;;  %v727_v63 = vrot.slane %v2943_v58, 1  ;;  %v729_v1 = vrot.slane %v3264_v60, 1  ;;  %v2949_v9 = vld [vmem:[%s3751_s3 + $0x60] sm:$0xff]  }
  0x37   : > { %v2946_v0 = vld [vmem:[%s3751_s3 + $0x68] sm:$0xff]   ;;  %v730_v2 = vrot.slane %v2945_v61, 1  ;;  %v649_v5 = vshrl.u32 %v3257_v56, 16  ;;  %v651_v8 = vshll.u32 %v3257_v56, 16  ;;  %v656_v10 = vshll.u32 %v2943_v58, 16  ;;  %v2950_v11 = vld [vmem:[%s3751_s3 + $0x20] sm:$0xff]  }
  0x38   : > { %2535 = vmatpush3.bf16.msra.mxu0 %v2920_v16  ;;  %2775 = vmatpush3.bf16.msra.mxu1 %v2919_v15  ;;  %v3247_v51 = vsel %vm611_vm1, %v630_v45, %v634_v40  ;;  %v642_v57 = vor.u32 %v641_v53, %v637_v46  ;;  %v3276_v3 = vsel %vm716_vm0, %v726_v59, %v727_v63  ;;  %v2948_v7 = vld [vmem:[%s3751_s3 + $0x28] sm:$0xff]   ;;  %v3299_v14 = vld [vmem:[%s3128_s29 + $0x30] sm:$0xff]   ;;  %v3302_v15 = vld [vmem:[%s3128_s29 + $0x38] ss:$0 sps:$4 sm:$0xff]   ;;  %v661_v32 = vshrl.u32 %v3264_v60, 16 }
  0x39   : > { %2536 = vmatprep.subr.bf16.mxu0 %v2921_v17  ;;  %2776 = vmatprep.subr.bf16.mxu1 %v2922_v18  ;;  %v3284_v6 = vsel %vm716_vm0, %v729_v1, %v730_v2  ;;  %v653_v12 = vrot.slane %v651_v8, 1  ;;  %v658_v13 = vrot.slane %v656_v10, 1  ;;  %v732_v17 = vrot.slane %v3299_v14, 1  ;;  %v2959_v33 = vld [vmem:[%s3751_s3 + $0x10] sm:$0xff]   ;;  %v3343_v36 = vld [vmem:[%s3128_s29 + $0x48] sm:$0xff]   ;;  %v2967_v59 = vld [vmem:[%s3751_s3 + $0x40] sm:$0xff]  }
  0x3a   : > { %1047 = vmatprep.mubr.bf16.mxu0 %v3247_v51  ;;  %v3268_v62 = vsel %vm611_vm1, %v642_v57, %v646_v55  ;;  %v663_v34 = vshll.u32 %v3264_v60, 16  ;;  %v668_v35 = vshll.u32 %v2945_v61, 16  ;;  %v3348_v39 = vld [vmem:[%s3128_s29 + $0x50] ss:$0 sps:$4 sm:$0xff]   ;;  %v738_v40 = vrot.slane %v3343_v36, 1  ;;  %v3352_v41 = vld [vmem:[%s3128_s29 + $0x54] sm:$0xff]  }
  0x3b   : > { %v654_v16 = vor.u32 %v653_v12, %v649_v5  ;;  %v3356_v45 = vld [vmem:[%s3128_s29 + $0x5c] ss:$0 sps:$4 sm:$0xff]   ;;  %v819_v46 = vrot.slane %v3352_v41, 1  ;;  %v2964_v47 = vld [vmem:[%s3751_s3 + $0x48] sm:$0xff]   ;;  %v675_v57 = vshll.u32 %v3299_v14, 16  ;;  %v680_v61 = vshll.u32 %v3302_v15, 16 }
  0x3c   : > { %2537 = vmatpush3.bf16.msra.mxu0 %v2923_v19  ;;  %2777 = vmatpush3.bf16.msra.mxu1 %v2922_v18  ;;  %v733_v18 = vrot.slane %v3302_v15, 1  ;;  %v3307_v19 = vld [vmem:[%s3128_s29 + $0x3c] sm:$0xff]   ;;  %v665_v37 = vrot.slane %v663_v34, 1  ;;  %v670_v38 = vrot.slane %v668_v35, 1  ;;  %v820_v53 = vrot.slane %v3356_v45, 1  ;;  %v2966_v55 = vld [vmem:[%s3751_s3 + $0x8] sm:$0xff]  }
  0x3d   : > { %2538 = vmatprep.subr.bf16.mxu0 %v2924_v20  ;;  %2778 = vmatprep.subr.bf16.mxu1 %v2925_v21  ;;  %v3310_v20 = vld [vmem:[%s3128_s29 + $0x44] ss:$0 sps:$4 sm:$0xff]   ;;  %v682_v1 = vrot.slane %v680_v61, 1  ;;  %v3393_v5 = vld [vmem:[#allocation2 + $0x8] ss:$0 sps:$4 sm:$0xff]   ;;  %v685_v10 = vshrl.u32 %v3307_v19, 16 }
  0x3e   : > { %v3380_v58 = vsel %vm716_vm0, %v819_v46, %v820_v53  ;;  %v2968_v63 = vld [vmem:[%s3751_s3] sm:$0xff]   ;;  %v2972_v12 = vld [vmem:[%s3751_s3 + $0x90] sm:$0xff]   ;;  %v620_v15 = vshll.u32 %v3393_v5, 16  ;;  %v814_v46 = vshll.u32 %v3356_v45, 16  ;;  %v2983_v45 = vld [vmem:[%s3751_s3 + $0x228] sm:$0xff]  }
  0x3f   : > { %v3391_v2 = vld [vmem:[#allocation2] sm:$0xff]   ;;  %v2980_v53 = vld [vmem:[%s3751_s3 + $0x230] sm:$0xff]   ;;  %v2989_v61 = vld [vmem:[%s3751_s3 + $0x218] sm:$0xff]  }
  0x40   : > { %2539 = vmatpush3.bf16.msra.mxu0 %v2926_v22  ;;  %2779 = vmatpush3.bf16.msra.mxu1 %v2925_v21  ;;  %v2955_v21 = vld [vmem:[%s3751_s3 + $0x58] sm:$0xff]   ;;  %v3316_v22 = vsel %vm611_vm1, %v654_v16, %v658_v13  ;;  %v615_v8 = vshll.u32 %v3391_v2, 16  ;;  %v692_v16 = vshll.u32 %v3310_v20, 16 }
  0x41   : > { %2540 = vmatprep.subr.bf16.mxu0 %v2927_v23  ;;  %2780 = vmatprep.subr.bf16.mxu1 %v2928_v24  ;;  %v3320_v23 = vsel %vm716_vm0, %v732_v17, %v733_v18 }
  0x42   : > { %v617_v17 = vrot.slane %v615_v8, 1  ;;  %v2979_v8 = vld [vmem:[%s3751_s3 + $0x1b0] sm:$0xff]  }
  0x44   : > { %2541 = vmatpush3.bf16.msra.mxu0 %v2929_v25  ;;  %2781 = vmatpush3.bf16.msra.mxu1 %v2928_v24  ;;  %v735_v24 = vrot.slane %v3307_v19, 1  ;;  %v736_v25 = vrot.slane %v3310_v20, 1  ;;  %v2973_v20 = vld [vmem:[%s3751_s3 + $0x88] sm:$0xff]  }
  0x45   : > { %2542 = vmatprep.subr.bf16.mxu0 %v2930_v26  ;;  %2782 = vmatprep.subr.bf16.mxu1 %v2931_v27  ;;  %v2956_v26 = vld [vmem:[%s3751_s3 + $0xa8] sm:$0xff]  }
  0x46   : > { %v3332_v29 = vsel %vm716_vm0, %v735_v24, %v736_v25  ;;  %v622_v24 = vrot.slane %v620_v15, 1  ;;  %v694_v25 = vrot.slane %v692_v16, 1  ;;  %v2988_v15 = vld [vmem:[%s3751_s3 + $0x198] sm:$0xff]   ;;  %v2990_v16 = vld [vmem:[%s3751_s3 + $0x1d0] sm:$0xff]  }
  0x48   : > { %2543 = vmatpush3.bf16.msra.mxu0 %v2932_v31  ;;  %2783 = vmatpush3.bf16.msra.mxu1 %v2931_v27  ;;  %v2957_v27 = vld [vmem:[%s3751_s3 + $0x18] sm:$0xff]   ;;  %v2958_v31 = vld [vmem:[%s3751_s3 + $0x50] sm:$0xff]  }
  0x49   : > { %2608 = vmatprep.subr.bf16.mxu1 %v2937_v42  ;;  %2800 = vmatprep.subr.bf16.mxu0 %v2938_v44  ;;  %v666_v42 = vor.u32 %v665_v37, %v661_v32 }
  0x4b   : > { %1048 = vmatmul.mubr.bf16.vlgmr.msra.gmra.mxu0 %v3214_v28  ;;  %2785 = vmatmul.mubr.bf16.vlgmr.msra.gmra.mxu1 %v3241_v48  ;;  %v3364_v50 = vsel %vm611_vm1, %v666_v42, %v670_v38  ;;  %v2974_v42 = vld [vmem:[%s3751_s3 + $0x80] sm:$0xff]  }
  0x4c   : > { %2609 = vmatpush3.bf16.msra.mxu1 %v2939_v49  ;;  %2801 = vmatpush3.bf16.msra.mxu0 %v2938_v44  ;;  %v739_v44 = vrot.slane %v3348_v39, 1  ;;  %v673_v49 = vshrl.u32 %v3299_v14, 16 }
  0x4d   : > { %2610 = vmatprep.subr.bf16.mxu1 %v2940_v52  ;;  %1055 = vmatprep.mubr.bf16.mxu0 %v3268_v62 }
  0x4e   : > { %2788 = vmatprep.mubr.bf16.mxu1 %v3276_v3  ;;  %2802 = vmatprep.subr.bf16.mxu0 %v2947_v4  ;;  %v3367_v52 = vsel %vm716_vm0, %v738_v40, %v739_v44  ;;  %v2977_v40 = vld [vmem:[%s3751_s3 + $0x238] sm:$0xff]   ;;  %v807_v44 = vshrl.u32 %v3352_v41, 16 }
  0x50   : > { %2611 = vmatpush3.bf16.msra.mxu1 %v2941_v54  ;;  %2803 = vmatpush3.bf16.msra.mxu0 %v2947_v4  ;;  %v2965_v54 = vld [vmem:[%s3751_s3 + $0xa0] sm:$0xff]  }
  0x51   : > { %2612 = vmatprep.subr.bf16.mxu1 %v2946_v0  ;;  %2804 = vmatprep.subr.bf16.mxu0 %v2956_v26  ;;  %v677_v0 = vrot.slane %v675_v57, 1  ;;  %v2986_v57 = vld [vmem:[%s3751_s3 + $0x220] sm:$0xff]  }
  0x53   : > { %1056 = vmatmul.mubr.bf16.gmra.mxu0 %v3218_v30  ;;  %2789 = vmatmul.mubr.bf16.gmra.mxu1 %v3284_v6  ;;  %v678_v4 = vor.u32 %v677_v0, %v673_v49  ;;  %v2992_v0 = vld [vmem:[%s3751_s3 + $0x210] sm:$0xff]  }
  0x54   : > { %2613 = vmatpush3.bf16.msra.mxu1 %v2948_v7  ;;  %1063 = vmatprep.mubr.bf16.mxu0 %v3316_v22  ;;  %v613_v7 = vshrl.u32 %v3391_v2, 16 }
  0x55   : > { %2614 = vmatprep.subr.bf16.mxu1 %v2949_v9  ;;  %2792 = vmatprep.mubr.bf16.mxu1 %v3320_v23  ;;  %v2971_v9 = vld [vmem:[%s3751_s3 + $0x98] sm:$0xff]   ;;  %v3406_v13 = vsel %vm611_vm1, %v678_v4, %v682_v1  ;;  %v2998_v4 = vld [vmem:[%s3751_s3 + $0x200] sm:$0xff]  }
  0x56   : > { %2805 = vmatpush3.bf16.msra.mxu0 %v2956_v26  ;;  %v697_v26 = vshrl.u32 %v3343_v36, 16 }
  0x57   : > { %2806 = vmatprep.subr.bf16.mxu0 %v2965_v54 }
  0x58   : > { %2615 = vmatpush3.bf16.msra.mxu1 %v2950_v11  ;;  %v687_v11 = vshll.u32 %v3307_v19, 16 }
  0x59   : > { %2616 = vmatprep.subr.bf16.mxu1 %v2955_v21  ;;  %v699_v21 = vshll.u32 %v3343_v36, 16 }
  0x5a   : > { %2807 = vmatpush3.bf16.msra.mxu0 %v2965_v54  ;;  %v689_v18 = vrot.slane %v687_v11, 1  ;;  %v2985_v11 = vld [vmem:[%s3751_s3 + $0x1a0] sm:$0xff]  }
  0x5b   : > { %1064 = vmatmul.mubr.bf16.gmra.mxu0 %v3257_v56  ;;  %2793 = vmatmul.mubr.bf16.gmra.mxu1 %v3332_v29 }
  0x5c   : > { %2617 = vmatpush3.bf16.msra.mxu1 %v2957_v27  ;;  %1071 = vmatprep.mubr.bf16.mxu0 %v3364_v50  ;;  %v704_v27 = vshll.u32 %v3348_v39, 16  ;;  %v690_v32 = vor.u32 %v689_v18, %v685_v10  ;;  %v809_v39 = vshll.u32 %v3352_v41, 16  ;;  %v2984_v10 = vld [vmem:[%s3751_s3 + $0x1e0] sm:$0xff]   ;;  %v2993_v18 = vld [vmem:[%s3751_s3 + $0x1c8] sm:$0xff]  }
  0x5d   : > { %2618 = vmatprep.subr.bf16.mxu1 %v2958_v31  ;;  %2796 = vmatprep.mubr.bf16.mxu1 %v3367_v52  ;;  %v618_v31 = vor.u32 %v617_v17, %v613_v7  ;;  %v2978_v7 = vld [vmem:[%s3751_s3 + $0x1f0] sm:$0xff]  }
  0x5e   : > { %2808 = vmatprep.subr.bf16.mxu0 %v2971_v9  ;;  %v3420_v35 = vsel %vm611_vm1, %v690_v32, %v694_v25  ;;  %v706_v38 = vrot.slane %v704_v27, 1  ;;  %v811_v49 = vrot.slane %v809_v39, 1  ;;  %v2991_v17 = vld [vmem:[%s3751_s3 + $0x190] sm:$0xff]   ;;  %v2997_v25 = vld [vmem:[%s3751_s3 + $0x180] sm:$0xff]  }
  0x5f   : > { %2809 = vmatpush3.bf16.msra.mxu0 %v2971_v9  ;;  %v623_v34 = vsel %vm611_vm1, %v618_v31, %v622_v24  ;;  %v2981_v9 = vld [vmem:[%s3751_s3 + $0x1e8] sm:$0xff]   ;;  %v2996_v24 = vld [vmem:[%s3751_s3 + $0x1c0] sm:$0xff]  }
  0x60   : > { %2619 = vmatpush3.bf16.msra.mxu1 %v2959_v33  ;;  %v701_v33 = vrot.slane %v699_v21, 1  ;;  %2810 = vmatprep.subr.bf16.mxu0 %v2972_v12  ;;  %v812_v54 = vor.u32 %v811_v49, %v807_v44  ;;  %v2994_v21 = vld [vmem:[%s3751_s3 + $0x188] sm:$0xff]  }
  0x61   : > { %2620 = vmatprep.subr.bf16.mxu1 %v2964_v47 }
  0x62   : > { %v702_v37 = vor.u32 %v701_v33, %v697_v26 }
  0x63   : > { %1072 = vmatmul.mubr.bf16.gmra.mxu0 %v3264_v60  ;;  %2797 = vmatmul.mubr.bf16.gmra.mxu1 %v3380_v58 }
  0x64   : > { %2621 = vmatpush3.bf16.msra.mxu1 %v2966_v55  ;;  %1079 = vmatprep.mubr.bf16.mxu0 %v3406_v13  ;;  %v3435_v47 = vsel %vm611_vm1, %v702_v37, %v706_v38  ;;  %v816_v55 = vrot.slane %v814_v46, 1 }
  0x65   : > { %2622 = vmatprep.subr.bf16.mxu1 %v2967_v59  ;;  %1385 = vmatprep.mubr.bf16.mxu1 %v623_v34 }
  0x66   : > { %2811 = vmatpush3.bf16.msra.mxu0 %v2972_v12  ;;  %v3454_v59 = vsel %vm611_vm1, %v812_v54, %v816_v55  ;;  %v2987_v12 = vld [vmem:[%s3751_s3 + $0x1d8] sm:$0xff]  }
  0x67   : > { %2812 = vmatprep.subr.bf16.mxu0 %v2973_v20 }
  0x68   : > { %2623 = vmatpush3.bf16.msra.mxu1 %v2968_v63  ;;  %v718_v63 = vrot.slane %v3393_v5, 1  ;;  %v2976_v5 = vld [vmem:[%s3751_s3 + $0x1b8] sm:$0xff]  }
  0x69   : > { %2832 = vmatprep.subr.bf16.mxu1 %v2977_v40 }
  0x6a   : > { %2813 = vmatpush3.bf16.msra.mxu0 %v2973_v20 }
  0x6b   : > { %1080 = vmatmul.mubr.bf16.gmra.mxu0 %v3299_v14  ;;  %1386 = vmatmul.mubr.bf16.vlgmr.msra.gmra.mxu1 %v3391_v2 }
  0x6c   : > { %1087 = vmatprep.mubr.bf16.mxu0 %v3420_v35  ;;  %1393 = vmatprep.mubr.bf16.mxu1 %v3247_v51  ;;  %v2975_v51 = vld [vmem:[%s3751_s3 + $0x1f8] sm:$0xff]  }
  0x6d   : > { %2833 = vmatpush3.bf16.msra.mxu1 %v2977_v40  ;;  %2814 = vmatprep.subr.bf16.mxu0 %v2974_v42 }
  0x6e   : > { %2834 = vmatprep.subr.bf16.mxu1 %v2980_v53  ;;  %2815 = vmatpush3.bf16.msra.mxu0 %v2974_v42 }
  0x6f   : > { %2688 = vmatprep.subr.bf16.mxu0 %v2975_v51 }
  0x71   : > { %2835 = vmatpush3.bf16.msra.mxu1 %v2980_v53 }
  0x72   : > { %2836 = vmatprep.subr.bf16.mxu1 %v2983_v45 }
  0x73   : > { %1088 = vmatmul.mubr.bf16.gmra.mxu0 %v3307_v19  ;;  %1394 = vmatmul.mubr.bf16.gmra.mxu1 %v3214_v28  ;;  %v717_v28 = vrot.slane %v3391_v2, 1  ;;  %v2995_v2 = vld [vmem:[%s3751_s3 + $0x208] sm:$0xff]  }
  0x74   : > { %1095 = vmatprep.mubr.bf16.mxu0 %v3435_v47  ;;  %1401 = vmatprep.mubr.bf16.mxu1 %v3268_v62 }
  0x75   : > { %2837 = vmatpush3.bf16.msra.mxu1 %v2983_v45  ;;  %v719_v1 = vsel %vm716_vm0, %v717_v28, %v718_v63 }
  0x76   : > { %2838 = vmatprep.subr.bf16.mxu1 %v2986_v57 }
  0x79   : > { %2839 = vmatpush3.bf16.msra.mxu1 %v2986_v57 }
  0x7a   : > { %2840 = vmatprep.subr.bf16.mxu1 %v2989_v61 }
  0x7b   : > { %1096 = vmatmul.mubr.bf16.gmra.mxu0 %v3343_v36  ;;  %1402 = vmatmul.mubr.bf16.gmra.mxu1 %v3218_v30 }
  0x7c   : > { %1103 = vmatprep.mubr.bf16.mxu0 %v3454_v59  ;;  %1409 = vmatprep.mubr.bf16.mxu1 %v3316_v22 }
  0x7d   : > { %2841 = vmatpush3.bf16.msra.mxu1 %v2989_v61 }
  0x7e   : > { %2842 = vmatprep.subr.bf16.mxu1 %v2992_v0 }
  0x81   : > { %2843 = vmatpush3.bf16.msra.mxu1 %v2992_v0 }
  0x82   : > { %2844 = vmatprep.subr.bf16.mxu1 %v2995_v2 }
  0x83   : > { %1104 = vmatmul.mubr.bf16.gmra.mxu0 %v3352_v41  ;;  %1410 = vmatmul.mubr.bf16.gmra.mxu1 %v3257_v56 }
  0x84   : > { %2816 = vmatprep.mubr.bf16.mxu0 %v719_v1  ;;  %1417 = vmatprep.mubr.bf16.mxu1 %v3364_v50 }
  0x85   : > { %2845 = vmatpush3.bf16.msra.mxu1 %v2995_v2 }
  0x86   : > { %2846 = vmatprep.subr.bf16.mxu1 %v2998_v4 }
  0x89   : > { %2847 = vmatpush3.bf16.msra.mxu1 %v2998_v4 }
  0x8b   : > { %2817 = vmatmul.mubr.bf16.vlgmr.msra.gmra.mxu0 %v3232_v43  ;;  %1418 = vmatmul.mubr.bf16.gmra.mxu1 %v3264_v60  ;;  %v2982_v43 = vld [vmem:[%s3751_s3 + $0x1a8] sm:$0xff]  }
  0x8c   : > { %2689 = vmatpush3.bf16.msra.mxu0 %v2976_v5  ;;  %2820 = vmatprep.mubr.bf16.mxu0 %v3241_v48 }
  0x8d   : > { %2690 = vmatprep.subr.bf16.mxu0 %v2978_v7  ;;  %1425 = vmatprep.mubr.bf16.mxu1 %v3406_v13 }
  0x90   : > { %2691 = vmatpush3.bf16.msra.mxu0 %v2979_v8 }
  0x91   : > { %2692 = vmatprep.subr.bf16.mxu0 %v2981_v9 }
  0x93   : > { %2821 = vmatmul.mubr.bf16.gmra.mxu0 %v3276_v3  ;;  %1426 = vmatmul.mubr.bf16.gmra.mxu1 %v3299_v14 }
  0x94   : > { %2693 = vmatpush3.bf16.msra.mxu0 %v2982_v43  ;;  %2824 = vmatprep.mubr.bf16.mxu0 %v3284_v6 }
  0x95   : > { %2694 = vmatprep.subr.bf16.mxu0 %v2984_v10  ;;  %1433 = vmatprep.mubr.bf16.mxu1 %v3420_v35 }
  0x98   : > { %2695 = vmatpush3.bf16.msra.mxu0 %v2985_v11 }
  0x99   : > { %2696 = vmatprep.subr.bf16.mxu0 %v2987_v12 }
  0x9b   : > { %2825 = vmatmul.mubr.bf16.gmra.mxu0 %v3320_v23  ;;  %1434 = vmatmul.mubr.bf16.gmra.mxu1 %v3307_v19 }
  0x9c   : > { %2697 = vmatpush3.bf16.msra.mxu0 %v2988_v15  ;;  %2828 = vmatprep.mubr.bf16.mxu0 %v3332_v29 }
  0x9d   : > { %2698 = vmatprep.subr.bf16.mxu0 %v2990_v16  ;;  %1441 = vmatprep.mubr.bf16.mxu1 %v3435_v47 }
  0xa0   : > { %2699 = vmatpush3.bf16.msra.mxu0 %v2991_v17 }
  0xa1   : > { %2700 = vmatprep.subr.bf16.mxu0 %v2993_v18 }
  0xa3   : > { %2829 = vmatmul.mubr.bf16.gmra.mxu0 %v3367_v52  ;;  %1442 = vmatmul.mubr.bf16.gmra.mxu1 %v3343_v36 }
  0xa4   : > { %2701 = vmatpush3.bf16.msra.mxu0 %v2994_v21  ;;  %1797 = vmatprep.mubr.bf16.mxu0 %v3268_v62  ;;  %v3000_v62 = vld [vmem:[#allocation2 + $0x14] ss:$0 sps:$4 sm:$0xff]  }
  0xa5   : > { %2702 = vmatprep.subr.bf16.mxu0 %v2996_v24  ;;  %2848 = vmatprep.mubr.bf16.mxu1 %v3241_v48  ;;  %v2999_v48 = vld [vmem:[#allocation2 + $0xc] sm:$0xff]  }
  0xa8   : > { %2703 = vmatpush3.bf16.msra.mxu0 %v2997_v25 }
  0xab   : > { %1798 = vmatmul.mubr.bf16.vlgmr.msra.gmra.mxu0 %v3218_v30  ;;  %2849 = vmatmul.mubr.bf16.vlgmr.msra.gmra.mxu1 %v3276_v3  ;;  %v1569_v30 = vrot.slane %v2999_v48, 1  ;;  %v1570_v3 = vrot.slane %v3000_v62, 1 }
  0xac   : > { %1805 = vmatprep.mubr.bf16.mxu0 %v3316_v22  ;;  %2852 = vmatprep.mubr.bf16.mxu1 %v3284_v6  ;;  %v1557_v6 = vshrl.u32 %v2999_v48, 16 }
  0xb3   : > { %1806 = vmatmul.mubr.bf16.gmra.mxu0 %v3257_v56  ;;  %2853 = vmatmul.mubr.bf16.gmra.mxu1 %v3320_v23  ;;  %v1571_v56 = vsel %vm716_vm0, %v1569_v30, %v1570_v3  ;;  %v1564_v23 = vshll.u32 %v3000_v62, 16 }
  0xb4   : > { %1813 = vmatprep.mubr.bf16.mxu0 %v3364_v50  ;;  %2856 = vmatprep.mubr.bf16.mxu1 %v3332_v29 }
  0xb5   : > { %v1566_v50 = vrot.slane %v1564_v23, 1 }
  0xbb   : > { %1814 = vmatmul.mubr.bf16.gmra.mxu0 %v3264_v60  ;;  %2857 = vmatmul.mubr.bf16.gmra.mxu1 %v3367_v52  ;;  %v1559_v60 = vshll.u32 %v2999_v48, 16 }
  0xbc   : > { %1821 = vmatprep.mubr.bf16.mxu0 %v3406_v13  ;;  %2860 = vmatprep.mubr.bf16.mxu1 %v3380_v58 }
  0xbd   : > { %v1561_v22 = vrot.slane %v1559_v60, 1 }
  0xbf   : > { %v1562_v29 = vor.u32 %v1561_v22, %v1557_v6 }
  0xc3   : > { %1822 = vmatmul.mubr.bf16.gmra.mxu0 %v3299_v14  ;;  %2861 = vmatmul.mubr.bf16.gmra.mxu1 %v1571_v56  ;;  %v1567_v14 = vsel %vm611_vm1, %v1562_v29, %v1566_v50 }
  0xc4   : > { %1829 = vmatprep.mubr.bf16.mxu0 %v3420_v35 }
  0xcb   : > { %1830 = vmatmul.mubr.bf16.gmra.mxu0 %v3307_v19 }
  0xcc   : > { %1837 = vmatprep.mubr.bf16.mxu0 %v3435_v47 }
  0xd3   : > { %1838 = vmatmul.mubr.bf16.gmra.mxu0 %v3343_v36 }
  0xd4   : > { %1845 = vmatprep.mubr.bf16.mxu0 %v3454_v59 }
  0xdb   : > { %1846 = vmatmul.mubr.bf16.gmra.mxu0 %v3352_v41 }
  0xdc   : > { %1853 = vmatprep.mubr.bf16.mxu0 %v1567_v14 }
  0xe3   : > { %1854 = vmatmul.mubr.bf16.gmra.mxu0 %v2999_v48 }
 0x10b   : > { %v2544_v52 = vpop.f32.mrf.mxu0  ;;  %v2786_v19 = vpop.f32.mrf.mxu1 }
 0x10d   : > { %v2545_v58 = vpop.f32.mrf.mxu0  ;;  %v1146_v13 = vpop.f32.mrf.mxu1 }
 0x10e   : > { %v2546_v26 = vadd.f32 %v2545_v58, %v2544_v52 }
 0x10f   : > { %v2547_v27 = vpop.f32.mrf.mxu0  ;;  %v2787_v31 = vpop.f32.mrf.mxu1 }
 0x110   : > { %v1147_v32 = vadd.f32 %v2546_v26, %v1146_v13 }
 0x111   : > { %v2548_v33 = vpop.f32.mrf.mxu0  ;;  %v1149_v36 = vpop.f32.mrf.mxu1 }
 0x112   : > { %v2549_v20 = vadd.f32 %v2548_v33, %v2547_v27 }
 0x113   : > { %v2550_v34 = vpop.f32.mrf.mxu0  ;;  %v2790_v35 = vpop.f32.mrf.mxu1 }
 0x114   : > { %v3560_v37 = vadd.f32 %v2549_v20, %v1149_v36 }
 0x115   : > { %v2551_v38 = vpop.f32.mrf.mxu0  ;;  %v1162_v39 = vpop.f32.mrf.mxu1 }
 0x116   : > { %v2552_v41 = vadd.f32 %v2551_v38, %v2550_v34 }
 0x117   : > { %v2553_v40 = vpop.f32.mrf.mxu0  ;;  %v2791_v42 = vpop.f32.mrf.mxu1 }
 0x118   : > { %v1155_v44 = vadd.f32 %v2786_v19, %v2552_v41 }
 0x119   : > { %v2554_v46 = vpop.f32.mrf.mxu0  ;;  %v1165_v47 = vpop.f32.mrf.mxu1 }
 0x11a   : > { %v2555_v49 = vadd.f32 %v2554_v46, %v2553_v40 }
 0x11b   : > { %v2556_v53 = vpop.f32.mrf.mxu0  ;;  %v2794_v51 = vpop.f32.mrf.mxu1 }
 0x11c   : > { %v3562_v45 = vadd.f32 %v2787_v31, %v2555_v49 }
 0x11d   : > { %v2557_v54 = vpop.f32.mrf.mxu0  ;;  %v1178_v55 = vpop.f32.mrf.mxu1 }
 0x11e   : > { %v2558_v57 = vadd.f32 %v2557_v54, %v2556_v53 }
 0x11f   : > { %v2559_v59 = vpop.f32.mrf.mxu0  ;;  %v2795_v61 = vpop.f32.mrf.mxu1 }
 0x120   : > { %v1163_v28 = vadd.f32 %v2558_v57, %v1162_v39 }
 0x121   : > { %v2560_v63 = vpop.f32.mrf.mxu0  ;;  %v1181_v0 = vpop.f32.mrf.mxu1 }
 0x122   : > { %v2561_v1 = vadd.f32 %v2560_v63, %v2559_v59 }
 0x123   : > { %v2562_v2 = vpop.f32.mrf.mxu0  ;;  %v2798_v4 = vpop.f32.mrf.mxu1 }
 0x124   : > { %v3564_v5 = vadd.f32 %v2561_v1, %v1165_v47 }
 0x125   : > { %v2563_v7 = vpop.f32.mrf.mxu0  ;;  %v1194_v8 = vpop.f32.mrf.mxu1 }
 0x126   : > { %v2564_v9 = vadd.f32 %v2563_v7, %v2562_v2 }
 0x127   : > { %v2565_v43 = vpop.f32.mrf.mxu0  ;;  %v2799_v10 = vpop.f32.mrf.mxu1 }
 0x128   : > { %v1171_v11 = vadd.f32 %v2790_v35, %v2564_v9 }
 0x129   : > { %v2566_v12 = vpop.f32.mrf.mxu0  ;;  %v1197_v16 = vpop.f32.mrf.mxu1 }
 0x12a   : > { %v2567_v15 = vadd.f32 %v2566_v12, %v2565_v43 }
 0x12b   : > { %v2568_v17 = vpop.f32.mrf.mxu0  ;;  %v2624_v24 = vpop.f32.mrf.mxu1 }
 0x12c   : > { %v3566_v18 = vadd.f32 %v2791_v42, %v2567_v15 }
 0x12d   : > { %v2569_v21 = vpop.f32.mrf.mxu0  ;;  %v2625_v30 = vpop.f32.mrf.mxu1 }
 0x12e   : > { %v2570_v25 = vadd.f32 %v2569_v21, %v2568_v17  ;;  %v2626_v3 = vadd.f32 %v2625_v30, %v2624_v24 }
 0x12f   : > { %v2571_v48 = vpop.f32.mrf.mxu0  ;;  %v3568_v60 = vpop.f32.mrf.mxu1 }
 0x130   : > { %v1179_v62 = vadd.f32 %v2570_v25, %v1178_v55  ;;  %v3570_v23 = vadd.f32 %v2626_v3, %v1147_v32 }
 0x131   : > { %v2572_v56 = vpop.f32.mrf.mxu0  ;;  %v3574_v50 = vpop.f32.mrf.mxu1 }
 0x132   : > { %v2573_v6 = vadd.f32 %v2572_v56, %v2571_v48 }
 0x133   : > { %v2574_v22 = vpop.f32.mrf.mxu0  ;;  %v2630_v52 = vpop.f32.mrf.mxu1 }
 0x134   : > { %v3572_v29 = vadd.f32 %v2573_v6, %v1181_v0 }
 0x135   : > { %v2575_v14 = vpop.f32.mrf.mxu0  ;;  %v2631_v26 = vpop.f32.mrf.mxu1 }
 0x136   : > { %v2576_v19 = vadd.f32 %v2575_v14, %v2574_v22  ;;  %v2632_v27 = vadd.f32 %v2631_v26, %v2630_v52 }
 0x137   : > { %v2577_v58 = vpop.f32.mrf.mxu0  ;;  %v3576_v33 = vpop.f32.mrf.mxu1 }
 0x138   : > { %v1187_v13 = vadd.f32 %v2794_v51, %v2576_v19  ;;  %v3578_v34 = vadd.f32 %v2632_v27, %v1155_v44 }
 0x139   : > { %v2578_v31 = vpop.f32.mrf.mxu0  ;;  %v3582_v35 = vpop.f32.mrf.mxu1 }
 0x13a   : > { %v2579_v36 = vadd.f32 %v2578_v31, %v2577_v58 }
 0x13b   : > { %v2580_v20 = vpop.f32.mrf.mxu0  ;;  %v2636_v39 = vpop.f32.mrf.mxu1 }
 0x13c   : > { %v3580_v32 = vadd.f32 %v2795_v61, %v2579_v36 }
 0x13d   : > { %v2581_v38 = vpop.f32.mrf.mxu0  ;;  %v2637_v46 = vpop.f32.mrf.mxu1 }
 0x13e   : > { %v2582_v41 = vadd.f32 %v2581_v38, %v2580_v20  ;;  %v2638_v47 = vadd.f32 %v2637_v46, %v2636_v39 }
 0x13f   : > { %v2583_v40 = vpop.f32.mrf.mxu0  ;;  %v3584_v53 = vpop.f32.mrf.mxu1 }
 0x140   : > { %v1195_v42 = vadd.f32 %v2582_v41, %v1194_v8  ;;  %v3586_v55 = vadd.f32 %v2638_v47, %v1163_v28 }
 0x141   : > { %v2584_v49 = vpop.f32.mrf.mxu0  ;;  %v3590_v57 = vpop.f32.mrf.mxu1 }
 0x142   : > { %v2585_v51 = vadd.f32 %v2584_v49, %v2583_v40 }
 0x143   : > { %v2586_v54 = vpop.f32.mrf.mxu0  ;;  %v2642_v61 = vpop.f32.mrf.mxu1 }
 0x144   : > { %v3588_v44 = vadd.f32 %v2585_v51, %v1197_v16 }
 0x145   : > { %v2587_v59 = vpop.f32.mrf.mxu0  ;;  %v2643_v2 = vpop.f32.mrf.mxu1 }
 0x146   : > { %v2588_v63 = vadd.f32 %v2587_v59, %v2586_v54  ;;  %v2644_v7 = vadd.f32 %v2643_v2, %v2642_v61 }
 0x147   : > { %v2589_v0 = vpop.f32.mrf.mxu0  ;;  %v3592_v9 = vpop.f32.mrf.mxu1 }
 0x148   : > { %v1203_v1 = vadd.f32 %v2798_v4, %v2588_v63  ;;  %v3596_v15 = vadd.f32 %v2644_v7, %v1171_v11 }
 0x149   : > { %v2590_v8 = vpop.f32.mrf.mxu0  ;;  %v3598_v16 = vpop.f32.mrf.mxu1 }
 0x14a   : > { %v2591_v43 = vadd.f32 %v2590_v8, %v2589_v0 }
 0x14b   : > { %v3594_v12 = vpop.f32.mrf.mxu0  ;;  %v2648_v21 = vpop.f32.mrf.mxu1 }
 0x14c   : > { %v1206_v28 = vadd.f32 %v2799_v10, %v2591_v43 }
 0x14d   : > { %v1484_v17 = vpop.f32.mrf.mxu0  ;;  %v2649_v25 = vpop.f32.mrf.mxu1 }
 0x14e   : > { %v2650_v48 = vadd.f32 %v2649_v25, %v2648_v21 }
 0x14f   : > { %v3600_v24 = vpop.f32.mrf.mxu0  ;;  %v3602_v30 = vpop.f32.mrf.mxu1 }
 0x150   : > { %v3606_v56 = vadd.f32 %v2650_v48, %v1179_v62 }
 0x151   : > { %v1487_v4 = vpop.f32.mrf.mxu0  ;;  %v3608_v6 = vpop.f32.mrf.mxu1 }
 0x153   : > { %v3604_v3 = vpop.f32.mrf.mxu0  ;;  %v2654_v10 = vpop.f32.mrf.mxu1 }
 0x155   : > { %v3610_v11 = vpop.f32.mrf.mxu0  ;;  %v2655_v14 = vpop.f32.mrf.mxu1 }
 0x156   : > { %v2656_v52 = vadd.f32 %v2655_v14, %v2654_v10  ;;  %v2629_v14 = vadd.f32 %v3574_v50, %v3568_v60 }
 0x157   : > { %v3612_v22 = vpop.f32.mrf.mxu0  ;;  %v3616_v58 = vpop.f32.mrf.mxu1 }
 0x158   : > { %v1428_v26 = vadd.f32 %v2656_v52, %v1187_v13 }
 0x159   : > { %v3614_v19 = vpop.f32.mrf.mxu0  ;;  %v3618_v31 = vpop.f32.mrf.mxu1 }
 0x15b   : > { %v2826_v27 = vpop.f32.mrf.mxu0  ;;  %v2660_v20 = vpop.f32.mrf.mxu1 }
 0x15c   : > { %v3620_v36 = vadd.f32 %v2826_v27, %v1428_v26 }
 0x15d   : > { %v3622_v62 = vpop.f32.mrf.mxu0  ;;  %v2661_v39 = vpop.f32.mrf.mxu1 }
 0x15e   : > { %v2662_v41 = vadd.f32 %v2661_v39, %v2660_v20  ;;  %v1485_v20 = vadd.f32 %v1484_v17, %v3570_v23 }
 0x15f   : > { %v3624_v38 = vpop.f32.mrf.mxu0  ;;  %v3628_v46 = vpop.f32.mrf.mxu1 }
 0x160   : > { %v3630_v49 = vadd.f32 %v2662_v41, %v1195_v42 }
 0x161   : > { %v3626_v40 = vpop.f32.mrf.mxu0  ;;  %v3632_v13 = vpop.f32.mrf.mxu1 }
 0x163   : > { %v2830_v47 = vpop.f32.mrf.mxu0  ;;  %v2666_v54 = vpop.f32.mrf.mxu1 }
 0x165   : > { %v3634_v51 = vpop.f32.mrf.mxu0  ;;  %v2667_v61 = vpop.f32.mrf.mxu1 }
 0x166   : > { %v2668_v63 = vadd.f32 %v2667_v61, %v2666_v54 }
 0x167   : > { %v2831_v59 = vpop.f32.mrf.mxu0  ;;  %v2669_v2 = vpop.f32.mrf.mxu1 }
 0x168   : > { %v1444_v7 = vadd.f32 %v2668_v63, %v1203_v1  ;;  %v1391_v63 = vadd.f32 %v2629_v14, %v3560_v37 }
 0x169   : > { %v3636_v0 = vpop.f32.mrf.mxu0  ;;  %v2670_v43 = vpop.f32.mrf.mxu1 }
 0x16a   : > { %v3638_v21 = vadd.f32 %v2830_v47, %v1444_v7  ;;  %v2671_v25 = vadd.f32 %v2670_v43, %v2669_v2  ;;  %v3648_v47 = vld [vmem:[%s3752_s4] ss:$0 sm:$0xff] }
 0x16b   : > { %v2704_v8 = vpop.f32.mrf.mxu0  ;;  %v2850_v10 = vpop.f32.mrf.mxu1 }
 0x16c   : > { %v1447_v52 = vadd.f32 %v2671_v25, %v1206_v28  ;;  %v1488_v28 = vadd.f32 %v1487_v4, %v1391_v63 }
 0x16d   : > { %v2705_v48 = vpop.f32.mrf.mxu0  ;;  %v1896_v27 = vpop.f32.mrf.mxu1 }
 0x16e   : > { %v2706_v42 = vadd.f32 %v2705_v48, %v2704_v8  ;;  %v3643_v39 = vadd.f32 %v2831_v59, %v1447_v52  ;;  %v2635_v59 = vadd.f32 %v3582_v35, %v3576_v33  ;;  %v3657_v8 = vld [vmem:[%s3753_s5] ss:$0 sm:$0xff] }
 0x16f   : > { %v2707_v26 = vpop.f32.mrf.mxu0  ;;  %v2851_v61 = vpop.f32.mrf.mxu1 }
 0x170   : > { %v1897_v41 = vadd.f32 %v2706_v42, %v1896_v27  ;;  %v1493_v42 = vadd.f32 %v3594_v12, %v3578_v34  ;;  %v1399_v33 = vadd.f32 %v2635_v59, %v3562_v45  ;;  %v2641_v12 = vadd.f32 %v3590_v57, %v3584_v53 }
 0x171   : > { %v2708_v1 = vpop.f32.mrf.mxu0  ;;  %v1899_v50 = vpop.f32.mrf.mxu1 }
 0x172   : > { %v2709_v54 = vadd.f32 %v2708_v1, %v2707_v26  ;;  %v1959_v2 = vadd.f32 %v1897_v41, %v1485_v20 }
 0x173   : > { %v2710_v60 = vpop.f32.mrf.mxu0  ;;  %v2854_v25 = vpop.f32.mrf.mxu1 }
 0x174   : > { %v1982_v7 = vmul.f32 %v3648_v47, %v1959_v2  ;;  %v1900_v23 = vadd.f32 %v2709_v54, %v1899_v50  ;;  %v1496_v54 = vadd.f32 %v3600_v24, %v1399_v33 }
 0x175   : > { %v2711_v17 = vpop.f32.mrf.mxu0  ;;  %v1912_v27 = vpop.f32.mrf.mxu1 }
 0x176   : > { %v2712_v43 = vadd.f32 %v2711_v17, %v2710_v60  ;;  %v1960_v48 = vadd.f32 %v1900_v23, %v1488_v28  ;;  %v2005_v14 = vadd.f32 %v3657_v8, %v1982_v7  ;;  %v1501_v17 = vadd.f32 %v3610_v11, %v3586_v55 }
 0x177   : > { %v2713_v37 = vpop.f32.mrf.mxu0  ;;  %v2855_v50 = vpop.f32.mrf.mxu1 }
 0x178   : > { %v1905_v4 = vadd.f32 %v2850_v10, %v2712_v43  ;;  %v1983_v52 = vmul.f32 %v3648_v47, %v1960_v48  ;;  %v2021_v10 = vmax.f32 %v2005_v14, 0.0 }
 0x179   : > { %v2714_v26 = vpop.f32.mrf.mxu0  ;;  %v1915_v57 = vpop.f32.mrf.mxu1 }
 0x17a   : > { %v1961_v35 = vadd.f32 %v1905_v4, %v1493_v42  ;;  %v2715_v20 = vadd.f32 %v2714_v26, %v2713_v37  ;;  %v2006_v41 = vadd.f32 %v3657_v8, %v1983_v52 }
 0x17b   : > { %v2716_v1 = vpop.f32.mrf.mxu0  ;;  %v2858_v33 = vpop.f32.mrf.mxu1 }
 0x17c   : > { %v1984_v63 = vmul.f32 %v3648_v47, %v1961_v35  ;;  %v1908_v34 = vadd.f32 %v2851_v61, %v2715_v20  ;;  %v2022_v2 = vmax.f32 %v2006_v41, 0.0  ;;  %v1407_v61 = vadd.f32 %v2641_v12, %v3564_v5 }
 0x17d   : > { %v2717_v60 = vpop.f32.mrf.mxu0 }
 0x17e   : > { %v1962_v28 = vadd.f32 %v1908_v34, %v1496_v54  ;;  %v2718_v45 = vadd.f32 %v2717_v60, %v2716_v1  ;;  %v2484_v7 = vpack.c.bf16 %v2022_v2, %v2021_v10  ;;  %v2007_v24 = vadd.f32 %v3657_v8, %v1984_v63  ;;  %v1928_v2 = vpop.f32.mrf.mxu1 }
 0x17f   : > { %v2719_v23 = vpop.f32.mrf.mxu0  ;;  %v1504_v4 = vadd.f32 %v3614_v19, %v1407_v61  ;;  %v1509_v54 = vadd.f32 %v3604_v3, %v3596_v15 }
 0x180   : > { %v1985_v59 = vmul.f32 %v3648_v47, %v1962_v28  ;;  %v1913_v43 = vadd.f32 %v2718_v45, %v1912_v27  ;;  %2485 = vst [vmem:[%s3137_s8] sm:$0xff] %v2484_v7   ;;  %v2023_v52 = vmax.f32 %v2007_v24, 0.0  ;;  %v2647_v27 = vadd.f32 %v3598_v16, %v3592_v9 }
 0x181   : > { %v2720_v53 = vpop.f32.mrf.mxu0 }
 0x182   : > { %v2008_v48 = vadd.f32 %v3657_v8, %v1985_v59  ;;  %v1963_v37 = vadd.f32 %v1913_v43, %v1501_v17  ;;  %v2721_v42 = vadd.f32 %v2720_v53, %v2719_v23  ;;  %v1415_v12 = vadd.f32 %v2647_v27, %v3566_v18  ;;  %v2859_v18 = vpop.f32.mrf.mxu1 }
 0x183   : > { %v2722_v14 = vpop.f32.mrf.mxu0  ;;  %v1517_v53 = vadd.f32 %v3622_v62, %v3606_v56 }
 0x184   : > { %v2024_v55 = vmax.f32 %v2008_v48, 0.0  ;;  %v1986_v11 = vmul.f32 %v3648_v47, %v1963_v37  ;;  %v1916_v26 = vadd.f32 %v2721_v42, %v1915_v57  ;;  %v1512_v28 = vadd.f32 %v3612_v22, %v1415_v12  ;;  %v1931_v42 = vpop.f32.mrf.mxu1 }
 0x185   : > { %v2723_v5 = vpop.f32.mrf.mxu0 }
 0x186   : > { %v2489_v35 = vpack.c.bf16 %v2024_v55, %v2023_v52  ;;  %v1964_v20 = vadd.f32 %v1916_v26, %v1504_v4  ;;  %v2724_v41 = vadd.f32 %v2723_v5, %v2722_v14  ;;  %v2009_v19 = vadd.f32 %v3657_v8, %v1986_v11 }
 0x187   : > { %v2725_v1 = vpop.f32.mrf.mxu0  ;;  %v2659_v26 = vadd.f32 %v3618_v31, %v3616_v58 }
 0x188   : > { %2521 = vst [vmem:[%s3137_s8 + $0x8] sm:$0xff] %v2489_v35   ;;  %v1987_v63 = vmul.f32 %v3648_v47, %v1964_v20  ;;  %v1921_v34 = vadd.f32 %v2854_v25, %v2724_v41  ;;  %v2025_v7 = vmax.f32 %v2009_v19, 0.0  ;;  %v2653_v25 = vadd.f32 %v3608_v6, %v3602_v30 }
 0x189   : > { %v2726_v10 = vpop.f32.mrf.mxu0  ;;  %v1431_v19 = vadd.f32 %v2659_v26, %v3580_v32 }
 0x18a   : > { %v2010_v9 = vadd.f32 %v3657_v8, %v1987_v63  ;;  %v1965_v16 = vadd.f32 %v1921_v34, %v1509_v54  ;;  %v2727_v60 = vadd.f32 %v2726_v10, %v2725_v1 }
 0x18b   : > { %v2728_v45 = vpop.f32.mrf.mxu0  ;;  %v1528_v10 = vadd.f32 %v3624_v38, %v1431_v19 }
 0x18c   : > { %v2026_v15 = vmax.f32 %v2010_v9, 0.0  ;;  %v1988_v3 = vmul.f32 %v3648_v47, %v1965_v16  ;;  %v1924_v23 = vadd.f32 %v2855_v50, %v2727_v60  ;;  %v1423_v50 = vadd.f32 %v2653_v25, %v3572_v29  ;;  %v2862_v29 = vpop.f32.mrf.mxu1 }
 0x18d   : > { %v2729_v17 = vpop.f32.mrf.mxu0 }
 0x18e   : > { %v2494_v24 = vpack.c.bf16 %v2026_v15, %v2025_v7  ;;  %v1966_v59 = vadd.f32 %v1924_v23, %v1512_v28  ;;  %v2730_v43 = vadd.f32 %v2729_v17, %v2728_v45  ;;  %v2011_v22 = vadd.f32 %v3657_v8, %v1988_v3  ;;  %v1944_v34 = vpop.f32.mrf.mxu1 }
 0x18f   : > { %v2731_v61 = vpop.f32.mrf.mxu0  ;;  %v1520_v14 = vadd.f32 %v3626_v40, %v1423_v50 }
 0x190   : > { %2522 = vst [vmem:[%s3137_s8 + $0x10] sm:$0xff] %v2494_v24   ;;  %v1989_v57 = vmul.f32 %v3648_v47, %v1966_v59  ;;  %v1929_v48 = vadd.f32 %v2730_v43, %v1928_v2  ;;  %v2027_v55 = vmax.f32 %v2011_v22, 0.0  ;;  %v2863_v45 = vpop.f32.mrf.mxu1 }
 0x191   : > { %v2732_v37 = vpop.f32.mrf.mxu0 }
 0x192   : > { %v2012_v30 = vadd.f32 %v3657_v8, %v1989_v57  ;;  %v1967_v6 = vadd.f32 %v1929_v48, %v1517_v53  ;;  %v2733_v4 = vadd.f32 %v2732_v37, %v2731_v61 }
 0x193   : > { %v2734_v52 = vpop.f32.mrf.mxu0 }
 0x194   : > { %v2028_v56 = vmax.f32 %v2012_v30, 0.0  ;;  %v1990_v62 = vmul.f32 %v3648_v47, %v1967_v6  ;;  %v1932_v11 = vadd.f32 %v2733_v4, %v1931_v42 }
 0x195   : > { %v2735_v27 = vpop.f32.mrf.mxu0 }
 0x196   : > { %v2499_v5 = vpack.c.bf16 %v2028_v56, %v2027_v55  ;;  %v1968_v35 = vadd.f32 %v1932_v11, %v1520_v14  ;;  %v2736_v20 = vadd.f32 %v2735_v27, %v2734_v52  ;;  %v2013_v1 = vadd.f32 %v3657_v8, %v1990_v62 }
 0x197   : > { %v2737_v41 = vpop.f32.mrf.mxu0 }
 0x198   : > { %2523 = vst [vmem:[%s3137_s8 + $0x18] sm:$0xff] %v2499_v5   ;;  %v1991_v40 = vmul.f32 %v3648_v47, %v1968_v35  ;;  %v1937_v54 = vadd.f32 %v2858_v33, %v2736_v20  ;;  %v2029_v9 = vmax.f32 %v2013_v1, 0.0  ;;  %v2665_v33 = vadd.f32 %v3632_v13, %v3628_v46  ;;  %v1947_v46 = vpop.f32.mrf.mxu1 }
 0x199   : > { %v2738_v63 = vpop.f32.mrf.mxu0 }
 0x19a   : > { %v2014_v12 = vadd.f32 %v3657_v8, %v1991_v40  ;;  %v1969_v58 = vadd.f32 %v1937_v54, %v3620_v36  ;;  %v2739_v31 = vadd.f32 %v2738_v63, %v2737_v41  ;;  %v1533_v36 = vadd.f32 %v3634_v51, %v3630_v49 }
 0x19b   : > { %v2740_v2 = vpop.f32.mrf.mxu0 }
 0x19c   : > { %v2030_v16 = vmax.f32 %v2014_v12, 0.0  ;;  %v1992_v60 = vmul.f32 %v3648_v47, %v1969_v58  ;;  %v1940_v28 = vadd.f32 %v2859_v18, %v2739_v31  ;;  %v1439_v18 = vadd.f32 %v2665_v33, %v3588_v44 }
 0x19d   : > { %v2741_v32 = vpop.f32.mrf.mxu0 }
 0x19e   : > { %v2504_v7 = vpack.c.bf16 %v2030_v16, %v2029_v9  ;;  %v1970_v15 = vadd.f32 %v1940_v28, %v1528_v10  ;;  %v2742_v3 = vadd.f32 %v2741_v32, %v2740_v2  ;;  %v2015_v38 = vadd.f32 %v3657_v8, %v1992_v60 }
 0x19f   : > { %v2743_v23 = vpop.f32.mrf.mxu0  ;;  %v1536_v61 = vadd.f32 %v3636_v0, %v1439_v18 }
 0x1a0   : > { %2524 = vst [vmem:[%s3137_s8 + $0x20] sm:$0xff] %v2504_v7   ;;  %v1993_v25 = vmul.f32 %v3648_v47, %v1970_v15  ;;  %v1945_v17 = vadd.f32 %v2742_v3, %v1944_v34  ;;  %v2031_v22 = vmax.f32 %v2015_v38, 0.0 }
 0x1a1   : > { %v2744_v24 = vpop.f32.mrf.mxu0 }
 0x1a2   : > { %v2016_v13 = vadd.f32 %v3657_v8, %v1993_v25  ;;  %v1971_v59 = vadd.f32 %v1945_v17, %v1533_v36  ;;  %v2745_v43 = vadd.f32 %v2744_v24, %v2743_v23 }
 0x1a3   : > { %v2746_v53 = vpop.f32.mrf.mxu0 }
 0x1a4   : > { %v2032_v49 = vmax.f32 %v2016_v13, 0.0  ;;  %v1994_v51 = vmul.f32 %v3648_v47, %v1971_v59  ;;  %v1948_v57 = vadd.f32 %v2745_v43, %v1947_v46 }
 0x1a5   : > { %v2747_v48 = vpop.f32.mrf.mxu0 }
 0x1a6   : > { %v2509_v50 = vpack.c.bf16 %v2032_v49, %v2031_v22  ;;  %v1972_v37 = vadd.f32 %v1948_v57, %v1536_v61  ;;  %v2748_v42 = vadd.f32 %v2747_v48, %v2746_v53  ;;  %v2017_v30 = vadd.f32 %v3657_v8, %v1994_v51 }
 0x1a7   : > { %v2749_v44 = vpop.f32.mrf.mxu0 }
 0x1a8   : > { %2525 = vst [vmem:[%s3137_s8 + $0x28] sm:$0xff] %v2509_v50   ;;  %v1995_v6 = vmul.f32 %v3648_v47, %v1972_v37  ;;  %v1953_v4 = vadd.f32 %v2862_v29, %v2748_v42  ;;  %v2033_v56 = vmax.f32 %v2017_v30, 0.0 }
 0x1a9   : > { %v2750_v14 = vpop.f32.mrf.mxu0 }
 0x1aa   : > { %v2018_v0 = vadd.f32 %v3657_v8, %v1995_v6  ;;  %v1973_v52 = vadd.f32 %v1953_v4, %v3638_v21  ;;  %v2751_v55 = vadd.f32 %v2750_v14, %v2749_v44 }
 0x1ac   : > { %v2034_v62 = vmax.f32 %v2018_v0, 0.0  ;;  %v1996_v11 = vmul.f32 %v3648_v47, %v1973_v52  ;;  %v1956_v26 = vadd.f32 %v2863_v45, %v2751_v55 }
 0x1ae   : > { %v2514_v27 = vpack.c.bf16 %v2034_v62, %v2033_v56  ;;  %v1974_v5 = vadd.f32 %v1956_v26, %v3643_v39  ;;  %v2019_v35 = vadd.f32 %v3657_v8, %v1996_v11 }
 0x1b0   : > { %2526 = vst [vmem:[%s3137_s8 + $0x30] sm:$0xff] %v2514_v27   ;;  %v1997_v29 = vmul.f32 %v3648_v47, %v1974_v5  ;;  %v2035_v41 = vmax.f32 %v2019_v35, 0.0 }
 0x1b2   : > { %v2020_v20 = vadd.f32 %v3657_v8, %v1997_v29 }
 0x1b4   : > { %v2036_v1 = vmax.f32 %v2020_v20, 0.0 }
 0x1b6   : > { %v2519_v40 = vpack.c.bf16 %v2036_v1, %v2035_v41 }
 0x1b8   : > { %2527 = vst [vmem:[%s3137_s8 + $0x38] sm:$0xff] %v2519_v40  }
 0x1b9 PF: > { %s16_s25 = sadd.s32 1, %s3039_s25   ;;  %s3760_s22 = sld [smem:[#allocation3_spill]] }
 0x1ba   : > { %p13_p12 = scmp.ge.s32.totalorder %s16_s25, 6   ;;  %s3761_s9 = sld [smem:[#allocation4_spill]] }
 0x1bb   : > { %s3762_s24 = sld [smem:[#allocation5_spill]]  ;;  %s3763_s21 = smov %s3031_s23 }
 0x1bc   :  { %15 = sbr.rel (!%p13_p12) target bundleno = 3 (0x3), region = 99 }
 0x1c0   : > { %s3764_s23 = smov %s3761_s9 }

</bundles_post_ra>
